<compile_context>
chip_gen: v7x
topology: tpu7x:2x2x1
jax: 0.10.0
libtpu: 0.0.40
codegen_flags: <defaults>
</compile_context>

<pallas_src>
import functools

import jax
import jax.numpy as jnp
from jax.experimental import pallas as pl
from jax.experimental.pallas import tpu as pltpu

_BN_EPS = 1e-5
_C = 128        # lane-padded output-channel width of every matmul (N dim)
_NB = 8         # batch (sublane) block size
_CIN_PAD = 8    # layer-1 input channels padded 3 -> 8 (keeps im2col chunks 8-aligned)
_C1, _C2, _C3 = 16, 32, 64                        # real conv channel counts
_K1, _K2, _K3 = 9 * _CIN_PAD, 9 * _C1, 9 * _C2    # folded im2col contraction dims


# ------------------------------ Pallas kernel --------------------------------

def _im2col_matmul_bn_relu(xpad, col_ref, w_ref, scale, bias, ho, wo, cin):
    """One fused conv3x3(stride 2, pad 1) + folded BN + ReLU layer.

    xpad:    (2*ho+2, 2*wo+2, _NB, cin) spatially padded activation (value).
    col_ref: (ho*wo*_NB, 9*cin) bf16 VMEM scratch -- in-VMEM im2col matrix.
    w_ref:   (9*cin, _C) bf16 weight slab, K index = (kh*3+kw)*cin + ci.
    scale, bias: (1, _C) f32 folded BatchNorm.
    Returns (ho*wo*_NB, _C) float32 post-ReLU.
    """
    m = ho * wo * _NB
    # Pair-split the (even) padded spatial dims so every stride-2 tap is a static
    # unit-stride slice of leading dims; write each tap into its K-chunk of the
    # im2col scratch (chunks are 8/16/32 lanes wide -> never straddle a lane tile).
    xr = xpad.reshape(ho + 1, 2, wo + 1, 2, _NB, cin)
    for kh in range(3):
        ah, ph = kh // 2, kh % 2
        for kw in range(3):
            aw, pw = kw // 2, kw % 2
            t = kh * 3 + kw
            tap = xr[ah:ah + ho, ph, aw:aw + wo, pw, :, :]       # (ho, wo, _NB, cin)
            col_ref[:, t * cin:(t + 1) * cin] = (
                tap.reshape(m, cin).astype(col_ref.dtype))
    # Single MXU matmul per layer: all 9 taps folded into the contraction dim.
    y = jnp.dot(col_ref[...], w_ref[...], preferred_element_type=jnp.float32)
    return jnp.maximum(y * scale + bias, 0.0)


def _zero_ring(act_ref, hp, wp, c):
    """Zero only the 1-pixel conv-padding ring of an activation scratch buffer."""
    zrow = jnp.zeros((wp, _NB, c), jnp.float32)
    zcol = jnp.zeros((hp, _NB, c), jnp.float32)
    act_ref[0, :, :, :] = zrow
    act_ref[hp - 1, :, :, :] = zrow
    act_ref[:, 0, :, :] = zcol
    act_ref[:, wp - 1, :, :] = zcol


def _fused_cnn_kernel(h, w, x_ref, w1_ref, w2_ref, w3_ref, s_ref, b_ref,
                      wfc_ref, bfc_ref, o_ref, col1, col2, col3, act1, act2):
    h1, w1 = h // 2, w // 2
    h2, w2 = h1 // 2, w1 // 2
    h3, w3 = h2 // 2, w2 // 2

    # Ring-only zeroing (interiors are fully rewritten below; done every step so it
    # is correct even when the batch grid axis is sharded across TensorCores).
    _zero_ring(act1, h1 + 2, w1 + 2, _C1)
    _zero_ring(act2, h2 + 2, w2 + 2, _C2)

    # Layer 1: 3(->8 pad) -> 16.  K = 72, one matmul.
    y1 = _im2col_matmul_bn_relu(x_ref[0], col1, w1_ref, s_ref[0], b_ref[0],
                                h1, w1, _CIN_PAD)
    act1[1:h1 + 1, 1:w1 + 1, :, :] = y1[:, :_C1].reshape(h1, w1, _NB, _C1)

    # Layer 2: 16 -> 32.  K = 144.
    y2 = _im2col_matmul_bn_relu(act1[...], col2, w2_ref, s_ref[1], b_ref[1],
                                h2, w2, _C1)
    act2[1:h2 + 1, 1:w2 + 1, :, :] = y2[:, :_C2].reshape(h2, w2, _NB, _C2)

    # Layer 3: 32 -> 64.  K = 288.
    y3 = _im2col_matmul_bn_relu(act2[...], col3, w3_ref, s_ref[2], b_ref[2],
                                h3, w3, _C2)

    # Head: AdaptiveAvgPool2d(1) + Linear, fused; lane-dense (_NB, 128) output slab.
    pooled = jnp.mean(y3.reshape(h3 * w3, _NB, _C), axis=0)          # (_NB, _C) f32
    o_ref[0] = (jnp.dot(pooled.astype(wfc_ref.dtype), wfc_ref[...],
                        preferred_element_type=jnp.float32) + bfc_ref[...])


# ------------------------------ JAX glue --------------------------------------

def _fold_bn(gamma, beta, mean, var, eps=_BN_EPS):
    scale = gamma / jnp.sqrt(var + eps)
    return scale, beta - mean * scale


def _pack_params(params, num_classes):
    """Fold BN and pack conv weights as compact tap-folded (9*cin, 128) slabs."""
    def pack_conv(w_hwio, cin_pad):
        kh, kw, cin, cout = w_hwio.shape
        wt = jnp.zeros((kh * kw, cin_pad, _C), jnp.float32)
        wt = wt.at[:, :cin, :cout].set(w_hwio.reshape(kh * kw, cin, cout))
        return wt.reshape(kh * kw * cin_pad, _C).astype(jnp.bfloat16)

    wk1 = pack_conv(params["conv1_w"], _CIN_PAD)     # (72, 128)
    wk2 = pack_conv(params["conv2_w"], _C1)          # (144, 128)
    wk3 = pack_conv(params["conv3_w"], _C2)          # (288, 128)

    s_all = jnp.zeros((3, 1, _C), jnp.float32)
    b_all = jnp.zeros((3, 1, _C), jnp.float32)
    for li in range(3):
        cout = params[f"conv{li + 1}_w"].shape[-1]
        scale, bias = _fold_bn(*params[f"bn{li + 1}"])
        s_all = s_all.at[li, 0, :cout].set(scale)
        b_all = b_all.at[li, 0, :cout].set(bias)

    wfc = jnp.zeros((_C, _C), jnp.bfloat16)
    wfc = wfc.at[:_C3, :num_classes].set(params["fc_w"].astype(jnp.bfloat16))
    bfc = jnp.zeros((1, _C), jnp.float32).at[0, :num_classes].set(params["fc_b"])
    return wk1, wk2, wk3, s_all, b_all, wfc, bfc


def simple_cnn_forward(params, x_nchw, num_classes=5):
    """Pallas forward. Input: (N, 3, H, W) float32 -> (N, num_classes) float32."""
    n, cin, h, w = x_nchw.shape
    assert h % 8 == 0 and w % 8 == 0, "three stride-2 convs need spatial % 8 == 0"
    assert cin <= _CIN_PAD
    nb = pl.cdiv(n, _NB)

    # NCHW -> (H, W, N, C); spatial ring pad of 1, batch -> nb*8, channels 3 -> 8
    # only (NOT 128: keeps layer-1 input DMA compact).
    xt = jnp.transpose(x_nchw, (2, 3, 0, 1)).astype(jnp.bfloat16)
    xp = jnp.pad(xt, ((1, 1), (1, 1), (0, nb * _NB - n), (0, _CIN_PAD - cin)))
    xp = xp.reshape(h + 2, w + 2, nb, _NB, _CIN_PAD).transpose(2, 0, 1, 3, 4)

    wk1, wk2, wk3, s_all, b_all, wfc, bfc = _pack_params(params, num_classes)

    h1, w1 = h // 2, w // 2
    h2, w2 = h1 // 2, w1 // 2
    h3, w3 = h2 // 2, w2 // 2

    kernel = functools.partial(_fused_cnn_kernel, h, w)
    bcast = lambda *shape: pl.BlockSpec(shape, lambda i: (0,) * len(shape))

    out = pl.pallas_call(
        kernel,
        out_shape=jax.ShapeDtypeStruct((nb, _NB, _C), jnp.float32),
        grid_spec=pltpu.PrefetchScalarGridSpec(
            num_scalar_prefetch=0,
            grid=(nb,),
            in_specs=[
                pl.BlockSpec((1, h + 2, w + 2, _NB, _CIN_PAD),
                             lambda i: (i, 0, 0, 0, 0)),
                bcast(_K1, _C),          # layer-1 weights (72, 128) bf16
                bcast(_K2, _C),          # layer-2 weights (144, 128)
                bcast(_K3, _C),          # layer-3 weights (288, 128)
                bcast(3, 1, _C),         # folded BN scale
                bcast(3, 1, _C),         # folded BN bias
                bcast(_C, _C),           # fc weight, padded 64->128 / 5->128
                bcast(1, _C),            # fc bias
            ],
            out_specs=pl.BlockSpec((1, _NB, _C), lambda i: (i, 0, 0)),
            scratch_shapes=[
                pltpu.VMEM((h1 * w1 * _NB, _K1), jnp.bfloat16),       # im2col L1
                pltpu.VMEM((h2 * w2 * _NB, _K2), jnp.bfloat16),       # im2col L2
                pltpu.VMEM((h3 * w3 * _NB, _K3), jnp.bfloat16),       # im2col L3
                pltpu.VMEM((h1 + 2, w1 + 2, _NB, _C1), jnp.float32),  # act1 (padded)
                pltpu.VMEM((h2 + 2, w2 + 2, _NB, _C2), jnp.float32),  # act2 (padded)
            ],
        ),
        compiler_params=pltpu.CompilerParams(
            dimension_semantics=("parallel",),   # batch blocks shard across TCs (v7x)
            vmem_limit_bytes=32 * 1024 * 1024,
        ),
    )(xp, wk1, wk2, wk3, s_all, b_all, wfc, bfc)

    return out.reshape(nb * _NB, _C)[:n, :num_classes]


# ------------------------------ Parameters ------------------------------------

def init_params(key, num_classes=5):
    """Deterministic synthetic parameters matching SimpleCNN's shapes."""
    chans = [(3, 16), (16, 32), (32, 64)]
    keys = jax.random.split(key, 5 * len(chans) + 2)
    params = {}
    k = 0
    for li, (cin, cout) in enumerate(chans, start=1):
        params[f"conv{li}_w"] = 0.1 * jax.random.normal(keys[k], (3, 3, cin, cout),
                                                        jnp.float32); k += 1   # HWIO
        gamma = 1.0 + 0.1 * jax.random.normal(keys[k], (cout,), jnp.float32); k += 1
        beta = 0.05 * jax.random.normal(keys[k], (cout,), jnp.float32); k += 1
        r_mean = 0.1 * jax.random.normal(keys[k], (cout,), jnp.float32); k += 1
        r_var = 0.5 + jax.random.uniform(keys[k], (cout,), jnp.float32); k += 1
        params[f"bn{li}"] = (gamma, beta, r_mean, r_var)
    params["fc_w"] = 0.1 * jax.random.normal(keys[k], (64, num_classes), jnp.float32); k += 1
    params["fc_b"] = 0.05 * jax.random.normal(keys[k], (num_classes,), jnp.float32); k += 1
    return params


# ------------------------------ Reference (pure JAX, no Pallas) ---------------

def _reference_forward(params, x_nchw):
    x = jnp.transpose(x_nchw, (0, 2, 3, 1))
    for li in range(1, 4):
        y = jax.lax.conv_general_dilated(
            x, params[f"conv{li}_w"], window_strides=(2, 2),
            padding=[(1, 1), (1, 1)],
            dimension_numbers=("NHWC", "HWIO", "NHWC"),
            precision=jax.lax.Precision.HIGHEST)
        scale, bias = _fold_bn(*params[f"bn{li}"])
        x = jnp.maximum(y * scale + bias, 0.0)
    pooled = jnp.mean(x, axis=(1, 2))   # AdaptiveAvgPool2d(1) + flatten
    return pooled @ params["fc_w"] + params["fc_b"]


# ------------------------------ Main -------------------------------------------

if __name__ == "__main__":
    key = jax.random.PRNGKey(0)
    k_params, k_x = jax.random.split(key)
    params = init_params(k_params, num_classes=5)

    # Small input consistent with the module: batch=2, 3 channels, 16x16 spatial.
    x = jax.random.normal(k_x, (2, 3, 16, 16), jnp.float32)

    out = jax.block_until_ready(jax.jit(simple_cnn_forward)(params, x))
    assert out.shape == (2, 5), out.shape

    ref = jax.block_until_ready(_reference_forward(params, x))
    max_err = float(jnp.max(jnp.abs(out - ref)))
    # bf16 matmul operands (f32 accumulation) vs an f32 HIGHEST-precision reference.
    assert max_err < 2e-2, f"mismatch vs reference: {max_err}"

    print("KERNEL_OK")
</pallas_src>

<mosaic_0001>
module attributes {stable_mosaic.version = 11 : i64} {
  func.func @_fused_cnn_kernel(%arg0: i32, %arg1: memref<1x18x18x8x8xbf16, #tpu.memory_space<vmem>>, %arg2: memref<72x128xbf16, #tpu.memory_space<vmem>>, %arg3: memref<144x128xbf16, #tpu.memory_space<vmem>>, %arg4: memref<288x128xbf16, #tpu.memory_space<vmem>>, %arg5: memref<3x1x128xf32, #tpu.memory_space<vmem>>, %arg6: memref<3x1x128xf32, #tpu.memory_space<vmem>>, %arg7: memref<128x128xbf16, #tpu.memory_space<vmem>>, %arg8: memref<1x128xf32, #tpu.memory_space<vmem>>, %arg9: memref<1x8x128xf32, #tpu.memory_space<vmem>>, %arg10: memref<512x72xbf16, #tpu.memory_space<vmem>>, %arg11: memref<128x144xbf16, #tpu.memory_space<vmem>>, %arg12: memref<32x288xbf16, #tpu.memory_space<vmem>>, %arg13: memref<10x10x8x16xf32, #tpu.memory_space<vmem>>, %arg14: memref<6x6x8x32xf32, #tpu.memory_space<vmem>>) attributes {dimension_semantics = [#tpu.dimension_semantics<parallel>], iteration_bounds = array<i64: 1>, scalar_prefetch = 0 : i64, scratch_operands = 5 : i64, tpu.core_type = #tpu.core_type<tc>, window_params = [{transform_indices = @transform_0, window_bounds = array<i64: 1, 18, 18, 8, 8>}, {pipeline_mode = #tpu.pipeline_mode<synchronous>, transform_indices = @transform_1, window_bounds = array<i64: 72, 128>}, {pipeline_mode = #tpu.pipeline_mode<synchronous>, transform_indices = @transform_2, window_bounds = array<i64: 144, 128>}, {pipeline_mode = #tpu.pipeline_mode<synchronous>, transform_indices = @transform_3, window_bounds = array<i64: 288, 128>}, {pipeline_mode = #tpu.pipeline_mode<synchronous>, transform_indices = @transform_4, window_bounds = array<i64: 3, 1, 128>}, {pipeline_mode = #tpu.pipeline_mode<synchronous>, transform_indices = @transform_5, window_bounds = array<i64: 3, 1, 128>}, {pipeline_mode = #tpu.pipeline_mode<synchronous>, transform_indices = @transform_6, window_bounds = array<i64: 128, 128>}, {pipeline_mode = #tpu.pipeline_mode<synchronous>, transform_indices = @transform_7, window_bounds = array<i64: 1, 128>}, {transform_indices = @transform_8, window_bounds = array<i64: 1, 8, 128>}]} {
    %cst = arith.constant 0.000000e+00 : f32
    %0 = vector.broadcast %cst : f32 to vector<10x8x16xf32>
    %cst_0 = arith.constant 0.000000e+00 : f32
    %1 = vector.broadcast %cst_0 : f32 to vector<10x8x16xf32>
    %c0 = arith.constant 0 : index
    %c0_1 = arith.constant 0 : index
    %c0_2 = arith.constant 0 : index
    %c0_3 = arith.constant 0 : index
    %2 = vector.load %arg13[%c0, %c0_1, %c0_2, %c0_3] : memref<10x10x8x16xf32, #tpu.memory_space<vmem>>, vector<1x10x8x16xf32>
    %3 = vector.shape_cast %2 : vector<1x10x8x16xf32> to vector<10x8x16xf32>
    %4 = vector.shape_cast %0 : vector<10x8x16xf32> to vector<1x10x8x16xf32>
    tpu.vector_store %arg13[%c0, %c0_1, %c0_2, %c0_3], %4 {strides = array<i32>} : memref<10x10x8x16xf32, #tpu.memory_space<vmem>>, vector<1x10x8x16xf32>,
    %c9 = arith.constant 9 : index
    %c0_4 = arith.constant 0 : index
    %c0_5 = arith.constant 0 : index
    %c0_6 = arith.constant 0 : index
    %5 = vector.load %arg13[%c9, %c0_4, %c0_5, %c0_6] : memref<10x10x8x16xf32, #tpu.memory_space<vmem>>, vector<1x10x8x16xf32>
    %6 = vector.shape_cast %5 : vector<1x10x8x16xf32> to vector<10x8x16xf32>
    %7 = vector.shape_cast %0 : vector<10x8x16xf32> to vector<1x10x8x16xf32>
    tpu.vector_store %arg13[%c9, %c0_4, %c0_5, %c0_6], %7 {strides = array<i32>} : memref<10x10x8x16xf32, #tpu.memory_space<vmem>>, vector<1x10x8x16xf32>,
    %c0_7 = arith.constant 0 : index
    %c0_8 = arith.constant 0 : index
    %c0_9 = arith.constant 0 : index
    %c0_10 = arith.constant 0 : index
    %8 = vector.load %arg13[%c0_7, %c0_8, %c0_9, %c0_10] : memref<10x10x8x16xf32, #tpu.memory_space<vmem>>, vector<10x1x8x16xf32>
    %9 = vector.shape_cast %8 : vector<10x1x8x16xf32> to vector<10x8x16xf32>
    %10 = vector.shape_cast %1 : vector<10x8x16xf32> to vector<10x1x8x16xf32>
    tpu.vector_store %arg13[%c0_7, %c0_8, %c0_9, %c0_10], %10 {strides = array<i32>} : memref<10x10x8x16xf32, #tpu.memory_space<vmem>>, vector<10x1x8x16xf32>,
    %c0_11 = arith.constant 0 : index
    %c9_12 = arith.constant 9 : index
    %c0_13 = arith.constant 0 : index
    %c0_14 = arith.constant 0 : index
    %11 = vector.load %arg13[%c0_11, %c9_12, %c0_13, %c0_14] : memref<10x10x8x16xf32, #tpu.memory_space<vmem>>, vector<10x1x8x16xf32>
    %12 = vector.shape_cast %11 : vector<10x1x8x16xf32> to vector<10x8x16xf32>
    %13 = vector.shape_cast %1 : vector<10x8x16xf32> to vector<10x1x8x16xf32>
    tpu.vector_store %arg13[%c0_11, %c9_12, %c0_13, %c0_14], %13 {strides = array<i32>} : memref<10x10x8x16xf32, #tpu.memory_space<vmem>>, vector<10x1x8x16xf32>,
    %cst_15 = arith.constant 0.000000e+00 : f32
    %14 = vector.broadcast %cst_15 : f32 to vector<6x8x32xf32>
    %cst_16 = arith.constant 0.000000e+00 : f32
    %15 = vector.broadcast %cst_16 : f32 to vector<6x8x32xf32>
    %c0_17 = arith.constant 0 : index
    %c0_18 = arith.constant 0 : index
    %c0_19 = arith.constant 0 : index
    %c0_20 = arith.constant 0 : index
    %16 = vector.load %arg14[%c0_17, %c0_18, %c0_19, %c0_20] : memref<6x6x8x32xf32, #tpu.memory_space<vmem>>, vector<1x6x8x32xf32>
    %17 = vector.shape_cast %16 : vector<1x6x8x32xf32> to vector<6x8x32xf32>
    %18 = vector.shape_cast %14 : vector<6x8x32xf32> to vector<1x6x8x32xf32>
    tpu.vector_store %arg14[%c0_17, %c0_18, %c0_19, %c0_20], %18 {strides = array<i32>} : memref<6x6x8x32xf32, #tpu.memory_space<vmem>>, vector<1x6x8x32xf32>,
    %c5 = arith.constant 5 : index
    %c0_21 = arith.constant 0 : index
    %c0_22 = arith.constant 0 : index
    %c0_23 = arith.constant 0 : index
    %19 = vector.load %arg14[%c5, %c0_21, %c0_22, %c0_23] : memref<6x6x8x32xf32, #tpu.memory_space<vmem>>, vector<1x6x8x32xf32>
    %20 = vector.shape_cast %19 : vector<1x6x8x32xf32> to vector<6x8x32xf32>
    %21 = vector.shape_cast %14 : vector<6x8x32xf32> to vector<1x6x8x32xf32>
    tpu.vector_store %arg14[%c5, %c0_21, %c0_22, %c0_23], %21 {strides = array<i32>} : memref<6x6x8x32xf32, #tpu.memory_space<vmem>>, vector<1x6x8x32xf32>,
    %c0_24 = arith.constant 0 : index
    %c0_25 = arith.constant 0 : index
    %c0_26 = arith.constant 0 : index
    %c0_27 = arith.constant 0 : index
    %22 = vector.load %arg14[%c0_24, %c0_25, %c0_26, %c0_27] : memref<6x6x8x32xf32, #tpu.memory_space<vmem>>, vector<6x1x8x32xf32>
    %23 = vector.shape_cast %22 : vector<6x1x8x32xf32> to vector<6x8x32xf32>
    %24 = vector.shape_cast %15 : vector<6x8x32xf32> to vector<6x1x8x32xf32>
    tpu.vector_store %arg14[%c0_24, %c0_25, %c0_26, %c0_27], %24 {strides = array<i32>} : memref<6x6x8x32xf32, #tpu.memory_space<vmem>>, vector<6x1x8x32xf32>,
    %c0_28 = arith.constant 0 : index
    %c5_29 = arith.constant 5 : index
    %c0_30 = arith.constant 0 : index
    %c0_31 = arith.constant 0 : index
    %25 = vector.load %arg14[%c0_28, %c5_29, %c0_30, %c0_31] : memref<6x6x8x32xf32, #tpu.memory_space<vmem>>, vector<6x1x8x32xf32>
    %26 = vector.shape_cast %25 : vector<6x1x8x32xf32> to vector<6x8x32xf32>
    %27 = vector.shape_cast %15 : vector<6x8x32xf32> to vector<6x1x8x32xf32>
    tpu.vector_store %arg14[%c0_28, %c5_29, %c0_30, %c0_31], %27 {strides = array<i32>} : memref<6x6x8x32xf32, #tpu.memory_space<vmem>>, vector<6x1x8x32xf32>,
    %c0_32 = arith.constant 0 : index
    %c0_33 = arith.constant 0 : index
    %c0_34 = arith.constant 0 : index
    %c0_35 = arith.constant 0 : index
    %c0_36 = arith.constant 0 : index
    %28 = vector.load %arg1[%c0_32, %c0_33, %c0_34, %c0_35, %c0_36] : memref<1x18x18x8x8xbf16, #tpu.memory_space<vmem>>, vector<1x18x18x8x8xbf16>
    %29 = vector.shape_cast %28 : vector<1x18x18x8x8xbf16> to vector<18x18x8x8xbf16>
    %c0_37 = arith.constant 0 : index
    %c0_38 = arith.constant 0 : index
    %c0_39 = arith.constant 0 : index
    %30 = vector.load %arg5[%c0_37, %c0_38, %c0_39] : memref<3x1x128xf32, #tpu.memory_space<vmem>>, vector<1x1x128xf32>
    %31 = vector.shape_cast %30 : vector<1x1x128xf32> to vector<1x128xf32>
    %c0_40 = arith.constant 0 : index
    %c0_41 = arith.constant 0 : index
    %c0_42 = arith.constant 0 : index
    %32 = vector.load %arg6[%c0_40, %c0_41, %c0_42] : memref<3x1x128xf32, #tpu.memory_space<vmem>>, vector<1x1x128xf32>
    %33 = vector.shape_cast %32 : vector<1x1x128xf32> to vector<1x128xf32>
    %34 = vector.shape_cast %29 : vector<18x18x8x8xbf16> to vector<9x2x9x2x8x8xbf16>
    %35 = vector.extract_strided_slice %34 {offsets = [0, 0, 0, 0, 0, 0], sizes = [8, 1, 8, 1, 8, 8], strides = [1, 1, 1, 1, 1, 1]} : vector<9x2x9x2x8x8xbf16> to vector<8x1x8x1x8x8xbf16>
    %36 = vector.shape_cast %35 : vector<8x1x8x1x8x8xbf16> to vector<8x8x8x8xbf16>
    %37 = vector.shape_cast %36 : vector<8x8x8x8xbf16> to vector<512x8xbf16>
    %c0_43 = arith.constant 0 : index
    %c0_44 = arith.constant 0 : index
    %38 = vector.load %arg10[%c0_43, %c0_44] : memref<512x72xbf16, #tpu.memory_space<vmem>>, vector<512x8xbf16>
    tpu.vector_store %arg10[%c0_43, %c0_44], %37 {strides = array<i32>} : memref<512x72xbf16, #tpu.memory_space<vmem>>, vector<512x8xbf16>,
    %39 = vector.extract_strided_slice %34 {offsets = [0, 0, 0, 1, 0, 0], sizes = [8, 1, 8, 1, 8, 8], strides = [1, 1, 1, 1, 1, 1]} : vector<9x2x9x2x8x8xbf16> to vector<8x1x8x1x8x8xbf16>
    %40 = vector.shape_cast %39 : vector<8x1x8x1x8x8xbf16> to vector<8x8x8x8xbf16>
    %41 = vector.shape_cast %40 : vector<8x8x8x8xbf16> to vector<512x8xbf16>
    %c0_45 = arith.constant 0 : index
    %c8 = arith.constant 8 : index
    %42 = vector.load %arg10[%c0_45, %c8] : memref<512x72xbf16, #tpu.memory_space<vmem>>, vector<512x8xbf16>
    tpu.vector_store %arg10[%c0_45, %c8], %41 {strides = array<i32>} : memref<512x72xbf16, #tpu.memory_space<vmem>>, vector<512x8xbf16>,
    %43 = vector.extract_strided_slice %34 {offsets = [0, 0, 1, 0, 0, 0], sizes = [8, 1, 8, 1, 8, 8], strides = [1, 1, 1, 1, 1, 1]} : vector<9x2x9x2x8x8xbf16> to vector<8x1x8x1x8x8xbf16>
    %44 = vector.shape_cast %43 : vector<8x1x8x1x8x8xbf16> to vector<8x8x8x8xbf16>
    %45 = vector.shape_cast %44 : vector<8x8x8x8xbf16> to vector<512x8xbf16>
    %c0_46 = arith.constant 0 : index
    %c16 = arith.constant 16 : index
    %46 = vector.load %arg10[%c0_46, %c16] : memref<512x72xbf16, #tpu.memory_space<vmem>>, vector<512x8xbf16>
    tpu.vector_store %arg10[%c0_46, %c16], %45 {strides = array<i32>} : memref<512x72xbf16, #tpu.memory_space<vmem>>, vector<512x8xbf16>,
    %47 = vector.extract_strided_slice %34 {offsets = [0, 1, 0, 0, 0, 0], sizes = [8, 1, 8, 1, 8, 8], strides = [1, 1, 1, 1, 1, 1]} : vector<9x2x9x2x8x8xbf16> to vector<8x1x8x1x8x8xbf16>
    %48 = vector.shape_cast %47 : vector<8x1x8x1x8x8xbf16> to vector<8x8x8x8xbf16>
    %49 = vector.shape_cast %48 : vector<8x8x8x8xbf16> to vector<512x8xbf16>
    %c0_47 = arith.constant 0 : index
    %c24 = arith.constant 24 : index
    %50 = vector.load %arg10[%c0_47, %c24] : memref<512x72xbf16, #tpu.memory_space<vmem>>, vector<512x8xbf16>
    tpu.vector_store %arg10[%c0_47, %c24], %49 {strides = array<i32>} : memref<512x72xbf16, #tpu.memory_space<vmem>>, vector<512x8xbf16>,
    %51 = vector.extract_strided_slice %34 {offsets = [0, 1, 0, 1, 0, 0], sizes = [8, 1, 8, 1, 8, 8], strides = [1, 1, 1, 1, 1, 1]} : vector<9x2x9x2x8x8xbf16> to vector<8x1x8x1x8x8xbf16>
    %52 = vector.shape_cast %51 : vector<8x1x8x1x8x8xbf16> to vector<8x8x8x8xbf16>
    %53 = vector.shape_cast %52 : vector<8x8x8x8xbf16> to vector<512x8xbf16>
    %c0_48 = arith.constant 0 : index
    %c32 = arith.constant 32 : index
    %54 = vector.load %arg10[%c0_48, %c32] : memref<512x72xbf16, #tpu.memory_space<vmem>>, vector<512x8xbf16>
    tpu.vector_store %arg10[%c0_48, %c32], %53 {strides = array<i32>} : memref<512x72xbf16, #tpu.memory_space<vmem>>, vector<512x8xbf16>,
    %55 = vector.extract_strided_slice %34 {offsets = [0, 1, 1, 0, 0, 0], sizes = [8, 1, 8, 1, 8, 8], strides = [1, 1, 1, 1, 1, 1]} : vector<9x2x9x2x8x8xbf16> to vector<8x1x8x1x8x8xbf16>
    %56 = vector.shape_cast %55 : vector<8x1x8x1x8x8xbf16> to vector<8x8x8x8xbf16>
    %57 = vector.shape_cast %56 : vector<8x8x8x8xbf16> to vector<512x8xbf16>
    %c0_49 = arith.constant 0 : index
    %c40 = arith.constant 40 : index
    %58 = vector.load %arg10[%c0_49, %c40] : memref<512x72xbf16, #tpu.memory_space<vmem>>, vector<512x8xbf16>
    tpu.vector_store %arg10[%c0_49, %c40], %57 {strides = array<i32>} : memref<512x72xbf16, #tpu.memory_space<vmem>>, vector<512x8xbf16>,
    %59 = vector.extract_strided_slice %34 {offsets = [1, 0, 0, 0, 0, 0], sizes = [8, 1, 8, 1, 8, 8], strides = [1, 1, 1, 1, 1, 1]} : vector<9x2x9x2x8x8xbf16> to vector<8x1x8x1x8x8xbf16>
    %60 = vector.shape_cast %59 : vector<8x1x8x1x8x8xbf16> to vector<8x8x8x8xbf16>
    %61 = vector.shape_cast %60 : vector<8x8x8x8xbf16> to vector<512x8xbf16>
    %c0_50 = arith.constant 0 : index
    %c48 = arith.constant 48 : index
    %62 = vector.load %arg10[%c0_50, %c48] : memref<512x72xbf16, #tpu.memory_space<vmem>>, vector<512x8xbf16>
    tpu.vector_store %arg10[%c0_50, %c48], %61 {strides = array<i32>} : memref<512x72xbf16, #tpu.memory_space<vmem>>, vector<512x8xbf16>,
    %63 = vector.extract_strided_slice %34 {offsets = [1, 0, 0, 1, 0, 0], sizes = [8, 1, 8, 1, 8, 8], strides = [1, 1, 1, 1, 1, 1]} : vector<9x2x9x2x8x8xbf16> to vector<8x1x8x1x8x8xbf16>
    %64 = vector.shape_cast %63 : vector<8x1x8x1x8x8xbf16> to vector<8x8x8x8xbf16>
    %65 = vector.shape_cast %64 : vector<8x8x8x8xbf16> to vector<512x8xbf16>
    %c0_51 = arith.constant 0 : index
    %c56 = arith.constant 56 : index
    %66 = vector.load %arg10[%c0_51, %c56] : memref<512x72xbf16, #tpu.memory_space<vmem>>, vector<512x8xbf16>
    tpu.vector_store %arg10[%c0_51, %c56], %65 {strides = array<i32>} : memref<512x72xbf16, #tpu.memory_space<vmem>>, vector<512x8xbf16>,
    %67 = vector.extract_strided_slice %34 {offsets = [1, 0, 1, 0, 0, 0], sizes = [8, 1, 8, 1, 8, 8], strides = [1, 1, 1, 1, 1, 1]} : vector<9x2x9x2x8x8xbf16> to vector<8x1x8x1x8x8xbf16>
    %68 = vector.shape_cast %67 : vector<8x1x8x1x8x8xbf16> to vector<8x8x8x8xbf16>
    %69 = vector.shape_cast %68 : vector<8x8x8x8xbf16> to vector<512x8xbf16>
    %c0_52 = arith.constant 0 : index
    %c64 = arith.constant 64 : index
    %70 = vector.load %arg10[%c0_52, %c64] : memref<512x72xbf16, #tpu.memory_space<vmem>>, vector<512x8xbf16>
    tpu.vector_store %arg10[%c0_52, %c64], %69 {strides = array<i32>} : memref<512x72xbf16, #tpu.memory_space<vmem>>, vector<512x8xbf16>,
    %c0_53 = arith.constant 0 : index
    %c0_54 = arith.constant 0 : index
    %71 = vector.load %arg10[%c0_53, %c0_54] : memref<512x72xbf16, #tpu.memory_space<vmem>>, vector<512x72xbf16>
    %c0_55 = arith.constant 0 : index
    %c0_56 = arith.constant 0 : index
    %72 = vector.load %arg2[%c0_55, %c0_56] : memref<72x128xbf16, #tpu.memory_space<vmem>>, vector<72x128xbf16>
    %cst_57 = arith.constant dense<0.000000e+00> : vector<512x128xf32>
    %73 = tpu.matmul %71, %72, %cst_57 {dimension_numbers = #tpu.dot_dimension_numbers<[1], [0], [0], [1], [0, 0, 1, 1], [], []>} : vector<512x72xbf16>, vector<72x128xbf16>, vector<512x128xf32> -> vector<512x128xf32>
    %74 = vector.broadcast %31 : vector<1x128xf32> to vector<512x128xf32>
    %75 = arith.mulf %73, %74 : vector<512x128xf32>
    %76 = vector.broadcast %33 : vector<1x128xf32> to vector<512x128xf32>
    %77 = arith.addf %75, %76 : vector<512x128xf32>
    %cst_58 = arith.constant 0.000000e+00 : f32
    %78 = vector.broadcast %cst_58 : f32 to vector<512x128xf32>
    %79 = arith.maximumf %77, %78 : vector<512x128xf32>
    %80 = vector.extract_strided_slice %79 {offsets = [0, 0], sizes = [512, 16], strides = [1, 1]} : vector<512x128xf32> to vector<512x16xf32>
    %81 = vector.shape_cast %80 : vector<512x16xf32> to vector<8x8x8x16xf32>
    %c1 = arith.constant 1 : index
    %c1_59 = arith.constant 1 : index
    %c0_60 = arith.constant 0 : index
    %c0_61 = arith.constant 0 : index
    %82 = vector.load %arg13[%c1, %c1_59, %c0_60, %c0_61] : memref<10x10x8x16xf32, #tpu.memory_space<vmem>>, vector<8x8x8x16xf32>
    tpu.vector_store %arg13[%c1, %c1_59, %c0_60, %c0_61], %81 {strides = array<i32>} : memref<10x10x8x16xf32, #tpu.memory_space<vmem>>, vector<8x8x8x16xf32>,
    %c0_62 = arith.constant 0 : index
    %c0_63 = arith.constant 0 : index
    %c0_64 = arith.constant 0 : index
    %c0_65 = arith.constant 0 : index
    %83 = vector.load %arg13[%c0_62, %c0_63, %c0_64, %c0_65] : memref<10x10x8x16xf32, #tpu.memory_space<vmem>>, vector<10x10x8x16xf32>
    %c1_66 = arith.constant 1 : index
    %c0_67 = arith.constant 0 : index
    %c0_68 = arith.constant 0 : index
    %84 = vector.load %arg5[%c1_66, %c0_67, %c0_68] : memref<3x1x128xf32, #tpu.memory_space<vmem>>, vector<1x1x128xf32>
    %85 = vector.shape_cast %84 : vector<1x1x128xf32> to vector<1x128xf32>
    %c1_69 = arith.constant 1 : index
    %c0_70 = arith.constant 0 : index
    %c0_71 = arith.constant 0 : index
    %86 = vector.load %arg6[%c1_69, %c0_70, %c0_71] : memref<3x1x128xf32, #tpu.memory_space<vmem>>, vector<1x1x128xf32>
    %87 = vector.shape_cast %86 : vector<1x1x128xf32> to vector<1x128xf32>
    %88 = vector.shape_cast %83 : vector<10x10x8x16xf32> to vector<5x2x5x2x8x16xf32>
    %89 = vector.extract_strided_slice %88 {offsets = [0, 0, 0, 0, 0, 0], sizes = [4, 1, 4, 1, 8, 16], strides = [1, 1, 1, 1, 1, 1]} : vector<5x2x5x2x8x16xf32> to vector<4x1x4x1x8x16xf32>
    %90 = vector.shape_cast %89 : vector<4x1x4x1x8x16xf32> to vector<4x4x8x16xf32>
    %91 = vector.shape_cast %90 : vector<4x4x8x16xf32> to vector<128x16xf32>
    %92 = arith.truncf %91 : vector<128x16xf32> to vector<128x16xbf16>
    %c0_72 = arith.constant 0 : index
    %c0_73 = arith.constant 0 : index
    %93 = vector.load %arg11[%c0_72, %c0_73] : memref<128x144xbf16, #tpu.memory_space<vmem>>, vector<128x16xbf16>
    tpu.vector_store %arg11[%c0_72, %c0_73], %92 {strides = array<i32>} : memref<128x144xbf16, #tpu.memory_space<vmem>>, vector<128x16xbf16>,
    %94 = vector.extract_strided_slice %88 {offsets = [0, 0, 0, 1, 0, 0], sizes = [4, 1, 4, 1, 8, 16], strides = [1, 1, 1, 1, 1, 1]} : vector<5x2x5x2x8x16xf32> to vector<4x1x4x1x8x16xf32>
    %95 = vector.shape_cast %94 : vector<4x1x4x1x8x16xf32> to vector<4x4x8x16xf32>
    %96 = vector.shape_cast %95 : vector<4x4x8x16xf32> to vector<128x16xf32>
    %97 = arith.truncf %96 : vector<128x16xf32> to vector<128x16xbf16>
    %c0_74 = arith.constant 0 : index
    %c16_75 = arith.constant 16 : index
    %98 = vector.load %arg11[%c0_74, %c16_75] : memref<128x144xbf16, #tpu.memory_space<vmem>>, vector<128x16xbf16>
    tpu.vector_store %arg11[%c0_74, %c16_75], %97 {strides = array<i32>} : memref<128x144xbf16, #tpu.memory_space<vmem>>, vector<128x16xbf16>,
    %99 = vector.extract_strided_slice %88 {offsets = [0, 0, 1, 0, 0, 0], sizes = [4, 1, 4, 1, 8, 16], strides = [1, 1, 1, 1, 1, 1]} : vector<5x2x5x2x8x16xf32> to vector<4x1x4x1x8x16xf32>
    %100 = vector.shape_cast %99 : vector<4x1x4x1x8x16xf32> to vector<4x4x8x16xf32>
    %101 = vector.shape_cast %100 : vector<4x4x8x16xf32> to vector<128x16xf32>
    %102 = arith.truncf %101 : vector<128x16xf32> to vector<128x16xbf16>
    %c0_76 = arith.constant 0 : index
    %c32_77 = arith.constant 32 : index
    %103 = vector.load %arg11[%c0_76, %c32_77] : memref<128x144xbf16, #tpu.memory_space<vmem>>, vector<128x16xbf16>
    tpu.vector_store %arg11[%c0_76, %c32_77], %102 {strides = array<i32>} : memref<128x144xbf16, #tpu.memory_space<vmem>>, vector<128x16xbf16>,
    %104 = vector.extract_strided_slice %88 {offsets = [0, 1, 0, 0, 0, 0], sizes = [4, 1, 4, 1, 8, 16], strides = [1, 1, 1, 1, 1, 1]} : vector<5x2x5x2x8x16xf32> to vector<4x1x4x1x8x16xf32>
    %105 = vector.shape_cast %104 : vector<4x1x4x1x8x16xf32> to vector<4x4x8x16xf32>
    %106 = vector.shape_cast %105 : vector<4x4x8x16xf32> to vector<128x16xf32>
    %107 = arith.truncf %106 : vector<128x16xf32> to vector<128x16xbf16>
    %c0_78 = arith.constant 0 : index
    %c48_79 = arith.constant 48 : index
    %108 = vector.load %arg11[%c0_78, %c48_79] : memref<128x144xbf16, #tpu.memory_space<vmem>>, vector<128x16xbf16>
    tpu.vector_store %arg11[%c0_78, %c48_79], %107 {strides = array<i32>} : memref<128x144xbf16, #tpu.memory_space<vmem>>, vector<128x16xbf16>,
    %109 = vector.extract_strided_slice %88 {offsets = [0, 1, 0, 1, 0, 0], sizes = [4, 1, 4, 1, 8, 16], strides = [1, 1, 1, 1, 1, 1]} : vector<5x2x5x2x8x16xf32> to vector<4x1x4x1x8x16xf32>
    %110 = vector.shape_cast %109 : vector<4x1x4x1x8x16xf32> to vector<4x4x8x16xf32>
    %111 = vector.shape_cast %110 : vector<4x4x8x16xf32> to vector<128x16xf32>
    %112 = arith.truncf %111 : vector<128x16xf32> to vector<128x16xbf16>
    %c0_80 = arith.constant 0 : index
    %c64_81 = arith.constant 64 : index
    %113 = vector.load %arg11[%c0_80, %c64_81] : memref<128x144xbf16, #tpu.memory_space<vmem>>, vector<128x16xbf16>
    tpu.vector_store %arg11[%c0_80, %c64_81], %112 {strides = array<i32>} : memref<128x144xbf16, #tpu.memory_space<vmem>>, vector<128x16xbf16>,
    %114 = vector.extract_strided_slice %88 {offsets = [0, 1, 1, 0, 0, 0], sizes = [4, 1, 4, 1, 8, 16], strides = [1, 1, 1, 1, 1, 1]} : vector<5x2x5x2x8x16xf32> to vector<4x1x4x1x8x16xf32>
    %115 = vector.shape_cast %114 : vector<4x1x4x1x8x16xf32> to vector<4x4x8x16xf32>
    %116 = vector.shape_cast %115 : vector<4x4x8x16xf32> to vector<128x16xf32>
    %117 = arith.truncf %116 : vector<128x16xf32> to vector<128x16xbf16>
    %c0_82 = arith.constant 0 : index
    %c80 = arith.constant 80 : index
    %118 = vector.load %arg11[%c0_82, %c80] : memref<128x144xbf16, #tpu.memory_space<vmem>>, vector<128x16xbf16>
    tpu.vector_store %arg11[%c0_82, %c80], %117 {strides = array<i32>} : memref<128x144xbf16, #tpu.memory_space<vmem>>, vector<128x16xbf16>,
    %119 = vector.extract_strided_slice %88 {offsets = [1, 0, 0, 0, 0, 0], sizes = [4, 1, 4, 1, 8, 16], strides = [1, 1, 1, 1, 1, 1]} : vector<5x2x5x2x8x16xf32> to vector<4x1x4x1x8x16xf32>
    %120 = vector.shape_cast %119 : vector<4x1x4x1x8x16xf32> to vector<4x4x8x16xf32>
    %121 = vector.shape_cast %120 : vector<4x4x8x16xf32> to vector<128x16xf32>
    %122 = arith.truncf %121 : vector<128x16xf32> to vector<128x16xbf16>
    %c0_83 = arith.constant 0 : index
    %c96 = arith.constant 96 : index
    %123 = vector.load %arg11[%c0_83, %c96] : memref<128x144xbf16, #tpu.memory_space<vmem>>, vector<128x16xbf16>
    tpu.vector_store %arg11[%c0_83, %c96], %122 {strides = array<i32>} : memref<128x144xbf16, #tpu.memory_space<vmem>>, vector<128x16xbf16>,
    %124 = vector.extract_strided_slice %88 {offsets = [1, 0, 0, 1, 0, 0], sizes = [4, 1, 4, 1, 8, 16], strides = [1, 1, 1, 1, 1, 1]} : vector<5x2x5x2x8x16xf32> to vector<4x1x4x1x8x16xf32>
    %125 = vector.shape_cast %124 : vector<4x1x4x1x8x16xf32> to vector<4x4x8x16xf32>
    %126 = vector.shape_cast %125 : vector<4x4x8x16xf32> to vector<128x16xf32>
    %127 = arith.truncf %126 : vector<128x16xf32> to vector<128x16xbf16>
    %c0_84 = arith.constant 0 : index
    %c112 = arith.constant 112 : index
    %128 = vector.load %arg11[%c0_84, %c112] : memref<128x144xbf16, #tpu.memory_space<vmem>>, vector<128x16xbf16>
    tpu.vector_store %arg11[%c0_84, %c112], %127 {strides = array<i32>} : memref<128x144xbf16, #tpu.memory_space<vmem>>, vector<128x16xbf16>,
    %129 = vector.extract_strided_slice %88 {offsets = [1, 0, 1, 0, 0, 0], sizes = [4, 1, 4, 1, 8, 16], strides = [1, 1, 1, 1, 1, 1]} : vector<5x2x5x2x8x16xf32> to vector<4x1x4x1x8x16xf32>
    %130 = vector.shape_cast %129 : vector<4x1x4x1x8x16xf32> to vector<4x4x8x16xf32>
    %131 = vector.shape_cast %130 : vector<4x4x8x16xf32> to vector<128x16xf32>
    %132 = arith.truncf %131 : vector<128x16xf32> to vector<128x16xbf16>
    %c0_85 = arith.constant 0 : index
    %c128 = arith.constant 128 : index
    %133 = vector.load %arg11[%c0_85, %c128] : memref<128x144xbf16, #tpu.memory_space<vmem>>, vector<128x16xbf16>
    tpu.vector_store %arg11[%c0_85, %c128], %132 {strides = array<i32>} : memref<128x144xbf16, #tpu.memory_space<vmem>>, vector<128x16xbf16>,
    %c0_86 = arith.constant 0 : index
    %c0_87 = arith.constant 0 : index
    %134 = vector.load %arg11[%c0_86, %c0_87] : memref<128x144xbf16, #tpu.memory_space<vmem>>, vector<128x144xbf16>
    %c0_88 = arith.constant 0 : index
    %c0_89 = arith.constant 0 : index
    %135 = vector.load %arg3[%c0_88, %c0_89] : memref<144x128xbf16, #tpu.memory_space<vmem>>, vector<144x128xbf16>
    %cst_90 = arith.constant dense<0.000000e+00> : vector<128x128xf32>
    %136 = tpu.matmul %134, %135, %cst_90 {dimension_numbers = #tpu.dot_dimension_numbers<[1], [0], [0], [1], [0, 0, 1, 1], [], []>} : vector<128x144xbf16>, vector<144x128xbf16>, vector<128x128xf32> -> vector<128x128xf32>
    %137 = vector.broadcast %85 : vector<1x128xf32> to vector<128x128xf32>
    %138 = arith.mulf %136, %137 : vector<128x128xf32>
    %139 = vector.broadcast %87 : vector<1x128xf32> to vector<128x128xf32>
    %140 = arith.addf %138, %139 : vector<128x128xf32>
    %cst_91 = arith.constant 0.000000e+00 : f32
    %141 = vector.broadcast %cst_91 : f32 to vector<128x128xf32>
    %142 = arith.maximumf %140, %141 : vector<128x128xf32>
    %143 = vector.extract_strided_slice %142 {offsets = [0, 0], sizes = [128, 32], strides = [1, 1]} : vector<128x128xf32> to vector<128x32xf32>
    %144 = vector.shape_cast %143 : vector<128x32xf32> to vector<4x4x8x32xf32>
    %c1_92 = arith.constant 1 : index
    %c1_93 = arith.constant 1 : index
    %c0_94 = arith.constant 0 : index
    %c0_95 = arith.constant 0 : index
    %145 = vector.load %arg14[%c1_92, %c1_93, %c0_94, %c0_95] : memref<6x6x8x32xf32, #tpu.memory_space<vmem>>, vector<4x4x8x32xf32>
    tpu.vector_store %arg14[%c1_92, %c1_93, %c0_94, %c0_95], %144 {strides = array<i32>} : memref<6x6x8x32xf32, #tpu.memory_space<vmem>>, vector<4x4x8x32xf32>,
    %c0_96 = arith.constant 0 : index
    %c0_97 = arith.constant 0 : index
    %c0_98 = arith.constant 0 : index
    %c0_99 = arith.constant 0 : index
    %146 = vector.load %arg14[%c0_96, %c0_97, %c0_98, %c0_99] : memref<6x6x8x32xf32, #tpu.memory_space<vmem>>, vector<6x6x8x32xf32>
    %c2 = arith.constant 2 : index
    %c0_100 = arith.constant 0 : index
    %c0_101 = arith.constant 0 : index
    %147 = vector.load %arg5[%c2, %c0_100, %c0_101] : memref<3x1x128xf32, #tpu.memory_space<vmem>>, vector<1x1x128xf32>
    %148 = vector.shape_cast %147 : vector<1x1x128xf32> to vector<1x128xf32>
    %c2_102 = arith.constant 2 : index
    %c0_103 = arith.constant 0 : index
    %c0_104 = arith.constant 0 : index
    %149 = vector.load %arg6[%c2_102, %c0_103, %c0_104] : memref<3x1x128xf32, #tpu.memory_space<vmem>>, vector<1x1x128xf32>
    %150 = vector.shape_cast %149 : vector<1x1x128xf32> to vector<1x128xf32>
    %151 = vector.shape_cast %146 : vector<6x6x8x32xf32> to vector<3x2x3x2x8x32xf32>
    %152 = vector.extract_strided_slice %151 {offsets = [0, 0, 0, 0, 0, 0], sizes = [2, 1, 2, 1, 8, 32], strides = [1, 1, 1, 1, 1, 1]} : vector<3x2x3x2x8x32xf32> to vector<2x1x2x1x8x32xf32>
    %153 = vector.shape_cast %152 : vector<2x1x2x1x8x32xf32> to vector<2x2x8x32xf32>
    %154 = vector.shape_cast %153 : vector<2x2x8x32xf32> to vector<32x32xf32>
    %155 = arith.truncf %154 : vector<32x32xf32> to vector<32x32xbf16>
    %c0_105 = arith.constant 0 : index
    %c0_106 = arith.constant 0 : index
    %156 = vector.load %arg12[%c0_105, %c0_106] : memref<32x288xbf16, #tpu.memory_space<vmem>>, vector<32x32xbf16>
    tpu.vector_store %arg12[%c0_105, %c0_106], %155 {strides = array<i32>} : memref<32x288xbf16, #tpu.memory_space<vmem>>, vector<32x32xbf16>,
    %157 = vector.extract_strided_slice %151 {offsets = [0, 0, 0, 1, 0, 0], sizes = [2, 1, 2, 1, 8, 32], strides = [1, 1, 1, 1, 1, 1]} : vector<3x2x3x2x8x32xf32> to vector<2x1x2x1x8x32xf32>
    %158 = vector.shape_cast %157 : vector<2x1x2x1x8x32xf32> to vector<2x2x8x32xf32>
    %159 = vector.shape_cast %158 : vector<2x2x8x32xf32> to vector<32x32xf32>
    %160 = arith.truncf %159 : vector<32x32xf32> to vector<32x32xbf16>
    %c0_107 = arith.constant 0 : index
    %c32_108 = arith.constant 32 : index
    %161 = vector.load %arg12[%c0_107, %c32_108] : memref<32x288xbf16, #tpu.memory_space<vmem>>, vector<32x32xbf16>
    tpu.vector_store %arg12[%c0_107, %c32_108], %160 {strides = array<i32>} : memref<32x288xbf16, #tpu.memory_space<vmem>>, vector<32x32xbf16>,
    %162 = vector.extract_strided_slice %151 {offsets = [0, 0, 1, 0, 0, 0], sizes = [2, 1, 2, 1, 8, 32], strides = [1, 1, 1, 1, 1, 1]} : vector<3x2x3x2x8x32xf32> to vector<2x1x2x1x8x32xf32>
    %163 = vector.shape_cast %162 : vector<2x1x2x1x8x32xf32> to vector<2x2x8x32xf32>
    %164 = vector.shape_cast %163 : vector<2x2x8x32xf32> to vector<32x32xf32>
    %165 = arith.truncf %164 : vector<32x32xf32> to vector<32x32xbf16>
    %c0_109 = arith.constant 0 : index
    %c64_110 = arith.constant 64 : index
    %166 = vector.load %arg12[%c0_109, %c64_110] : memref<32x288xbf16, #tpu.memory_space<vmem>>, vector<32x32xbf16>
    tpu.vector_store %arg12[%c0_109, %c64_110], %165 {strides = array<i32>} : memref<32x288xbf16, #tpu.memory_space<vmem>>, vector<32x32xbf16>,
    %167 = vector.extract_strided_slice %151 {offsets = [0, 1, 0, 0, 0, 0], sizes = [2, 1, 2, 1, 8, 32], strides = [1, 1, 1, 1, 1, 1]} : vector<3x2x3x2x8x32xf32> to vector<2x1x2x1x8x32xf32>
    %168 = vector.shape_cast %167 : vector<2x1x2x1x8x32xf32> to vector<2x2x8x32xf32>
    %169 = vector.shape_cast %168 : vector<2x2x8x32xf32> to vector<32x32xf32>
    %170 = arith.truncf %169 : vector<32x32xf32> to vector<32x32xbf16>
    %c0_111 = arith.constant 0 : index
    %c96_112 = arith.constant 96 : index
    %171 = vector.load %arg12[%c0_111, %c96_112] : memref<32x288xbf16, #tpu.memory_space<vmem>>, vector<32x32xbf16>
    tpu.vector_store %arg12[%c0_111, %c96_112], %170 {strides = array<i32>} : memref<32x288xbf16, #tpu.memory_space<vmem>>, vector<32x32xbf16>,
    %172 = vector.extract_strided_slice %151 {offsets = [0, 1, 0, 1, 0, 0], sizes = [2, 1, 2, 1, 8, 32], strides = [1, 1, 1, 1, 1, 1]} : vector<3x2x3x2x8x32xf32> to vector<2x1x2x1x8x32xf32>
    %173 = vector.shape_cast %172 : vector<2x1x2x1x8x32xf32> to vector<2x2x8x32xf32>
    %174 = vector.shape_cast %173 : vector<2x2x8x32xf32> to vector<32x32xf32>
    %175 = arith.truncf %174 : vector<32x32xf32> to vector<32x32xbf16>
    %c0_113 = arith.constant 0 : index
    %c128_114 = arith.constant 128 : index
    %176 = vector.load %arg12[%c0_113, %c128_114] : memref<32x288xbf16, #tpu.memory_space<vmem>>, vector<32x32xbf16>
    tpu.vector_store %arg12[%c0_113, %c128_114], %175 {strides = array<i32>} : memref<32x288xbf16, #tpu.memory_space<vmem>>, vector<32x32xbf16>,
    %177 = vector.extract_strided_slice %151 {offsets = [0, 1, 1, 0, 0, 0], sizes = [2, 1, 2, 1, 8, 32], strides = [1, 1, 1, 1, 1, 1]} : vector<3x2x3x2x8x32xf32> to vector<2x1x2x1x8x32xf32>
    %178 = vector.shape_cast %177 : vector<2x1x2x1x8x32xf32> to vector<2x2x8x32xf32>
    %179 = vector.shape_cast %178 : vector<2x2x8x32xf32> to vector<32x32xf32>
    %180 = arith.truncf %179 : vector<32x32xf32> to vector<32x32xbf16>
    %c0_115 = arith.constant 0 : index
    %c160 = arith.constant 160 : index
    %181 = vector.load %arg12[%c0_115, %c160] : memref<32x288xbf16, #tpu.memory_space<vmem>>, vector<32x32xbf16>
    tpu.vector_store %arg12[%c0_115, %c160], %180 {strides = array<i32>} : memref<32x288xbf16, #tpu.memory_space<vmem>>, vector<32x32xbf16>,
    %182 = vector.extract_strided_slice %151 {offsets = [1, 0, 0, 0, 0, 0], sizes = [2, 1, 2, 1, 8, 32], strides = [1, 1, 1, 1, 1, 1]} : vector<3x2x3x2x8x32xf32> to vector<2x1x2x1x8x32xf32>
    %183 = vector.shape_cast %182 : vector<2x1x2x1x8x32xf32> to vector<2x2x8x32xf32>
    %184 = vector.shape_cast %183 : vector<2x2x8x32xf32> to vector<32x32xf32>
    %185 = arith.truncf %184 : vector<32x32xf32> to vector<32x32xbf16>
    %c0_116 = arith.constant 0 : index
    %c192 = arith.constant 192 : index
    %186 = vector.load %arg12[%c0_116, %c192] : memref<32x288xbf16, #tpu.memory_space<vmem>>, vector<32x32xbf16>
    tpu.vector_store %arg12[%c0_116, %c192], %185 {strides = array<i32>} : memref<32x288xbf16, #tpu.memory_space<vmem>>, vector<32x32xbf16>,
    %187 = vector.extract_strided_slice %151 {offsets = [1, 0, 0, 1, 0, 0], sizes = [2, 1, 2, 1, 8, 32], strides = [1, 1, 1, 1, 1, 1]} : vector<3x2x3x2x8x32xf32> to vector<2x1x2x1x8x32xf32>
    %188 = vector.shape_cast %187 : vector<2x1x2x1x8x32xf32> to vector<2x2x8x32xf32>
    %189 = vector.shape_cast %188 : vector<2x2x8x32xf32> to vector<32x32xf32>
    %190 = arith.truncf %189 : vector<32x32xf32> to vector<32x32xbf16>
    %c0_117 = arith.constant 0 : index
    %c224 = arith.constant 224 : index
    %191 = vector.load %arg12[%c0_117, %c224] : memref<32x288xbf16, #tpu.memory_space<vmem>>, vector<32x32xbf16>
    tpu.vector_store %arg12[%c0_117, %c224], %190 {strides = array<i32>} : memref<32x288xbf16, #tpu.memory_space<vmem>>, vector<32x32xbf16>,
    %192 = vector.extract_strided_slice %151 {offsets = [1, 0, 1, 0, 0, 0], sizes = [2, 1, 2, 1, 8, 32], strides = [1, 1, 1, 1, 1, 1]} : vector<3x2x3x2x8x32xf32> to vector<2x1x2x1x8x32xf32>
    %193 = vector.shape_cast %192 : vector<2x1x2x1x8x32xf32> to vector<2x2x8x32xf32>
    %194 = vector.shape_cast %193 : vector<2x2x8x32xf32> to vector<32x32xf32>
    %195 = arith.truncf %194 : vector<32x32xf32> to vector<32x32xbf16>
    %c0_118 = arith.constant 0 : index
    %c256 = arith.constant 256 : index
    %196 = vector.load %arg12[%c0_118, %c256] : memref<32x288xbf16, #tpu.memory_space<vmem>>, vector<32x32xbf16>
    tpu.vector_store %arg12[%c0_118, %c256], %195 {strides = array<i32>} : memref<32x288xbf16, #tpu.memory_space<vmem>>, vector<32x32xbf16>,
    %c0_119 = arith.constant 0 : index
    %c0_120 = arith.constant 0 : index
    %197 = vector.load %arg12[%c0_119, %c0_120] : memref<32x288xbf16, #tpu.memory_space<vmem>>, vector<32x288xbf16>
    %c0_121 = arith.constant 0 : index
    %c0_122 = arith.constant 0 : index
    %198 = vector.load %arg4[%c0_121, %c0_122] : memref<288x128xbf16, #tpu.memory_space<vmem>>, vector<288x128xbf16>
    %cst_123 = arith.constant dense<0.000000e+00> : vector<32x128xf32>
    %199 = tpu.matmul %197, %198, %cst_123 {dimension_numbers = #tpu.dot_dimension_numbers<[1], [0], [0], [1], [0, 0, 1, 1], [], []>} : vector<32x288xbf16>, vector<288x128xbf16>, vector<32x128xf32> -> vector<32x128xf32>
    %200 = vector.broadcast %148 : vector<1x128xf32> to vector<32x128xf32>
    %201 = arith.mulf %199, %200 : vector<32x128xf32>
    %202 = vector.broadcast %150 : vector<1x128xf32> to vector<32x128xf32>
    %203 = arith.addf %201, %202 : vector<32x128xf32>
    %cst_124 = arith.constant 0.000000e+00 : f32
    %204 = vector.broadcast %cst_124 : f32 to vector<32x128xf32>
    %205 = arith.maximumf %203, %204 : vector<32x128xf32>
    %206 = vector.shape_cast %205 : vector<32x128xf32> to vector<4x8x128xf32>
    %cst_125 = arith.constant dense<0.000000e+00> : vector<8x128xf32>
    %207 = vector.multi_reduction <add>, %206, %cst_125 [0] : vector<4x8x128xf32> to vector<8x128xf32>
    %cst_126 = arith.constant 4.000000e+00 : f32
    %208 = vector.broadcast %cst_126 : f32 to vector<8x128xf32>
    %209 = arith.divf %207, %208 : vector<8x128xf32>
    %210 = arith.truncf %209 : vector<8x128xf32> to vector<8x128xbf16>
    %c0_127 = arith.constant 0 : index
    %c0_128 = arith.constant 0 : index
    %211 = vector.load %arg7[%c0_127, %c0_128] : memref<128x128xbf16, #tpu.memory_space<vmem>>, vector<128x128xbf16>
    %cst_129 = arith.constant dense<0.000000e+00> : vector<8x128xf32>
    %212 = tpu.matmul %210, %211, %cst_129 {dimension_numbers = #tpu.dot_dimension_numbers<[1], [0], [0], [1], [0, 0, 1, 1], [], []>} : vector<8x128xbf16>, vector<128x128xbf16>, vector<8x128xf32> -> vector<8x128xf32>
    %c0_130 = arith.constant 0 : index
    %c0_131 = arith.constant 0 : index
    %213 = vector.load %arg8[%c0_130, %c0_131] : memref<1x128xf32, #tpu.memory_space<vmem>>, vector<1x128xf32>
    %214 = vector.broadcast %213 : vector<1x128xf32> to vector<8x128xf32>
    %215 = arith.addf %212, %214 : vector<8x128xf32>
    %c0_132 = arith.constant 0 : index
    %c0_133 = arith.constant 0 : index
    %c0_134 = arith.constant 0 : index
    %216 = vector.load %arg9[%c0_132, %c0_133, %c0_134] : memref<1x8x128xf32, #tpu.memory_space<vmem>>, vector<1x8x128xf32>
    %217 = vector.shape_cast %216 : vector<1x8x128xf32> to vector<8x128xf32>
    %218 = vector.shape_cast %215 : vector<8x128xf32> to vector<1x8x128xf32>
    tpu.vector_store %arg9[%c0_132, %c0_133, %c0_134], %218 {strides = array<i32>} : memref<1x8x128xf32, #tpu.memory_space<vmem>>, vector<1x8x128xf32>,
    return
  }
  func.func @transform_0(%arg0: i32) -> (i32, i32, i32, i32, i32) {
    %c0_i32 = arith.constant 0 : i32
    %c0_i32_0 = arith.constant 0 : i32
    %c0_i32_1 = arith.constant 0 : i32
    %c0_i32_2 = arith.constant 0 : i32
    %c0_i32_3 = arith.constant 0 : i32
    return %arg0, %c0_i32, %c0_i32_0, %c0_i32_1, %c0_i32_2 : i32, i32, i32, i32, i32
  }
  func.func @transform_1(%arg0: i32) -> (i32, i32) {
    %c0_i32 = arith.constant 0 : i32
    %c0_i32_0 = arith.constant 0 : i32
    %c0_i32_1 = arith.constant 0 : i32
    return %c0_i32, %c0_i32_0 : i32, i32
  }
  func.func @transform_2(%arg0: i32) -> (i32, i32) {
    %c0_i32 = arith.constant 0 : i32
    %c0_i32_0 = arith.constant 0 : i32
    %c0_i32_1 = arith.constant 0 : i32
    return %c0_i32, %c0_i32_0 : i32, i32
  }
  func.func @transform_3(%arg0: i32) -> (i32, i32) {
    %c0_i32 = arith.constant 0 : i32
    %c0_i32_0 = arith.constant 0 : i32
    %c0_i32_1 = arith.constant 0 : i32
    return %c0_i32, %c0_i32_0 : i32, i32
  }
  func.func @transform_4(%arg0: i32) -> (i32, i32, i32) {
    %c0_i32 = arith.constant 0 : i32
    %c0_i32_0 = arith.constant 0 : i32
    %c0_i32_1 = arith.constant 0 : i32
    %c0_i32_2 = arith.constant 0 : i32
    return %c0_i32, %c0_i32_0, %c0_i32_1 : i32, i32, i32
  }
  func.func @transform_5(%arg0: i32) -> (i32, i32, i32) {
    %c0_i32 = arith.constant 0 : i32
    %c0_i32_0 = arith.constant 0 : i32
    %c0_i32_1 = arith.constant 0 : i32
    %c0_i32_2 = arith.constant 0 : i32
    return %c0_i32, %c0_i32_0, %c0_i32_1 : i32, i32, i32
  }
  func.func @transform_6(%arg0: i32) -> (i32, i32) {
    %c0_i32 = arith.constant 0 : i32
    %c0_i32_0 = arith.constant 0 : i32
    %c0_i32_1 = arith.constant 0 : i32
    return %c0_i32, %c0_i32_0 : i32, i32
  }
  func.func @transform_7(%arg0: i32) -> (i32, i32) {
    %c0_i32 = arith.constant 0 : i32
    %c0_i32_0 = arith.constant 0 : i32
    %c0_i32_1 = arith.constant 0 : i32
    return %c0_i32, %c0_i32_0 : i32, i32
  }
  func.func @transform_8(%arg0: i32) -> (i32, i32, i32) {
    %c0_i32 = arith.constant 0 : i32
    %c0_i32_0 = arith.constant 0 : i32
    %c0_i32_1 = arith.constant 0 : i32
    return %arg0, %c0_i32, %c0_i32_0 : i32, i32, i32
  }
}

</mosaic_0001>

<bundles_post_ra>
// kernel: simple_cnn_forward.1
= control target key start
LH: loop header
LB: loop body
LE: loop exit
PB: predicated region body
PF: predicated region fallthrough
CT: control target
= control target key end

     0   :  { %vm583_vm0 = vcmask 64512   ;;  %s4906_s17 = smov 16   ;;  %s4907_s20 = smov 8   ;;  %vm2435_vm1 = vcmask 1043456   ;;  %vm872_vm2 = vcmask 130112   ;;  %vm1049_vm3 = vcmask 195712   ;;  %s7346_s0 = inlined_call_operand.vmem [shape: bf16[1,18,18,8,8], index: 0, kind: input, shape index: {}]   ;;  %s7347_s1 = inlined_call_operand.vmem [shape: bf16[72,128], index: 1, kind: input, shape index: {}]   ;;  %s7348_s4 = inlined_call_operand.vmem [shape: f32[3,1,128], index: 4, kind: input, shape index: {}]   ;;  %s7349_s5 = inlined_call_operand.vmem [shape: f32[3,1,128], index: 5, kind: input, shape index: {}]   ;;  %s7350_s2 = inlined_call_operand.vmem [shape: bf16[144,128], index: 2, kind: input, shape index: {}]   ;;  %s7351_s3 = inlined_call_operand.vmem [shape: bf16[288,128], index: 3, kind: input, shape index: {}]   ;;  %s7352_s6 = inlined_call_operand.vmem [shape: bf16[128,128], index: 6, kind: input, shape index: {}]   ;;  %s7353_s7 = inlined_call_operand.vmem [shape: f32[1,128], index: 7, kind: input, shape index: {}]   ;;  %s7354_s8 = inlined_call_operand.vmem [shape: f32[1,8,128], index: 8, kind: output, shape index: {}]  }
   0x1   :  { %v102_v0 = vld [vmem:[%s7346_s0 + $0x8] sm:$0xf]  ;;  %v104_v1 = vld [vmem:[%s7346_s0 + $0x10] sm:$0xf]  ;;  %v106_v2 = vld [vmem:[%s7346_s0 + $0x18] sm:$0xf] }
   0x2   :  { %v4232_v3 = vcombine.low %v104_v1, %v106_v2  ;;  %v4295_v4 = vcombine.low %v102_v0, %v104_v1  ;;  %v100_v5 = vld [vmem:[%s7346_s0] sm:$0xf]  ;;  %v4726_v7 = vld [vmem:[%s7346_s0 + $0x4] ss:$8 sps:$4 sm:$0xff]   ;;  %v4728_v10 = vld [vmem:[%s7346_s0 + $0x14] ss:$8 sps:$4 sm:$0xff]  }
   0x3   :  { %v4231_v6 = vcombine.low %v100_v5, %v102_v0  ;;  %v108_v8 = vld [vmem:[%s7346_s0 + $0x20] sm:$0xf]  ;;  %776 = vrot.lane.b32.xlu0 %v4726_v7, %s4907_s20  ;;  %v121_v11 = vld [vmem:[%s7346_s0 + $0x58] sm:$0xf]  ;;  %v117_v13 = vld [vmem:[%s7346_s0 + $0x48] sm:$0xf] }
   0x4   :  { %953 = vrot.lane.b32.xlu1 %v4295_v4, %s4906_s17  ;;  %v4296_v9 = vcombine.low %v106_v2, %v108_v8  ;;  %585 = vst.msk [vmem:[#allocation2 + $0x8] sm:$0xff] %vm583_vm0, %v4232_v3  ;;  %v123_v12 = vld [vmem:[%s7346_s0 + $0x60] sm:$0xf]  ;;  %v119_v14 = vld [vmem:[%s7346_s0 + $0x50] sm:$0xf]  ;;  %s4908_s18 = smov 24  }
   0x5   :  { %584 = vst.msk [vmem:[#allocation2] sm:$0xff] %vm583_vm0, %v4231_v6  ;;  %v4328_v15 = vcombine.low %v121_v11, %v123_v12  ;;  %v4327_v16 = vcombine.low %v117_v13, %v119_v14  ;;  %v138_v17 = vld [vmem:[%s7346_s0 + $0xa0] sm:$0xf]  ;;  %v140_v18 = vld [vmem:[%s7346_s0 + $0xa8] sm:$0xf]  ;;  %s4909_s24 = smov 32   ;;  %v4391_v28 = vcombine.low %v119_v14, %v121_v11 }
   0x6   :  { %v134_v19 = vld [vmem:[%s7346_s0 + $0x90] sm:$0xf]  ;;  %v4236_v20 = vcombine.low %v138_v17, %v140_v18  ;;  %v136_v21 = vld [vmem:[%s7346_s0 + $0x98] sm:$0xf]  ;;  %v4731_v22 = vld [vmem:[%s7346_s0 + $0x5c] ss:$8 sps:$4 sm:$0xff]  }
   0x7   :  { %778 = vrot.lane.b32.xlu0 %v4728_v10, %s4907_s20  ;;  %v4235_v23 = vcombine.low %v134_v19, %v136_v21  ;;  %v4732_v24 = vld [vmem:[%s7346_s0 + $0x4c] ss:$8 sps:$4 sm:$0xff]   ;;  %v5028_v25 = vld [vmem:[%s7346_s0 + $0x68] sm:$0xf]  ;;  %v142_v30 = vld [vmem:[%s7346_s0 + $0xb0] sm:$0xf]  ;;  %v5119_v49 = vcombine.low %v136_v21, %v138_v17 }
   0x8   :  { %955 = vrot.lane.b32.xlu1 %v4296_v9, %s4906_s17  ;;  %589 = vst.msk [vmem:[#allocation2 + $0x28] sm:$0xff] %vm583_vm0, %v4236_v20  ;;  %v4392_v26 = vcombine.low %v123_v12, %v5028_v25  ;;  %v5036_v27 = vld [vmem:[%s7346_s0 + $0x28] sm:$0xf]  ;;  %v114_v31 = vld [vmem:[%s7346_s0 + $0x38] sm:$0xf]  ;;  %s4910_s13 = smov 40   ;;  %v5136_v53 = vcombine.low %v140_v18, %v142_v30 }
   0x9   :  { %588 = vst.msk [vmem:[#allocation2 + $0x20] sm:$0xff] %vm583_vm0, %v4235_v23  ;;  %v4233_v29 = vcombine.low %v108_v8, %v5036_v27  ;;  %v5049_v32 = vld [vmem:[%s7346_s0 + $0x30] sm:$0xf]  ;;  %v5054_v33 = vld [vmem:[%s7346_s0 + $0xc0] sm:$0xf]  ;;  %s4911_s23 = smov 48  }
   0xa   :  { %v5061_v34 = vld [vmem:[%s7346_s0 + $0xc8] sm:$0xf]  ;;  %v5066_v35 = vld [vmem:[%s7346_s0 + $0xb8] sm:$0xf]  ;;  %v4234_v38 = vcombine.low %v5049_v32, %v114_v31  ;;  %v5080_v39 = vld [vmem:[%s7346_s0 + $0xa4] ss:$8 sps:$4 sm:$0xff]   ;;  %v4297_v63 = vcombine.low %v5036_v27, %v5049_v32 }
   0xb   :  { %1242 = vrot.lane.b32.xlu0 %v4327_v16, %s4908_s18  ;;  %586 = vst.msk [vmem:[#allocation2 + $0x10] sm:$0xff] %vm583_vm0, %v4233_v29  ;;  %v5071_v36 = vcombine.low %v5054_v33, %v5061_v34  ;;  %v5074_v37 = vcombine.low %v142_v30, %v5066_v35  ;;  %v5092_v40 = vld [vmem:[%s7346_s0 + $0x94] ss:$8 sps:$4 sm:$0xff]   ;;  %v172_v41 = vld [vmem:[%s7346_s0 + $0x130] sm:$0xf]  ;;  %s4912_s14 = smov 56   ;;  %v4301_v32 = vcombine.low %v5066_v35, %v5054_v33 }
   0xc   :  { %1244 = vrot.lane.b32.xlu1 %v4328_v15, %s4908_s18  ;;  %587 = vst.msk [vmem:[#allocation2 + $0x18] sm:$0xff] %vm583_vm0, %v4234_v38  ;;  %v174_v42 = vld [vmem:[%s7346_s0 + $0x138] sm:$0xf]  ;;  %v168_v43 = vld [vmem:[%s7346_s0 + $0x120] sm:$0xf]  ;;  %s4913_s26 = smov 64  }
   0xd   :  { %590 = vst.msk [vmem:[#allocation2 + $0x30] sm:$0xff] %vm583_vm0, %v5074_v37  ;;  %591 = vst.msk [vmem:[#allocation2 + $0x38] sm:$0xff] %vm583_vm0, %v5071_v36  ;;  %v170_v44 = vld [vmem:[%s7346_s0 + $0x128] sm:$0xf]  ;;  %v4739_v45 = vld [vmem:[%s7346_s0 + $0x24] ss:$8 sps:$4 sm:$0xff]   ;;  %v5111_v46 = vcombine.low %v172_v41, %v174_v42 }
   0xe   :  { %v5113_v47 = vcombine.low %v168_v43, %v170_v44  ;;  %v5115_v48 = vcombine.low %v170_v44, %v172_v41  ;;  %v176_v50 = vld [vmem:[%s7346_s0 + $0x140] sm:$0xf]  ;;  %v4741_v52 = vld [vmem:[%s7346_s0 + $0x34] ss:$8 sps:$4 sm:$0xff]   ;;  %v180_v55 = vld [vmem:[%s7346_s0 + $0x150] sm:$0xf] }
   0xf   :  { %1531 = vrot.lane.b32.xlu0 %v4732_v24, %s4909_s24  ;;  %593 = vst.msk [vmem:[#allocation2 + $0x48] sm:$0xff] %vm583_vm0, %v5111_v46  ;;  %v5128_v51 = vcombine.low %v174_v42, %v176_v50  ;;  %v116_v54 = vld [vmem:[%s7346_s0 + $0x40] sm:$0xf]  ;;  %v5147_v56 = vld [vmem:[%s7346_s0 + $0x158] sm:$0xf]  ;;  %v4781_v3 = vld [vmem:[%s7347_s1 + $0x8] sm:$0xff]  }
  0x10   :  { %1533 = vrot.lane.b32.xlu1 %v4731_v22, %s4909_s24  ;;  %592 = vst.msk [vmem:[#allocation2 + $0x40] sm:$0xff] %vm583_vm0, %v5113_v47  ;;  %v178_v57 = vld [vmem:[%s7346_s0 + $0x148] sm:$0xf]  ;;  %v5153_v58 = vcombine.low %v180_v55, %v5147_v56  ;;  %v4298_v61 = vcombine.low %v114_v31, %v116_v54  ;;  %v129_v62 = vld [vmem:[%s7346_s0 + $0x78] sm:$0xf]  ;;  %v4778_v1 = vld [vmem:[%s7347_s1] sm:$0xff]  }
  0x11   :  { %v5155_v59 = vcombine.low %v176_v50, %v178_v57  ;;  %v5157_v60 = vcombine.low %v178_v57, %v180_v55  ;;  %v131_v0 = vld [vmem:[%s7346_s0 + $0x80] sm:$0xf]  ;;  %v127_v2 = vld [vmem:[%s7346_s0 + $0x70] sm:$0xf]  ;;  %4606 = vmatprep.subr.bf16.mxu0 %v4778_v1  ;;  %v4747_v6 = vld [vmem:[%s7346_s0 + $0x7c] ss:$8 sps:$4 sm:$0xff]  }
  0x12   :  { %595 = vst.msk [vmem:[#allocation2 + $0x58] sm:$0xff] %vm583_vm0, %v5153_v58  ;;  %v4330_v4 = vcombine.low %v129_v62, %v131_v0  ;;  %4607 = vmatpush3.bf16.msra.mxu0 %v4778_v1  ;;  %v4329_v5 = vcombine.low %v5028_v25, %v127_v2  ;;  %v4784_v7 = vld [vmem:[%s7347_s1 + $0x10] sm:$0xff]   ;;  %v133_v9 = vld [vmem:[%s7346_s0 + $0x88] sm:$0xf]  ;;  %v4785_v10 = vld [vmem:[%s7347_s1 + $0x18] sm:$0xff]   ;;  %v4393_v19 = vcombine.low %v127_v2, %v129_v62  ;;  %vm1338_vm4 = vcmask 261312  }
  0x13   :  { %1708 = vrot.lane.b32.xlu0 %v4391_v28, %s4910_s13  ;;  %594 = vst.msk [vmem:[#allocation2 + $0x50] sm:$0xff] %vm583_vm0, %v5155_v59  ;;  %4608 = vmatprep.subr.bf16.mxu0 %v4781_v3  ;;  %v4748_v8 = vld [vmem:[%s7346_s0 + $0x6c] ss:$8 sps:$4 sm:$0xff]   ;;  %v206_v11 = vld [vmem:[%s7346_s0 + $0x1c0] sm:$0xf]  ;;  %v4394_v18 = vcombine.low %v131_v0, %v133_v9  ;;  %vm1627_vm5 = vcmask 326912  }
  0x14   :  { %1710 = vrot.lane.b32.xlu1 %v4392_v26, %s4910_s13  ;;  %v208_v12 = vld [vmem:[%s7346_s0 + $0x1c8] sm:$0xf]  ;;  %v202_v13 = vld [vmem:[%s7346_s0 + $0x1b0] sm:$0xf]  ;;  %v204_v15 = vld [vmem:[%s7346_s0 + $0x1b8] sm:$0xf] }
  0x15   :  { %v5212_v14 = vcombine.low %v206_v11, %v208_v12  ;;  %v5217_v16 = vcombine.low %v202_v13, %v204_v15  ;;  %v5219_v17 = vcombine.low %v204_v15, %v206_v11  ;;  %v210_v21 = vld [vmem:[%s7346_s0 + $0x1d0] sm:$0xf]  ;;  %v4753_v24 = vld [vmem:[%s7346_s0 + $0xc4] ss:$8 sps:$4 sm:$0xff]   ;;  %v212_v25 = vld [vmem:[%s7346_s0 + $0x1d8] sm:$0xf] }
  0x16   :  { %4609 = vmatpush3.bf16.msra.mxu0 %v4781_v3  ;;  %v5233_v22 = vcombine.low %v208_v12, %v210_v21  ;;  %v4754_v26 = vld [vmem:[%s7346_s0 + $0xb4] ss:$8 sps:$4 sm:$0xff]   ;;  %v214_v27 = vld [vmem:[%s7346_s0 + $0x1e0] sm:$0xf]  ;;  %v5252_v28 = vld [vmem:[%s7346_s0 + $0x1e8] sm:$0xf]  ;;  %v5254_v29 = vcombine.low %v210_v21, %v212_v25 }
  0x17   :  { %1857 = vrot.lane.b32.xlu0 %v4235_v23, %s4911_s23  ;;  %4610 = vmatprep.subr.bf16.mxu0 %v4784_v7  ;;  %597 = vst.msk [vmem:[#allocation2 + $0x68] sm:$0xff] %vm583_vm0, %v5212_v14  ;;  %596 = vst.msk [vmem:[#allocation2 + $0x60] sm:$0xff] %vm583_vm0, %v5217_v16  ;;  %v5259_v30 = vcombine.low %v214_v27, %v5252_v28  ;;  %v150_v31 = vld [vmem:[%s7346_s0 + $0xd0] sm:$0xf]  ;;  %v155_v38 = vld [vmem:[%s7346_s0 + $0xe8] sm:$0xf] }
  0x18   :  { %1859 = vrot.lane.b32.xlu1 %v4236_v20, %s4911_s23  ;;  %v4788_v20 = vld [vmem:[%s7347_s1 + $0x20] ss:$0 sps:$4 sm:$0xff]   ;;  %598 = vst.msk [vmem:[#allocation2 + $0x70] sm:$0xff] %vm583_vm0, %v5254_v29  ;;  %v157_v41 = vld [vmem:[%s7346_s0 + $0xf0] sm:$0xf]  ;;  %vm1804_vm6 = vcmask 392512  }
  0x19   :  { %v2437_v23 = vsel %vm2435_vm1, %v4788_v20, 0  ;;  %599 = vst.msk [vmem:[#allocation2 + $0x78] sm:$0xff] %vm583_vm0, %v5259_v30  ;;  %v151_v33 = vld [vmem:[%s7346_s0 + $0xd8] sm:$0xf]  ;;  %v153_v35 = vld [vmem:[%s7346_s0 + $0xe0] sm:$0xf] }
  0x1a   :  { %4611 = vmatpush3.bf16.msra.mxu0 %v4784_v7  ;;  %v4760_v42 = vld [vmem:[%s7346_s0 + $0xdc] ss:$8 sps:$4 sm:$0xff]   ;;  %v159_v43 = vld [vmem:[%s7346_s0 + $0xf8] sm:$0xf]  ;;  %v238_v50 = vld [vmem:[%s7346_s0 + $0x248] sm:$0xf] }
  0x1b   :  { %2006 = vrot.lane.b32.xlu0 %v5092_v40, %s4912_s14  ;;  %4612 = vmatprep.subr.bf16.mxu0 %v4785_v10  ;;  %v4396_v44 = vcombine.low %v157_v41, %v159_v43  ;;  %v5333_v55 = vld [vmem:[%s7346_s0 + $0x134] ss:$8 sps:$4 sm:$0xff]   ;;  %v165_v0 = vld [vmem:[%s7346_s0 + $0x110] sm:$0xf]  ;;  %v161_v1 = vld [vmem:[%s7346_s0 + $0x100] sm:$0xf] }
  0x1c   :  { %2008 = vrot.lane.b32.xlu1 %v5080_v39, %s4912_s14  ;;  %v4333_v3 = vcombine.low %v159_v43, %v161_v1  ;;  %v248_v12 = vld [vmem:[%s7346_s0 + $0x270] sm:$0xf]  ;;  %v5397_v13 = vld [vmem:[%s7346_s0 + $0x278] sm:$0xf]  ;;  %vm1953_vm7 = vcmask 458112   ;;  %vm2102_vm8 = vcmask 523712  }
  0x1d   :  { %vm2237_vm9 = vcmask 589312   ;;  %vm2338_vm10 = vcmask 588800   ;;  %vm30_vm11 = vcmask 130048   ;;  %s4916_s21 = smov 96   ;;  %vm3138_vm12 = vcmask 261248  }
  0x1e   :  { %4613 = vmatpush3.bf16.msra.mxu0 %v4785_v10  ;;  %v246_v10 = vld [vmem:[%s7346_s0 + $0x268] sm:$0xf]  ;;  %vm3187_vm13 = vcmask 392448   ;;  %vm3236_vm14 = vcmask 523648   ;;  %vm3285_vm15 = vcmask 654848  }
  0x1f   :  { %2141 = vrot.lane.b32.xlu0 %v5119_v49, %s4913_s26  ;;  %4708 = vmatprep.subr.msk.bf16.mxu0 %vm2435_vm1, %v4788_v20  ;;  %v5417_v20 = vld [vmem:[%s7346_s0 + $0x144] ss:$8 sps:$4 sm:$0xff]   ;;  %vm3377_vm1 = vcmask 917248  }
  0x20   :  { %780 = vrot.lane.b32.xlu1 %v4739_v45, %s4907_s20  ;;  %v4395_v45 = vcombine.low %v153_v35, %v155_v38 }
  0x22   :  { %4615 = vmatpush3.bf16.msra.mxu0 %v2437_v23  ;;  %v184_v23 = vld [vmem:[%s7346_s0 + $0x160] sm:$0xf] }
  0x23   :  { %2143 = vrot.lane.b32.xlu0 %v5136_v53, %s4913_s26 }
  0x24   :  { %782 = vrot.lane.b32.xlu1 %v4741_v52, %s4907_s20  ;;  %v240_v52 = vld [vmem:[%s7346_s0 + $0x250] sm:$0xf] }
  0x27   :  { %957 = vrot.lane.b32.xlu0 %v4297_v63, %s4906_s17  ;;  %v163_v63 = vld [vmem:[%s7346_s0 + $0x108] sm:$0xf] }
  0x28   :  { %959 = vrot.lane.b32.xlu1 %v4298_v61, %s4906_s17  ;;  %v4766_v61 = vld [vmem:[%s7346_s0 + $0x124] ss:$8 sps:$4 sm:$0xff]   ;;  %v4334_v2 = vcombine.low %v163_v63, %v165_v0 }
  0x2b   :  { %1246 = vrot.lane.b32.xlu0 %v4329_v5, %s4908_s18  ;;  %v4772_v5 = vld [vmem:[%s7346_s0 + $0xfc] ss:$8 sps:$4 sm:$0xff]  }
  0x2c   :  { %1248 = vrot.lane.b32.xlu1 %v4330_v4, %s4908_s18  ;;  %v4771_v4 = vld [vmem:[%s7346_s0 + $0x10c] ss:$8 sps:$4 sm:$0xff]  }
  0x2f   :  { %1535 = vrot.lane.b32.xlu0 %v4748_v8, %s4909_s24  ;;  %v4397_v8 = vcombine.low %v161_v1, %v163_v63  ;;  %v274_v63 = vld [vmem:[%s7346_s0 + $0x2e0] sm:$0xf] }
  0x30   :  { %1537 = vrot.lane.b32.xlu1 %v4747_v6, %s4909_s24  ;;  %v167_v6 = vld [vmem:[%s7346_s0 + $0x118] sm:$0xf] }
  0x31   :  { %v4398_v7 = vcombine.low %v165_v0, %v167_v6  ;;  %v276_v0 = vld [vmem:[%s7346_s0 + $0x2e8] sm:$0xf] }
  0x33   :  { %1712 = vrot.lane.b32.xlu0 %v4393_v19, %s4910_s13  ;;  %v5410_v19 = vcombine.low %v248_v12, %v5397_v13 }
  0x34   :  { %1714 = vrot.lane.b32.xlu1 %v4394_v18, %s4910_s13  ;;  %v5407_v18 = vld [vmem:[%s7346_s0 + $0x154] ss:$8 sps:$4 sm:$0xff]  }
  0x35   :  { %603 = vst.msk [vmem:[#allocation2 + $0x98] sm:$0xff] %vm583_vm0, %v5410_v19 }
  0x37   :  { %1861 = vrot.lane.b32.xlu0 %v5074_v37, %s4911_s23  ;;  %v4302_v37 = vcombine.low %v5061_v34, %v150_v31  ;;  %v4332_v34 = vcombine.low %v155_v38, %v157_v41  ;;  %v185_v38 = vld [vmem:[%s7346_s0 + $0x168] sm:$0xf]  ;;  %v187_v41 = vld [vmem:[%s7346_s0 + $0x170] sm:$0xf] }
  0x38   :  { %1863 = vrot.lane.b32.xlu1 %v5071_v36, %s4911_s23  ;;  %v5274_v36 = vcombine.low %v212_v25, %v214_v27  ;;  %v5434_v25 = vcombine.low %v246_v10, %v248_v12 }
  0x3b   :  { %2010 = vrot.lane.b32.xlu0 %v4754_v26, %s4912_s14 }
  0x3c   :  { %2012 = vrot.lane.b32.xlu1 %v4753_v24, %s4912_s14 }
  0x3f   :  { %2145 = vrot.lane.b32.xlu0 %v4301_v32, %s4913_s26 }
  0x40   :  { %784 = vrot.lane.b32.xlu1 %v5092_v40, %s4907_s20  ;;  %v4331_v40 = vcombine.low %v151_v33, %v153_v35 }
  0x43   :  { %2147 = vrot.lane.b32.xlu0 %v4302_v37, %s4913_s26 }
  0x44   :  { %786 = vrot.lane.b32.xlu1 %v5080_v39, %s4907_s20  ;;  %v4759_v39 = vld [vmem:[%s7346_s0 + $0xec] ss:$8 sps:$4 sm:$0xff]  }
  0x47   :  { %961 = vrot.lane.b32.xlu0 %v5119_v49, %s4906_s17  ;;  %v236_v49 = vld [vmem:[%s7346_s0 + $0x240] sm:$0xf] }
  0x48   :  { %963 = vrot.lane.b32.xlu1 %v5136_v53, %s4906_s17  ;;  %v242_v53 = vld [vmem:[%s7346_s0 + $0x258] sm:$0xf]  ;;  %v5326_v54 = vcombine.low %v236_v49, %v238_v50 }
  0x49   :  { %v5335_v57 = vcombine.low %v240_v52, %v242_v53 }
  0x4a   :  { %600 = vst.msk [vmem:[#allocation2 + $0x80] sm:$0xff] %vm583_vm0, %v5326_v54 }
  0x4b   :  { %1250 = vrot.lane.b32.xlu0 %v4331_v40, %s4908_s18  ;;  %601 = vst.msk [vmem:[#allocation2 + $0x88] sm:$0xff] %vm583_vm0, %v5335_v57 }
  0x4c   :  { %1252 = vrot.lane.b32.xlu1 %v4332_v34, %s4908_s18  ;;  %v4335_v34 = vcombine.low %v185_v38, %v187_v41 }
  0x4f   :  { %1539 = vrot.lane.b32.xlu0 %v4760_v42, %s4909_s24  ;;  %v4782_v42 = vld [vmem:[%s7346_s0 + $0x17c] ss:$8 sps:$4 sm:$0xff]  }
  0x50   :  { %1541 = vrot.lane.b32.xlu1 %v4759_v39, %s4909_s24 }
  0x53   :  { %1716 = vrot.lane.b32.xlu0 %v4395_v45, %s4910_s13 }
  0x54   :  { %1718 = vrot.lane.b32.xlu1 %v4396_v44, %s4910_s13 }
  0x57   :  { %1865 = vrot.lane.b32.xlu0 %v5113_v47, %s4911_s23  ;;  %v244_v47 = vld [vmem:[%s7346_s0 + $0x260] sm:$0xf] }
  0x58   :  { %1867 = vrot.lane.b32.xlu1 %v5111_v46, %s4911_s23  ;;  %v5349_v46 = vcombine.low %v238_v50, %v240_v52  ;;  %v5357_v62 = vcombine.low %v242_v53, %v244_v47  ;;  %v5399_v15 = vcombine.low %v244_v47, %v246_v10 }
  0x5a   :  { %602 = vst.msk [vmem:[#allocation2 + $0x90] sm:$0xff] %vm583_vm0, %v5399_v15 }
  0x5b   :  { %2014 = vrot.lane.b32.xlu0 %v4766_v61, %s4912_s14 }
  0x5c   :  { %2016 = vrot.lane.b32.xlu1 %v5333_v55, %s4912_s14 }
  0x5f   :  { %2149 = vrot.lane.b32.xlu0 %v5115_v48, %s4913_s26 }
  0x60   :  { %788 = vrot.lane.b32.xlu1 %v4754_v26, %s4907_s20  ;;  %v5441_v26 = vcombine.low %v5147_v56, %v184_v23  ;;  %v191_v56 = vld [vmem:[%s7346_s0 + $0x180] sm:$0xf]  ;;  %v195_v23 = vld [vmem:[%s7346_s0 + $0x190] sm:$0xf] }
  0x63   :  { %2151 = vrot.lane.b32.xlu0 %v5128_v51, %s4913_s26 }
  0x64   :  { %790 = vrot.lane.b32.xlu1 %v4753_v24, %s4907_s20 }
  0x67   :  { %965 = vrot.lane.b32.xlu0 %v4301_v32, %s4906_s17  ;;  %v189_v32 = vld [vmem:[%s7346_s0 + $0x178] sm:$0xf] }
  0x68   :  { %967 = vrot.lane.b32.xlu1 %v4302_v37, %s4906_s17  ;;  %v4336_v35 = vcombine.low %v189_v32, %v191_v56  ;;  %v4399_v49 = vcombine.low %v187_v41, %v189_v32 }
  0x6b   :  { %1254 = vrot.lane.b32.xlu0 %v4333_v3, %s4908_s18  ;;  %v5514_v3 = vcombine.low %v274_v63, %v276_v0 }
  0x6c   :  { %1256 = vrot.lane.b32.xlu1 %v4334_v2, %s4908_s18  ;;  %v5512_v2 = vld [vmem:[%s7346_s0 + $0x1c4] ss:$8 sps:$4 sm:$0xff]  }
  0x6d   :  { %605 = vst.msk [vmem:[#allocation2 + $0xa8] sm:$0xff] %vm583_vm0, %v5514_v3 }
  0x6f   :  { %1543 = vrot.lane.b32.xlu0 %v4772_v5, %s4909_s24 }
  0x70   :  { %1545 = vrot.lane.b32.xlu1 %v4771_v4, %s4909_s24  ;;  %v5521_v4 = vld [vmem:[%s7346_s0 + $0x1b4] ss:$8 sps:$4 sm:$0xff]  }
  0x73   :  { %1720 = vrot.lane.b32.xlu0 %v4397_v8, %s4910_s13 }
  0x74   :  { %1722 = vrot.lane.b32.xlu1 %v4398_v7, %s4910_s13 }
  0x75   :  { %v777_v11 = vpop.permute.xlu0 %776 }
  0x76   :  { %v954_v9 = vpop.permute.xlu1 %953  ;;  %873 = vst.msk [vmem:[#allocation2] sm:$0xff] %vm872_vm2, %v777_v11  ;;  %v278_v11 = vld [vmem:[%s7346_s0 + $0x2f0] sm:$0xf] }
  0x77   :  { %1869 = vrot.lane.b32.xlu0 %v5155_v59, %s4911_s23  ;;  %1050 = vst.msk [vmem:[#allocation2] sm:$0xff] %vm1049_vm3, %v954_v9 }
  0x78   :  { %1871 = vrot.lane.b32.xlu1 %v5153_v58, %s4911_s23 }
  0x79   :  { %v779_v21 = vpop.permute.xlu0 %778 }
  0x7a   :  { %v956_v58 = vpop.permute.xlu1 %955  ;;  %874 = vst.msk [vmem:[#allocation2 + $0x8] sm:$0xff] %vm872_vm2, %v779_v21  ;;  %v199_v21 = vld [vmem:[%s7346_s0 + $0x1a0] sm:$0xf] }
  0x7b   :  { %2018 = vrot.lane.b32.xlu0 %v5417_v20, %s4912_s14  ;;  %1051 = vst.msk [vmem:[#allocation2 + $0x8] sm:$0xff] %vm1049_vm3, %v956_v58  ;;  %v5547_v58 = vcombine.low %v276_v0, %v278_v11 }
  0x7c   :  { %2020 = vrot.lane.b32.xlu1 %v5407_v18, %s4912_s14 }
  0x7d   :  { %v1243_v24 = vpop.permute.xlu0 %1242 }
  0x7e   :  { %v1245_v59 = vpop.permute.xlu1 %1244  ;;  %1339 = vst.msk [vmem:[#allocation2] sm:$0xff] %vm1338_vm4, %v1243_v24 }
  0x7f   :  { %1340 = vst.msk [vmem:[#allocation2 + $0x8] sm:$0xff] %vm1338_vm4, %v1245_v59  ;;  %2153 = vrot.lane.b32.xlu0 %v5157_v60, %s4913_s26 }
  0x80   :  { %792 = vrot.lane.b32.xlu1 %v4766_v61, %s4907_s20  ;;  %v272_v61 = vld [vmem:[%s7346_s0 + $0x2d8] sm:$0xf] }
  0x81   :  { %v1532_v31 = vpop.permute.xlu0 %1531  ;;  %v5535_v9 = vcombine.low %v272_v61, %v274_v63 }
  0x82   :  { %v1534_v27 = vpop.permute.xlu1 %1533  ;;  %1628 = vst.msk [vmem:[#allocation2] sm:$0xff] %vm1627_vm5, %v1532_v31 }
  0x83   :  { %1629 = vst.msk [vmem:[#allocation2 + $0x8] sm:$0xff] %vm1627_vm5, %v1534_v27  ;;  %2155 = vrot.lane.b32.xlu0 %v5441_v26, %s4913_s26 }
  0x84   :  { %794 = vrot.lane.b32.xlu1 %v5333_v55, %s4907_s20  ;;  %v270_v55 = vld [vmem:[%s7346_s0 + $0x2d0] sm:$0xf] }
  0x85   :  { %v1709_v33 = vpop.permute.xlu0 %1708  ;;  %v5504_v1 = vcombine.low %v270_v55, %v272_v61 }
  0x86   :  { %v1711_v37 = vpop.permute.xlu1 %1710  ;;  %1805 = vst.msk [vmem:[#allocation2] sm:$0xff] %vm1804_vm6, %v1709_v33 }
  0x87   :  { %1806 = vst.msk [vmem:[#allocation2 + $0x8] sm:$0xff] %vm1804_vm6, %v1711_v37  ;;  %969 = vrot.lane.b32.xlu0 %v5115_v48, %s4906_s17  ;;  %v4783_v48 = vld [vmem:[%s7346_s0 + $0x16c] ss:$8 sps:$4 sm:$0xff]  }
  0x88   :  { %971 = vrot.lane.b32.xlu1 %v5128_v51, %s4906_s17  ;;  %v5480_v51 = vld [vmem:[%s7346_s0 + $0x188] sm:$0xf]  ;;  %604 = vst.msk [vmem:[#allocation2 + $0xa0] sm:$0xff] %vm583_vm0, %v5504_v1 }
  0x89   :  { %v1858_v39 = vpop.permute.xlu0 %1857  ;;  %v4400_v45 = vcombine.low %v191_v56, %v5480_v51  ;;  %v4337_v27 = vcombine.low %v5480_v51, %v195_v23  ;;  %v4792_v56 = vld [vmem:[%s7346_s0 + $0x19c] ss:$8 sps:$4 sm:$0xff]   ;;  %v5601_v51 = vld [vmem:[%s7346_s0 + $0x308] sm:$0xf] }
  0x8a   :  { %v1860_v40 = vpop.permute.xlu1 %1859  ;;  %1954 = vst.msk [vmem:[#allocation2] sm:$0xff] %vm1953_vm7, %v1858_v39  ;;  %v280_v39 = vld [vmem:[%s7346_s0 + $0x2f8] sm:$0xf] }
  0x8b   :  { %1955 = vst.msk [vmem:[#allocation2 + $0x8] sm:$0xff] %vm1953_vm7, %v1860_v40  ;;  %1258 = vrot.lane.b32.xlu0 %v4335_v34, %s4908_s18 }
  0x8c   :  { %1260 = vrot.lane.b32.xlu1 %v4336_v35, %s4908_s18 }
  0x8d   :  { %v2007_v44 = vpop.permute.xlu0 %2006 }
  0x8e   :  { %v2009_v43 = vpop.permute.xlu1 %2008  ;;  %2103 = vst.msk [vmem:[#allocation2] sm:$0xff] %vm2102_vm8, %v2007_v44  ;;  %v5611_v44 = vld [vmem:[%s7346_s0 + $0x1e4] ss:$8 sps:$4 sm:$0xff]  }
  0x8f   :  { %2104 = vst.msk [vmem:[#allocation2 + $0x8] sm:$0xff] %vm2102_vm8, %v2009_v43  ;;  %1547 = vrot.lane.b32.xlu0 %v4783_v48, %s4909_s24  ;;  %v282_v48 = vld [vmem:[%s7346_s0 + $0x300] sm:$0xf]  ;;  %v5603_v43 = vcombine.low %v278_v11, %v280_v39 }
  0x90   :  { %1549 = vrot.lane.b32.xlu1 %v4782_v42, %s4909_s24 }
  0x91   :  { %v2142_v52 = vpop.permute.xlu0 %2141  ;;  %606 = vst.msk [vmem:[#allocation2 + $0xb0] sm:$0xff] %vm583_vm0, %v5603_v43 }
  0x92   :  { %v781_v50 = vpop.permute.xlu1 %780  ;;  %2238 = vst.msk [vmem:[#allocation2] sm:$0xff] %vm2237_vm9, %v2142_v52 }
  0x93   :  { %875 = vst.msk [vmem:[#allocation2 + $0x10] sm:$0xff] %vm872_vm2, %v781_v50  ;;  %1724 = vrot.lane.b32.xlu0 %v4399_v49, %s4910_s13  ;;  %v5621_v49 = vld [vmem:[%s7346_s0 + $0x1d4] ss:$8 sps:$4 sm:$0xff]  }
  0x94   :  { %1726 = vrot.lane.b32.xlu1 %v4400_v45, %s4910_s13  ;;  %v5614_v45 = vcombine.low %v282_v48, %v5601_v51 }
  0x95   :  { %v2144_v47 = vpop.permute.xlu0 %2143 }
  0x96   :  { %v783_v53 = vpop.permute.xlu1 %782  ;;  %2239 = vst.msk [vmem:[#allocation2 + $0x8] sm:$0xff] %vm2237_vm9, %v2144_v47  ;;  %v5638_v47 = vcombine.low %v280_v39, %v282_v48 }
  0x97   :  { %876 = vst.msk [vmem:[#allocation2 + $0x18] sm:$0xff] %vm872_vm2, %v783_v53  ;;  %1873 = vrot.lane.b32.xlu0 %v5217_v16, %s4911_s23  ;;  %v218_v53 = vld [vmem:[%s7346_s0 + $0x1f0] sm:$0xf] }
  0x98   :  { %1875 = vrot.lane.b32.xlu1 %v5212_v14, %s4911_s23  ;;  %607 = vst.msk [vmem:[#allocation2 + $0xb8] sm:$0xff] %vm583_vm0, %v5614_v45  ;;  %v5647_v63 = vcombine.low %v5252_v28, %v218_v53  ;;  %v225_v28 = vld [vmem:[%s7346_s0 + $0x210] sm:$0xf] }
  0x99   :  { %v958_v5 = vpop.permute.xlu0 %957  ;;  %v2270_v6 = vld [vmem:[#allocation2] sm:$0xff] }
  0x9a   :  { %v960_v14 = vpop.permute.xlu1 %959  ;;  %1052 = vst.msk [vmem:[#allocation2 + $0x10] sm:$0xff] %vm1049_vm3, %v958_v5  ;;  %4616 = vmatprep.mubr.msk.bf16.mxu0 %vm2338_vm10, %v2270_v6  ;;  %v219_v6 = vld [vmem:[%s7346_s0 + $0x1f8] sm:$0xf] }
  0x9b   :  { %1053 = vst.msk [vmem:[#allocation2 + $0x18] sm:$0xff] %vm1049_vm3, %v960_v14  ;;  %2022 = vrot.lane.b32.xlu0 %v5521_v4, %s4912_s14 }
  0x9c   :  { %2024 = vrot.lane.b32.xlu1 %v5512_v2, %s4912_s14 }
  0x9d   :  { %v1247_v7 = vpop.permute.xlu0 %1246  ;;  %v2271_v8 = vld [vmem:[#allocation2 + $0x8] sm:$0xff] }
  0x9e   :  { %v1249_v16 = vpop.permute.xlu1 %1248  ;;  %1341 = vst.msk [vmem:[#allocation2 + $0x10] sm:$0xff] %vm1338_vm4, %v1247_v7  ;;  %4617 = vmatmul.mubr.msk.bf16.vlgmr.msra.gmra.mrb[0].mxu0 %vm2338_vm10, %v2271_v8 }
  0x9f   :  { %1342 = vst.msk [vmem:[#allocation2 + $0x18] sm:$0xff] %vm1338_vm4, %v1249_v16  ;;  %2157 = vrot.lane.b32.xlu0 %v5219_v17, %s4913_s26 }
  0xa0   :  { %796 = vrot.lane.b32.xlu1 %v5417_v20, %s4907_s20  ;;  %v197_v20 = vld [vmem:[%s7346_s0 + $0x198] sm:$0xf] }
  0xa1   :  { %v1536_v12 = vpop.permute.xlu0 %1535  ;;  %v4401_v33 = vcombine.low %v195_v23, %v197_v20 }
  0xa2   :  { %v1538_v10 = vpop.permute.xlu1 %1537  ;;  %1630 = vst.msk [vmem:[#allocation2 + $0x10] sm:$0xff] %vm1627_vm5, %v1536_v12  ;;  %v4799_v12 = vld [vmem:[%s7346_s0 + $0x20c] ss:$8 sps:$4 sm:$0xff]  }
  0xa3   :  { %1631 = vst.msk [vmem:[#allocation2 + $0x18] sm:$0xff] %vm1627_vm5, %v1538_v10  ;;  %2159 = vrot.lane.b32.xlu0 %v5233_v22, %s4913_s26 }
  0xa4   :  { %798 = vrot.lane.b32.xlu1 %v5407_v18, %s4907_s20  ;;  %v4338_v18 = vcombine.low %v197_v20, %v199_v21 }
  0xa5   :  { %v1713_v24 = vpop.permute.xlu0 %1712 }
  0xa6   :  { %v1715_v59 = vpop.permute.xlu1 %1714  ;;  %1807 = vst.msk [vmem:[#allocation2 + $0x10] sm:$0xff] %vm1804_vm6, %v1713_v24 }
  0xa7   :  { %1808 = vst.msk [vmem:[#allocation2 + $0x18] sm:$0xff] %vm1804_vm6, %v1715_v59  ;;  %973 = vrot.lane.b32.xlu0 %v5157_v60, %s4906_s17  ;;  %v4793_v60 = vld [vmem:[%s7346_s0 + $0x18c] ss:$8 sps:$4 sm:$0xff]  }
  0xa8   :  { %975 = vrot.lane.b32.xlu1 %v5441_v26, %s4906_s17  ;;  %v201_v26 = vld [vmem:[%s7346_s0 + $0x1a8] sm:$0xf] }
  0xa9   :  { %v1862_v32 = vpop.permute.xlu0 %1861  ;;  %v4402_v41 = vcombine.low %v199_v21, %v201_v26  ;;  %v310_v26 = vld [vmem:[%s7346_s0 + $0x378] sm:$0xf] }
  0xaa   :  { %v1864_v31 = vpop.permute.xlu1 %1863  ;;  %1956 = vst.msk [vmem:[#allocation2 + $0x10] sm:$0xff] %vm1953_vm7, %v1862_v32  ;;  %v306_v32 = vld [vmem:[%s7346_s0 + $0x368] sm:$0xf] }
  0xab   :  { %1957 = vst.msk [vmem:[#allocation2 + $0x18] sm:$0xff] %vm1953_vm7, %v1864_v31  ;;  %1262 = vrot.lane.b32.xlu0 %v4337_v27, %s4908_s18  ;;  %v304_v31 = vld [vmem:[%s7346_s0 + $0x360] sm:$0xf] }
  0xac   :  { %1264 = vrot.lane.b32.xlu1 %v4338_v18, %s4908_s18 }
  0xad   :  { %v2011_v38 = vpop.permute.xlu0 %2010 }
  0xae   :  { %v2013_v37 = vpop.permute.xlu1 %2012  ;;  %2105 = vst.msk [vmem:[#allocation2 + $0x10] sm:$0xff] %vm2102_vm8, %v2011_v38  ;;  %v5718_v38 = vld [vmem:[%s7346_s0 + $0x254] ss:$8 sps:$4 sm:$0xff]  }
  0xaf   :  { %2106 = vst.msk [vmem:[#allocation2 + $0x18] sm:$0xff] %vm2102_vm8, %v2013_v37  ;;  %1551 = vrot.lane.b32.xlu0 %v4793_v60, %s4909_s24  ;;  %v308_v60 = vld [vmem:[%s7346_s0 + $0x370] sm:$0xf]  ;;  %v5710_v37 = vcombine.low %v304_v31, %v306_v32  ;;  %v252_v31 = vld [vmem:[%s7346_s0 + $0x280] sm:$0xf] }
  0xb0   :  { %1553 = vrot.lane.b32.xlu1 %v4792_v56, %s4909_s24 }
  0xb1   :  { %v2146_v34 = vpop.permute.xlu0 %2145  ;;  %608 = vst.msk [vmem:[#allocation2 + $0xc0] sm:$0xff] %vm583_vm0, %v5710_v37 }
  0xb2   :  { %v785_v35 = vpop.permute.xlu1 %784  ;;  %2240 = vst.msk [vmem:[#allocation2 + $0x10] sm:$0xff] %vm2237_vm9, %v2146_v34 }
  0xb3   :  { %877 = vst.msk [vmem:[#allocation2 + $0x20] sm:$0xff] %vm872_vm2, %v785_v35  ;;  %1728 = vrot.lane.b32.xlu0 %v4401_v33, %s4910_s13  ;;  %v5727_v33 = vld [vmem:[%s7346_s0 + $0x244] ss:$8 sps:$4 sm:$0xff]  }
  0xb4   :  { %1730 = vrot.lane.b32.xlu1 %v4402_v41, %s4910_s13  ;;  %v5720_v41 = vcombine.low %v308_v60, %v310_v26 }
  0xb5   :  { %v2148_v42 = vpop.permute.xlu0 %2147 }
  0xb6   :  { %v787_v40 = vpop.permute.xlu1 %786  ;;  %2241 = vst.msk [vmem:[#allocation2 + $0x18] sm:$0xff] %vm2237_vm9, %v2148_v42  ;;  %v5741_v42 = vcombine.low %v306_v32, %v308_v60 }
  0xb7   :  { %878 = vst.msk [vmem:[#allocation2 + $0x28] sm:$0xff] %vm872_vm2, %v787_v40  ;;  %1877 = vrot.lane.b32.xlu0 %v5254_v29, %s4911_s23 }
  0xb8   :  { %1879 = vrot.lane.b32.xlu1 %v5259_v30, %s4911_s23  ;;  %609 = vst.msk [vmem:[#allocation2 + $0xc8] sm:$0xff] %vm583_vm0, %v5720_v41 }
  0xb9   :  { %v962_v50 = vpop.permute.xlu0 %961  ;;  %v2272_v52 = vld [vmem:[#allocation2 + $0x10] sm:$0xff] }
  0xba   :  { %v964_v30 = vpop.permute.xlu1 %963  ;;  %1054 = vst.msk [vmem:[#allocation2 + $0x20] sm:$0xff] %vm1049_vm3, %v962_v50  ;;  %4620 = vmatprep.mubr.msk.bf16.mxu0 %vm2338_vm10, %v2272_v52 }
  0xbb   :  { %1055 = vst.msk [vmem:[#allocation2 + $0x28] sm:$0xff] %vm1049_vm3, %v964_v30  ;;  %2026 = vrot.lane.b32.xlu0 %v5621_v49, %s4912_s14  ;;  %v312_v30 = vld [vmem:[%s7346_s0 + $0x380] sm:$0xf] }
  0xbc   :  { %2028 = vrot.lane.b32.xlu1 %v5611_v44, %s4912_s14  ;;  %v5753_v52 = vcombine.low %v310_v26, %v312_v30  ;;  %v5890_v26 = vcombine.low %v5397_v13, %v252_v31  ;;  %v259_v13 = vld [vmem:[%s7346_s0 + $0x2a0] sm:$0xf] }
  0xbd   :  { %v1251_v55 = vpop.permute.xlu0 %1250  ;;  %v2273_v61 = vld [vmem:[#allocation2 + $0x18] sm:$0xff]  ;;  %v267_v31 = vld [vmem:[%s7346_s0 + $0x2c0] sm:$0xf] }
  0xbe   :  { %v1253_v29 = vpop.permute.xlu1 %1252  ;;  %1343 = vst.msk [vmem:[#allocation2 + $0x20] sm:$0xff] %vm1338_vm4, %v1251_v55  ;;  %4621 = vmatmul.mubr.msk.bf16.gmra.mrb[4].mxu0 %vm2338_vm10, %v2273_v61  ;;  %v229_v55 = vld [vmem:[%s7346_s0 + $0x220] sm:$0xf] }
  0xbf   :  { %1344 = vst.msk [vmem:[#allocation2 + $0x28] sm:$0xff] %vm1338_vm4, %v1253_v29  ;;  %2161 = vrot.lane.b32.xlu0 %v5274_v36, %s4913_s26  ;;  %v233_v29 = vld [vmem:[%s7346_s0 + $0x230] sm:$0xf] }
  0xc0   :  { %800 = vrot.lane.b32.xlu1 %v5521_v4, %s4907_s20  ;;  %v223_v4 = vld [vmem:[%s7346_s0 + $0x208] sm:$0xf] }
  0xc1   :  { %v1540_v14 = vpop.permute.xlu0 %1539  ;;  %v4340_v7 = vcombine.low %v223_v4, %v225_v28 }
  0xc2   :  { %v1542_v0 = vpop.permute.xlu1 %1541  ;;  %1632 = vst.msk [vmem:[#allocation2 + $0x20] sm:$0xff] %vm1627_vm5, %v1540_v14 }
  0xc3   :  { %1633 = vst.msk [vmem:[#allocation2 + $0x28] sm:$0xff] %vm1627_vm5, %v1542_v0  ;;  %2163 = vrot.lane.b32.xlu0 %v5647_v63, %s4913_s26 }
  0xc4   :  { %802 = vrot.lane.b32.xlu1 %v5512_v2, %s4907_s20  ;;  %v221_v2 = vld [vmem:[%s7346_s0 + $0x200] sm:$0xf] }
  0xc5   :  { %v1717_v16 = vpop.permute.xlu0 %1716  ;;  %v4339_v8 = vcombine.low %v219_v6, %v221_v2  ;;  %v4403_v23 = vcombine.low %v221_v2, %v223_v4 }
  0xc6   :  { %v1719_v5 = vpop.permute.xlu1 %1718  ;;  %1809 = vst.msk [vmem:[#allocation2 + $0x20] sm:$0xff] %vm1804_vm6, %v1717_v16 }
  0xc7   :  { %1810 = vst.msk [vmem:[#allocation2 + $0x28] sm:$0xff] %vm1804_vm6, %v1719_v5  ;;  %977 = vrot.lane.b32.xlu0 %v5219_v17, %s4906_s17  ;;  %v5686_v17 = vld [vmem:[%s7346_s0 + $0x218] sm:$0xf] }
  0xc8   :  { %979 = vrot.lane.b32.xlu1 %v5233_v22, %s4906_s17  ;;  %v4800_v22 = vld [vmem:[%s7346_s0 + $0x1fc] ss:$8 sps:$4 sm:$0xff]   ;;  %v4404_v59 = vcombine.low %v225_v28, %v5686_v17  ;;  %v4341_v0 = vcombine.low %v5686_v17, %v229_v55  ;;  %v4806_v28 = vld [vmem:[%s7346_s0 + $0x22c] ss:$8 sps:$4 sm:$0xff]   ;;  %v5807_v17 = vld [vmem:[%s7346_s0 + $0x398] sm:$0xf] }
  0xc9   :  { %v1866_v11 = vpop.permute.xlu0 %1865 }
  0xca   :  { %v1868_v10 = vpop.permute.xlu1 %1867  ;;  %1958 = vst.msk [vmem:[#allocation2 + $0x20] sm:$0xff] %vm1953_vm7, %v1866_v11  ;;  %v314_v11 = vld [vmem:[%s7346_s0 + $0x388] sm:$0xf] }
  0xcb   :  { %1959 = vst.msk [vmem:[#allocation2 + $0x28] sm:$0xff] %vm1953_vm7, %v1868_v10  ;;  %1266 = vrot.lane.b32.xlu0 %v4339_v8, %s4908_s18 }
  0xcc   :  { %1268 = vrot.lane.b32.xlu1 %v4340_v7, %s4908_s18 }
  0xcd   :  { %v2015_v21 = vpop.permute.xlu0 %2014 }
  0xce   :  { %v2017_v20 = vpop.permute.xlu1 %2016  ;;  %2107 = vst.msk [vmem:[#allocation2 + $0x20] sm:$0xff] %vm2102_vm8, %v2015_v21  ;;  %v5817_v21 = vld [vmem:[%s7346_s0 + $0x274] ss:$8 sps:$4 sm:$0xff]  }
  0xcf   :  { %2108 = vst.msk [vmem:[#allocation2 + $0x28] sm:$0xff] %vm2102_vm8, %v2017_v20  ;;  %1555 = vrot.lane.b32.xlu0 %v4800_v22, %s4909_s24  ;;  %v316_v22 = vld [vmem:[%s7346_s0 + $0x390] sm:$0xf]  ;;  %v5809_v20 = vcombine.low %v312_v30, %v314_v11 }
  0xd0   :  { %1557 = vrot.lane.b32.xlu1 %v4799_v12, %s4909_s24  ;;  %v5881_v60 = vcombine.low %v314_v11, %v316_v22 }
  0xd1   :  { %v2150_v18 = vpop.permute.xlu0 %2149  ;;  %610 = vst.msk [vmem:[#allocation2 + $0xd0] sm:$0xff] %vm583_vm0, %v5809_v20 }
  0xd2   :  { %v789_v24 = vpop.permute.xlu1 %788  ;;  %2242 = vst.msk [vmem:[#allocation2 + $0x20] sm:$0xff] %vm2237_vm9, %v2150_v18 }
  0xd3   :  { %879 = vst.msk [vmem:[#allocation2 + $0x30] sm:$0xff] %vm872_vm2, %v789_v24  ;;  %1732 = vrot.lane.b32.xlu0 %v4403_v23, %s4910_s13  ;;  %v5827_v23 = vld [vmem:[%s7346_s0 + $0x264] ss:$8 sps:$4 sm:$0xff]  }
  0xd4   :  { %1734 = vrot.lane.b32.xlu1 %v4404_v59, %s4910_s13  ;;  %v5820_v59 = vcombine.low %v316_v22, %v5807_v17 }
  0xd5   :  { %v2152_v56 = vpop.permute.xlu0 %2151 }
  0xd6   :  { %v791_v27 = vpop.permute.xlu1 %790  ;;  %2243 = vst.msk [vmem:[#allocation2 + $0x28] sm:$0xff] %vm2237_vm9, %v2152_v56 }
  0xd7   :  { %880 = vst.msk [vmem:[#allocation2 + $0x38] sm:$0xff] %vm872_vm2, %v791_v27  ;;  %1881 = vrot.lane.b32.xlu0 %v5326_v54, %s4911_s23 }
  0xd8   :  { %1883 = vrot.lane.b32.xlu1 %v5335_v57, %s4911_s23  ;;  %611 = vst.msk [vmem:[#allocation2 + $0xd8] sm:$0xff] %vm583_vm0, %v5820_v59 }
  0xd9   :  { %v966_v57 = vpop.permute.xlu0 %965  ;;  %v2274_v34 = vld [vmem:[#allocation2 + $0x20] sm:$0xff] }
  0xda   :  { %v968_v35 = vpop.permute.xlu1 %967  ;;  %1056 = vst.msk [vmem:[#allocation2 + $0x30] sm:$0xff] %vm1049_vm3, %v966_v57  ;;  %4624 = vmatprep.mubr.msk.bf16.mxu0 %vm2338_vm10, %v2274_v34 }
  0xdb   :  { %1057 = vst.msk [vmem:[#allocation2 + $0x38] sm:$0xff] %vm1049_vm3, %v968_v35  ;;  %2030 = vrot.lane.b32.xlu0 %v5727_v33, %s4912_s14 }
  0xdc   :  { %2032 = vrot.lane.b32.xlu1 %v5718_v38, %s4912_s14 }
  0xdd   :  { %v1255_v40 = vpop.permute.xlu0 %1254  ;;  %v2275_v39 = vld [vmem:[#allocation2 + $0x28] sm:$0xff] }
  0xde   :  { %v1257_v54 = vpop.permute.xlu1 %1256  ;;  %1345 = vst.msk [vmem:[#allocation2 + $0x30] sm:$0xff] %vm1338_vm4, %v1255_v40  ;;  %4625 = vmatmul.mubr.msk.bf16.gmra.mrb[8].mxu0 %vm2338_vm10, %v2275_v39 }
  0xdf   :  { %1346 = vst.msk [vmem:[#allocation2 + $0x38] sm:$0xff] %vm1338_vm4, %v1257_v54  ;;  %2165 = vrot.lane.b32.xlu0 %v5349_v46, %s4913_s26  ;;  %v253_v54 = vld [vmem:[%s7346_s0 + $0x288] sm:$0xf] }
  0xe0   :  { %804 = vrot.lane.b32.xlu1 %v5621_v49, %s4907_s20  ;;  %v231_v49 = vld [vmem:[%s7346_s0 + $0x228] sm:$0xf] }
  0xe1   :  { %v1544_v50 = vpop.permute.xlu0 %1543  ;;  %v4405_v16 = vcombine.low %v229_v55, %v231_v49 }
  0xe2   :  { %v1546_v48 = vpop.permute.xlu1 %1545  ;;  %1634 = vst.msk [vmem:[#allocation2 + $0x30] sm:$0xff] %vm1627_vm5, %v1544_v50 }
  0xe3   :  { %1635 = vst.msk [vmem:[#allocation2 + $0x38] sm:$0xff] %vm1627_vm5, %v1546_v48  ;;  %2167 = vrot.lane.b32.xlu0 %v5357_v62, %s4913_s26 }
  0xe4   :  { %806 = vrot.lane.b32.xlu1 %v5611_v44, %s4907_s20  ;;  %v4342_v44 = vcombine.low %v231_v49, %v233_v29  ;;  %v4813_v49 = vld [vmem:[%s7346_s0 + $0x29c] ss:$8 sps:$4 sm:$0xff]  }
  0xe5   :  { %v1721_v61 = vpop.permute.xlu0 %1720 }
  0xe6   :  { %v1723_v53 = vpop.permute.xlu1 %1722  ;;  %1811 = vst.msk [vmem:[#allocation2 + $0x30] sm:$0xff] %vm1804_vm6, %v1721_v61 }
  0xe7   :  { %1812 = vst.msk [vmem:[#allocation2 + $0x38] sm:$0xff] %vm1804_vm6, %v1723_v53  ;;  %981 = vrot.lane.b32.xlu0 %v5274_v36, %s4906_s17  ;;  %v4807_v36 = vld [vmem:[%s7346_s0 + $0x21c] ss:$8 sps:$4 sm:$0xff]  }
  0xe8   :  { %983 = vrot.lane.b32.xlu1 %v5647_v63, %s4906_s17  ;;  %v235_v63 = vld [vmem:[%s7346_s0 + $0x238] sm:$0xf] }
  0xe9   :  { %v1870_v4 = vpop.permute.xlu0 %1869  ;;  %v4406_v2 = vcombine.low %v233_v29, %v235_v63  ;;  %v342_v63 = vld [vmem:[%s7346_s0 + $0x400] sm:$0xf] }
  0xea   :  { %v1872_v14 = vpop.permute.xlu1 %1871  ;;  %1960 = vst.msk [vmem:[#allocation2 + $0x30] sm:$0xff] %vm1953_vm7, %v1870_v4  ;;  %v338_v4 = vld [vmem:[%s7346_s0 + $0x3f0] sm:$0xf] }
  0xeb   :  { %1961 = vst.msk [vmem:[#allocation2 + $0x38] sm:$0xff] %vm1953_vm7, %v1872_v14  ;;  %1270 = vrot.lane.b32.xlu0 %v4341_v0, %s4908_s18 }
  0xec   :  { %1272 = vrot.lane.b32.xlu1 %v4342_v44, %s4908_s18 }
  0xed   :  { %v2019_v6 = vpop.permute.xlu0 %2018 }
  0xee   :  { %v2021_v5 = vpop.permute.xlu1 %2020  ;;  %2109 = vst.msk [vmem:[#allocation2 + $0x30] sm:$0xff] %vm2102_vm8, %v2019_v6 }
  0xef   :  { %2110 = vst.msk [vmem:[#allocation2 + $0x38] sm:$0xff] %vm2102_vm8, %v2021_v5  ;;  %1559 = vrot.lane.b32.xlu0 %v4807_v36, %s4909_s24  ;;  %v344_v5 = vld [vmem:[%s7346_s0 + $0x408] sm:$0xf] }
  0xf0   :  { %1561 = vrot.lane.b32.xlu1 %v4806_v28, %s4909_s24  ;;  %v340_v28 = vld [vmem:[%s7346_s0 + $0x3f8] sm:$0xf] }
  0xf1   :  { %v2154_v8 = vpop.permute.xlu0 %2153  ;;  %v5953_v6 = vcombine.low %v338_v4, %v340_v28  ;;  %v5984_v22 = vcombine.low %v340_v28, %v342_v63  ;;  %v286_v4 = vld [vmem:[%s7346_s0 + $0x310] sm:$0xf] }
  0xf2   :  { %v793_v7 = vpop.permute.xlu1 %792  ;;  %2244 = vst.msk [vmem:[#allocation2 + $0x30] sm:$0xff] %vm2237_vm9, %v2154_v8 }
  0xf3   :  { %881 = vst.msk [vmem:[#allocation2 + $0x40] sm:$0xff] %vm872_vm2, %v793_v7  ;;  %1736 = vrot.lane.b32.xlu0 %v4405_v16, %s4910_s13  ;;  %v5963_v16 = vcombine.low %v342_v63, %v344_v5  ;;  %v5970_v7 = vld [vmem:[%s7346_s0 + $0x2d4] ss:$8 sps:$4 sm:$0xff]  }
  0xf4   :  { %1738 = vrot.lane.b32.xlu1 %v4406_v2, %s4910_s13  ;;  %v5961_v2 = vld [vmem:[%s7346_s0 + $0x2e4] ss:$8 sps:$4 sm:$0xff]   ;;  %612 = vst.msk [vmem:[#allocation2 + $0xe0] sm:$0xff] %vm583_vm0, %v5953_v6 }
  0xf5   :  { %v2156_v12 = vpop.permute.xlu0 %2155  ;;  %613 = vst.msk [vmem:[#allocation2 + $0xe8] sm:$0xff] %vm583_vm0, %v5963_v16 }
  0xf6   :  { %v795_v10 = vpop.permute.xlu1 %794  ;;  %2245 = vst.msk [vmem:[#allocation2 + $0x38] sm:$0xff] %vm2237_vm9, %v2156_v12 }
  0xf7   :  { %882 = vst.msk [vmem:[#allocation2 + $0x48] sm:$0xff] %vm872_vm2, %v795_v10  ;;  %1885 = vrot.lane.b32.xlu0 %v5399_v15, %s4911_s23  ;;  %v4914_v15 = vmov 0.0  }
  0xf8   :  { %1887 = vrot.lane.b32.xlu1 %v5410_v19, %s4911_s23  ;;  %33 = vst.msk [vmem:[#allocation5 + $0x10] sm:$0xff] %vm30_vm11, %v4914_v15  ;;  %35 = vst.msk [vmem:[#allocation5 + $0x20] sm:$0xff] %vm30_vm11, %v4914_v15  ;;  %4688 = vmatprep.subr.bf16.mxu0 %v4914_v15 }
  0xf9   :  { %v970_v24 = vpop.permute.xlu0 %969  ;;  %v2276_v18 = vld [vmem:[#allocation2 + $0x30] sm:$0xff]  ;;  %31 = vst.msk [vmem:[#allocation5] sm:$0xff] %vm30_vm11, %v4914_v15  ;;  %32 = vst.msk [vmem:[#allocation5 + $0x8] sm:$0xff] %vm30_vm11, %v4914_v15 }
  0xfa   :  { %v972_v19 = vpop.permute.xlu1 %971  ;;  %1058 = vst.msk [vmem:[#allocation2 + $0x40] sm:$0xff] %vm1049_vm3, %v970_v24  ;;  %4628 = vmatprep.mubr.msk.bf16.mxu0 %vm2338_vm10, %v2276_v18  ;;  %v346_v24 = vld [vmem:[%s7346_s0 + $0x410] sm:$0xf] }
  0xfb   :  { %1059 = vst.msk [vmem:[#allocation2 + $0x48] sm:$0xff] %vm1049_vm3, %v972_v19  ;;  %2034 = vrot.lane.b32.xlu0 %v5827_v23, %s4912_s14 }
  0xfc   :  { %2036 = vrot.lane.b32.xlu1 %v5817_v21, %s4912_s14  ;;  %34 = vst.msk [vmem:[#allocation5 + $0x18] sm:$0xff] %vm30_vm11, %v4914_v15  ;;  %36 = vst.msk [vmem:[#allocation5 + $0x28] sm:$0xff] %vm30_vm11, %v4914_v15 }
  0xfd   :  { %37 = vst.msk [vmem:[#allocation5 + $0x30] sm:$0xff] %vm30_vm11, %v4914_v15  ;;  %38 = vst.msk [vmem:[#allocation5 + $0x38] sm:$0xff] %vm30_vm11, %v4914_v15  ;;  %v1259_v32 = vpop.permute.xlu0 %1258  ;;  %v2277_v56 = vld [vmem:[#allocation2 + $0x38] sm:$0xff] }
  0xfe   :  { %39 = vst.msk [vmem:[#allocation5 + $0x40] sm:$0xff] %vm30_vm11, %v4914_v15  ;;  %53 = vst.msk [vmem:[#allocation5 + $0x50] sm:$0xff] %vm30_vm11, %v4914_v15  ;;  %v1261_v27 = vpop.permute.xlu1 %1260  ;;  %4629 = vmatmul.mubr.msk.bf16.gmra.mrb[12].mxu0 %vm2338_vm10, %v2277_v56  ;;  %v263_v56 = vld [vmem:[%s7346_s0 + $0x2b0] sm:$0xf] }
  0xff   :  { %54 = vst.msk [vmem:[#allocation5 + $0xa0] sm:$0xff] %vm30_vm11, %v4914_v15  ;;  %55 = vst.msk [vmem:[#allocation5 + $0xf0] sm:$0xff] %vm30_vm11, %v4914_v15  ;;  %2169 = vrot.lane.b32.xlu0 %v5434_v25, %s4913_s26 }
 0x100   :  { %56 = vst.msk [vmem:[#allocation5 + $0x140] sm:$0xff] %vm30_vm11, %v4914_v15  ;;  %57 = vst.msk [vmem:[#allocation5 + $0x190] sm:$0xff] %vm30_vm11, %v4914_v15  ;;  %808 = vrot.lane.b32.xlu1 %v5727_v33, %s4907_s20  ;;  %v257_v33 = vld [vmem:[%s7346_s0 + $0x298] sm:$0xf] }
 0x101   :  { %58 = vst.msk [vmem:[#allocation5 + $0x1e0] sm:$0xff] %vm30_vm11, %v4914_v15  ;;  %59 = vst.msk [vmem:[#allocation5 + $0x230] sm:$0xff] %vm30_vm11, %v4914_v15  ;;  %v1548_v57 = vpop.permute.xlu0 %1547  ;;  %v4344_v39 = vcombine.low %v257_v33, %v259_v13 }
 0x102   :  { %60 = vst.msk [vmem:[#allocation5 + $0x280] sm:$0xff] %vm30_vm11, %v4914_v15  ;;  %52 = vst.msk [vmem:[#allocation5] sm:$0xff] %vm30_vm11, %v4914_v15  ;;  %v1550_v35 = vpop.permute.xlu1 %1549 }
 0x103   :  { %1348 = vst.msk [vmem:[#allocation2 + $0x48] sm:$0xff] %vm1338_vm4, %v1261_v27  ;;  %1347 = vst.msk [vmem:[#allocation2 + $0x40] sm:$0xff] %vm1338_vm4, %v1259_v32  ;;  %2171 = vrot.lane.b32.xlu0 %v5890_v26, %s4913_s26  ;;  %v5996_v27 = vcombine.low %v344_v5, %v346_v24  ;;  %v6096_v5 = vcombine.low %v5601_v51, %v286_v4  ;;  %v293_v51 = vld [vmem:[%s7346_s0 + $0x330] sm:$0xf] }
 0x104   :  { %1637 = vst.msk [vmem:[#allocation2 + $0x48] sm:$0xff] %vm1627_vm5, %v1550_v35  ;;  %1636 = vst.msk [vmem:[#allocation2 + $0x40] sm:$0xff] %vm1627_vm5, %v1548_v57  ;;  %810 = vrot.lane.b32.xlu1 %v5718_v38, %s4907_s20  ;;  %v255_v38 = vld [vmem:[%s7346_s0 + $0x290] sm:$0xf] }
 0x105   :  { %v1725_v40 = vpop.permute.xlu0 %1724  ;;  %v4343_v48 = vcombine.low %v253_v54, %v255_v38  ;;  %v4407_v61 = vcombine.low %v255_v38, %v257_v33 }
 0x106   :  { %v1727_v34 = vpop.permute.xlu1 %1726  ;;  %1813 = vst.msk [vmem:[#allocation2 + $0x40] sm:$0xff] %vm1804_vm6, %v1725_v40 }
 0x107   :  { %1814 = vst.msk [vmem:[#allocation2 + $0x48] sm:$0xff] %vm1804_vm6, %v1727_v34  ;;  %985 = vrot.lane.b32.xlu0 %v5349_v46, %s4906_s17  ;;  %v5929_v46 = vld [vmem:[%s7346_s0 + $0x2a8] sm:$0xf]  ;;  %v4820_v34 = vld [vmem:[%s7346_s0 + $0x2bc] ss:$8 sps:$4 sm:$0xff]  }
 0x108   :  { %987 = vrot.lane.b32.xlu1 %v5357_v62, %s4906_s17  ;;  %v4814_v62 = vld [vmem:[%s7346_s0 + $0x28c] ss:$8 sps:$4 sm:$0xff]   ;;  %v4408_v55 = vcombine.low %v259_v13, %v5929_v46  ;;  %v4345_v57 = vcombine.low %v5929_v46, %v263_v56  ;;  %v350_v46 = vld [vmem:[%s7346_s0 + $0x420] sm:$0xf] }
 0x109   :  { %v1874_v50 = vpop.permute.xlu0 %1873 }
 0x10a   :  { %v1876_v30 = vpop.permute.xlu1 %1875  ;;  %1962 = vst.msk [vmem:[#allocation2 + $0x40] sm:$0xff] %vm1953_vm7, %v1874_v50 }
 0x10b   :  { %1963 = vst.msk [vmem:[#allocation2 + $0x48] sm:$0xff] %vm1953_vm7, %v1876_v30  ;;  %1274 = vrot.lane.b32.xlu0 %v4343_v48, %s4908_s18 }
 0x10c   :  { %1276 = vrot.lane.b32.xlu1 %v4344_v39, %s4908_s18 }
 0x10d   :  { %v2023_v53 = vpop.permute.xlu0 %2022 }
 0x10e   :  { %v2025_v29 = vpop.permute.xlu1 %2024  ;;  %2111 = vst.msk [vmem:[#allocation2 + $0x40] sm:$0xff] %vm2102_vm8, %v2023_v53 }
 0x10f   :  { %2112 = vst.msk [vmem:[#allocation2 + $0x48] sm:$0xff] %vm2102_vm8, %v2025_v29  ;;  %1563 = vrot.lane.b32.xlu0 %v4814_v62, %s4909_s24  ;;  %v6050_v29 = vld [vmem:[%s7346_s0 + $0x428] sm:$0xf] }
 0x110   :  { %1565 = vrot.lane.b32.xlu1 %v4813_v49, %s4909_s24  ;;  %v348_v49 = vld [vmem:[%s7346_s0 + $0x418] sm:$0xf] }
 0x111   :  { %v2158_v0 = vpop.permute.xlu0 %2157  ;;  %v6052_v53 = vcombine.low %v346_v24, %v348_v49  ;;  %v6087_v63 = vcombine.low %v348_v49, %v350_v46 }
 0x112   :  { %v797_v44 = vpop.permute.xlu1 %796  ;;  %2246 = vst.msk [vmem:[#allocation2 + $0x40] sm:$0xff] %vm2237_vm9, %v2158_v0 }
 0x113   :  { %883 = vst.msk [vmem:[#allocation2 + $0x50] sm:$0xff] %vm872_vm2, %v797_v44  ;;  %1740 = vrot.lane.b32.xlu0 %v4407_v61, %s4910_s13  ;;  %v6063_v61 = vcombine.low %v350_v46, %v6050_v29  ;;  %v6070_v44 = vld [vmem:[%s7346_s0 + $0x2f4] ss:$8 sps:$4 sm:$0xff]  }
 0x114   :  { %1742 = vrot.lane.b32.xlu1 %v4408_v55, %s4910_s13  ;;  %v6060_v55 = vld [vmem:[%s7346_s0 + $0x304] ss:$8 sps:$4 sm:$0xff]   ;;  %614 = vst.msk [vmem:[#allocation2 + $0xf0] sm:$0xff] %vm583_vm0, %v6052_v53 }
 0x115   :  { %v2160_v36 = vpop.permute.xlu0 %2159  ;;  %615 = vst.msk [vmem:[#allocation2 + $0xf8] sm:$0xff] %vm583_vm0, %v6063_v61  ;;  %vm3334_vm0 = vcmask 786048  }
 0x116   :  { %v799_v14 = vpop.permute.xlu1 %798  ;;  %2247 = vst.msk [vmem:[#allocation2 + $0x48] sm:$0xff] %vm2237_vm9, %v2160_v36 }
 0x117   :  { %884 = vst.msk [vmem:[#allocation2 + $0x58] sm:$0xff] %vm872_vm2, %v799_v14  ;;  %1889 = vrot.lane.b32.xlu0 %v5504_v1, %s4911_s23 }
 0x118   :  { %1891 = vrot.lane.b32.xlu1 %v5514_v3, %s4911_s23 }
 0x119   :  { %v974_v3 = vpop.permute.xlu0 %973  ;;  %v2278_v10 = vld [vmem:[#allocation2 + $0x40] sm:$0xff] }
 0x11a   :  { %v976_v8 = vpop.permute.xlu1 %975  ;;  %1060 = vst.msk [vmem:[#allocation2 + $0x50] sm:$0xff] %vm1049_vm3, %v974_v3  ;;  %4632 = vmatprep.mubr.msk.bf16.mxu0 %vm2338_vm10, %v2278_v10 }
 0x11b   :  { %1061 = vst.msk [vmem:[#allocation2 + $0x58] sm:$0xff] %vm1049_vm3, %v976_v8  ;;  %2038 = vrot.lane.b32.xlu0 %v5970_v7, %s4912_s14 }
 0x11c   :  { %2040 = vrot.lane.b32.xlu1 %v5961_v2, %s4912_s14 }
 0x11d   :  { %v1263_v11 = vpop.permute.xlu0 %1262  ;;  %v2279_v12 = vld [vmem:[#allocation2 + $0x48] sm:$0xff] }
 0x11e   :  { %v1265_v1 = vpop.permute.xlu1 %1264  ;;  %1349 = vst.msk [vmem:[#allocation2 + $0x50] sm:$0xff] %vm1338_vm4, %v1263_v11  ;;  %4633 = vmatmul.mubr.msk.bf16.gmra.mrb[16].mxu0 %vm2338_vm10, %v2279_v12 }
 0x11f   :  { %1350 = vst.msk [vmem:[#allocation2 + $0x58] sm:$0xff] %vm1338_vm4, %v1265_v1  ;;  %2173 = vrot.lane.b32.xlu0 %v5535_v9, %s4913_s26  ;;  %v287_v1 = vld [vmem:[%s7346_s0 + $0x318] sm:$0xf] }
 0x120   :  { %812 = vrot.lane.b32.xlu1 %v5827_v23, %s4907_s20  ;;  %v265_v23 = vld [vmem:[%s7346_s0 + $0x2b8] sm:$0xf] }
 0x121   :  { %v1552_v18 = vpop.permute.xlu0 %1551  ;;  %v4409_v39 = vcombine.low %v263_v56, %v265_v23 }
 0x122   :  { %v1554_v19 = vpop.permute.xlu1 %1553  ;;  %1638 = vst.msk [vmem:[#allocation2 + $0x50] sm:$0xff] %vm1627_vm5, %v1552_v18 }
 0x123   :  { %1639 = vst.msk [vmem:[#allocation2 + $0x58] sm:$0xff] %vm1627_vm5, %v1554_v19  ;;  %2175 = vrot.lane.b32.xlu0 %v5547_v58, %s4913_s26 }
 0x124   :  { %814 = vrot.lane.b32.xlu1 %v5817_v21, %s4907_s20  ;;  %v4346_v21 = vcombine.low %v265_v23, %v267_v31  ;;  %v4827_v23 = vld [vmem:[%s7346_s0 + $0x32c] ss:$8 sps:$4 sm:$0xff]  }
 0x125   :  { %v1729_v35 = vpop.permute.xlu0 %1728 }
 0x126   :  { %v1731_v32 = vpop.permute.xlu1 %1730  ;;  %1815 = vst.msk [vmem:[#allocation2 + $0x50] sm:$0xff] %vm1804_vm6, %v1729_v35 }
 0x127   :  { %1816 = vst.msk [vmem:[#allocation2 + $0x58] sm:$0xff] %vm1804_vm6, %v1731_v32  ;;  %989 = vrot.lane.b32.xlu0 %v5434_v25, %s4906_s17  ;;  %v4821_v25 = vld [vmem:[%s7346_s0 + $0x2ac] ss:$8 sps:$4 sm:$0xff]  }
 0x128   :  { %991 = vrot.lane.b32.xlu1 %v5890_v26, %s4906_s17  ;;  %v269_v26 = vld [vmem:[%s7346_s0 + $0x2c8] sm:$0xf] }
 0x129   :  { %v1878_v13 = vpop.permute.xlu0 %1877  ;;  %v4410_v40 = vcombine.low %v267_v31, %v269_v26 }
 0x12a   :  { %v1880_v33 = vpop.permute.xlu1 %1879  ;;  %1964 = vst.msk [vmem:[#allocation2 + $0x50] sm:$0xff] %vm1953_vm7, %v1878_v13 }
 0x12b   :  { %1965 = vst.msk [vmem:[#allocation2 + $0x58] sm:$0xff] %vm1953_vm7, %v1880_v33  ;;  %1278 = vrot.lane.b32.xlu0 %v4345_v57, %s4908_s18 }
 0x12c   :  { %1280 = vrot.lane.b32.xlu1 %v4346_v21, %s4908_s18 }
 0x12d   :  { %v2027_v38 = vpop.permute.xlu0 %2026 }
 0x12e   :  { %v2029_v54 = vpop.permute.xlu1 %2028  ;;  %2113 = vst.msk [vmem:[#allocation2 + $0x50] sm:$0xff] %vm2102_vm8, %v2027_v38 }
 0x12f   :  { %2114 = vst.msk [vmem:[#allocation2 + $0x58] sm:$0xff] %vm2102_vm8, %v2029_v54  ;;  %1567 = vrot.lane.b32.xlu0 %v4821_v25, %s4909_s24  ;;  %v6157_v25 = vld [vmem:[%s7346_s0 + $0x364] ss:$8 sps:$4 sm:$0xff]  }
 0x130   :  { %1569 = vrot.lane.b32.xlu1 %v4820_v34, %s4909_s24  ;;  %v6150_v34 = vld [vmem:[%s7346_s0 + $0x374] ss:$8 sps:$4 sm:$0xff]  }
 0x131   :  { %v2162_v30 = vpop.permute.xlu0 %2161 }
 0x132   :  { %v801_v48 = vpop.permute.xlu1 %800  ;;  %2248 = vst.msk [vmem:[#allocation2 + $0x50] sm:$0xff] %vm2237_vm9, %v2162_v30  ;;  %v299_v30 = vld [vmem:[%s7346_s0 + $0x348] sm:$0xf] }
 0x133   :  { %885 = vst.msk [vmem:[#allocation2 + $0x60] sm:$0xff] %vm872_vm2, %v801_v48  ;;  %1744 = vrot.lane.b32.xlu0 %v4409_v39, %s4910_s13 }
 0x134   :  { %1746 = vrot.lane.b32.xlu1 %v4410_v40, %s4910_s13 }
 0x135   :  { %v2164_v62 = vpop.permute.xlu0 %2163 }
 0x136   :  { %v803_v50 = vpop.permute.xlu1 %802  ;;  %2249 = vst.msk [vmem:[#allocation2 + $0x58] sm:$0xff] %vm2237_vm9, %v2164_v62  ;;  %v297_v62 = vld [vmem:[%s7346_s0 + $0x340] sm:$0xf] }
 0x137   :  { %886 = vst.msk [vmem:[#allocation2 + $0x68] sm:$0xff] %vm872_vm2, %v803_v50  ;;  %1893 = vrot.lane.b32.xlu0 %v5603_v43, %s4911_s23  ;;  %v301_v50 = vld [vmem:[%s7346_s0 + $0x350] sm:$0xf] }
 0x138   :  { %1895 = vrot.lane.b32.xlu1 %v5614_v45, %s4911_s23 }
 0x139   :  { %v978_v0 = vpop.permute.xlu0 %977  ;;  %v2280_v14 = vld [vmem:[#allocation2 + $0x50] sm:$0xff] }
 0x13a   :  { %v980_v45 = vpop.permute.xlu1 %979  ;;  %1062 = vst.msk [vmem:[#allocation2 + $0x60] sm:$0xff] %vm1049_vm3, %v978_v0  ;;  %4636 = vmatprep.mubr.msk.bf16.mxu0 %vm2338_vm10, %v2280_v14  ;;  %v4834_v14 = vld [vmem:[%s7346_s0 + $0x34c] ss:$8 sps:$4 sm:$0xff]  }
 0x13b   :  { %1063 = vst.msk [vmem:[#allocation2 + $0x68] sm:$0xff] %vm1049_vm3, %v980_v45  ;;  %2042 = vrot.lane.b32.xlu0 %v6070_v44, %s4912_s14 }
 0x13c   :  { %2044 = vrot.lane.b32.xlu1 %v6060_v55, %s4912_s14 }
 0x13d   :  { %v1267_v28 = vpop.permute.xlu0 %1266  ;;  %v2281_v36 = vld [vmem:[#allocation2 + $0x58] sm:$0xff] }
 0x13e   :  { %v1269_v43 = vpop.permute.xlu1 %1268  ;;  %1351 = vst.msk [vmem:[#allocation2 + $0x60] sm:$0xff] %vm1338_vm4, %v1267_v28  ;;  %4637 = vmatmul.mubr.msk.bf16.gmra.mrb[20].mxu0 %vm2338_vm10, %v2281_v36 }
 0x13f   :  { %1352 = vst.msk [vmem:[#allocation2 + $0x68] sm:$0xff] %vm1338_vm4, %v1269_v43  ;;  %2177 = vrot.lane.b32.xlu0 %v5638_v47, %s4913_s26  ;;  %v4835_v43 = vld [vmem:[%s7346_s0 + $0x33c] ss:$8 sps:$4 sm:$0xff]  }
 0x140   :  { %816 = vrot.lane.b32.xlu1 %v5970_v7, %s4907_s20  ;;  %v291_v7 = vld [vmem:[%s7346_s0 + $0x328] sm:$0xf] }
 0x141   :  { %v1556_v3 = vpop.permute.xlu0 %1555  ;;  %v4348_v12 = vcombine.low %v291_v7, %v293_v51 }
 0x142   :  { %v1558_v8 = vpop.permute.xlu1 %1557  ;;  %1640 = vst.msk [vmem:[#allocation2 + $0x60] sm:$0xff] %vm1627_vm5, %v1556_v3 }
 0x143   :  { %1641 = vst.msk [vmem:[#allocation2 + $0x68] sm:$0xff] %vm1627_vm5, %v1558_v8  ;;  %2179 = vrot.lane.b32.xlu0 %v6096_v5, %s4913_s26  ;;  %v4413_v8 = vcombine.low %v297_v62, %v299_v30 }
 0x144   :  { %818 = vrot.lane.b32.xlu1 %v5961_v2, %s4907_s20  ;;  %v289_v2 = vld [vmem:[%s7346_s0 + $0x320] sm:$0xf] }
 0x145   :  { %v1733_v11 = vpop.permute.xlu0 %1732  ;;  %v4347_v19 = vcombine.low %v287_v1, %v289_v2  ;;  %v4411_v35 = vcombine.low %v289_v2, %v291_v7 }
 0x146   :  { %v1735_v10 = vpop.permute.xlu1 %1734  ;;  %1817 = vst.msk [vmem:[#allocation2 + $0x60] sm:$0xff] %vm1804_vm6, %v1733_v11 }
 0x147   :  { %1818 = vst.msk [vmem:[#allocation2 + $0x68] sm:$0xff] %vm1804_vm6, %v1735_v10  ;;  %993 = vrot.lane.b32.xlu0 %v5535_v9, %s4906_s17  ;;  %v295_v9 = vld [vmem:[%s7346_s0 + $0x338] sm:$0xf] }
 0x148   :  { %995 = vrot.lane.b32.xlu1 %v5547_v58, %s4906_s17  ;;  %v4828_v58 = vld [vmem:[%s7346_s0 + $0x31c] ss:$8 sps:$4 sm:$0xff]   ;;  %v4412_v56 = vcombine.low %v293_v51, %v295_v9  ;;  %v6220_v51 = vld [vmem:[%s7349_s5] ss:$0 sm:$0xff] }
 0x149   :  { %v1882_v18 = vpop.permute.xlu0 %1881 }
 0x14a   :  { %v1884_v24 = vpop.permute.xlu1 %1883  ;;  %1966 = vst.msk [vmem:[#allocation2 + $0x60] sm:$0xff] %vm1953_vm7, %v1882_v18 }
 0x14b   :  { %1967 = vst.msk [vmem:[#allocation2 + $0x68] sm:$0xff] %vm1953_vm7, %v1884_v24  ;;  %1282 = vrot.lane.b32.xlu0 %v4347_v19, %s4908_s18 }
 0x14c   :  { %1284 = vrot.lane.b32.xlu1 %v4348_v12, %s4908_s18 }
 0x14d   :  { %v2031_v32 = vpop.permute.xlu0 %2030 }
 0x14e   :  { %v2033_v31 = vpop.permute.xlu1 %2032  ;;  %2115 = vst.msk [vmem:[#allocation2 + $0x60] sm:$0xff] %vm2102_vm8, %v2031_v32 }
 0x14f   :  { %2116 = vst.msk [vmem:[#allocation2 + $0x68] sm:$0xff] %vm2102_vm8, %v2033_v31  ;;  %1571 = vrot.lane.b32.xlu0 %v4828_v58, %s4909_s24 }
 0x150   :  { %1573 = vrot.lane.b32.xlu1 %v4827_v23, %s4909_s24 }
 0x151   :  { %v2166_v57 = vpop.permute.xlu0 %2165 }
 0x152   :  { %v805_v21 = vpop.permute.xlu1 %804  ;;  %2250 = vst.msk [vmem:[#allocation2 + $0x60] sm:$0xff] %vm2237_vm9, %v2166_v57 }
 0x153   :  { %887 = vst.msk [vmem:[#allocation2 + $0x70] sm:$0xff] %vm872_vm2, %v805_v21  ;;  %1748 = vrot.lane.b32.xlu0 %v4411_v35, %s4910_s13  ;;  %v6239_v35 = vld [vmem:[%s7346_s0 + $0x394] ss:$8 sps:$4 sm:$0xff]  }
 0x154   :  { %1750 = vrot.lane.b32.xlu1 %v4412_v56, %s4910_s13 }
 0x155   :  { %v2168_v13 = vpop.permute.xlu0 %2167 }
 0x156   :  { %v807_v33 = vpop.permute.xlu1 %806  ;;  %2251 = vst.msk [vmem:[#allocation2 + $0x68] sm:$0xff] %vm2237_vm9, %v2168_v13 }
 0x157   :  { %888 = vst.msk [vmem:[#allocation2 + $0x78] sm:$0xff] %vm872_vm2, %v807_v33  ;;  %1897 = vrot.lane.b32.xlu0 %v5710_v37, %s4911_s23  ;;  %v6247_v33 = vld [vmem:[%s7346_s0 + $0x384] ss:$8 sps:$4 sm:$0xff]  }
 0x158   :  { %1899 = vrot.lane.b32.xlu1 %v5720_v41, %s4911_s23 }
 0x159   :  { %v982_v54 = vpop.permute.xlu0 %981  ;;  %v2282_v38 = vld [vmem:[#allocation2 + $0x60] sm:$0xff] }
 0x15a   :  { %v984_v26 = vpop.permute.xlu1 %983  ;;  %1064 = vst.msk [vmem:[#allocation2 + $0x70] sm:$0xff] %vm1049_vm3, %v982_v54  ;;  %4640 = vmatprep.mubr.msk.bf16.mxu0 %vm2338_vm10, %v2282_v38 }
 0x15b   :  { %1065 = vst.msk [vmem:[#allocation2 + $0x78] sm:$0xff] %vm1049_vm3, %v984_v26  ;;  %2046 = vrot.lane.b32.xlu0 %v6157_v25, %s4912_s14 }
 0x15c   :  { %2048 = vrot.lane.b32.xlu1 %v6150_v34, %s4912_s14 }
 0x15d   :  { %v1271_v41 = vpop.permute.xlu0 %1270  ;;  %v2283_v40 = vld [vmem:[#allocation2 + $0x68] sm:$0xff] }
 0x15e   :  { %v1273_v37 = vpop.permute.xlu1 %1272  ;;  %1353 = vst.msk [vmem:[#allocation2 + $0x70] sm:$0xff] %vm1338_vm4, %v1271_v41  ;;  %4641 = vmatmul.mubr.msk.bf16.gmra.mrb[24].mxu0 %vm2338_vm10, %v2283_v40 }
 0x15f   :  { %1354 = vst.msk [vmem:[#allocation2 + $0x78] sm:$0xff] %vm1338_vm4, %v1273_v37  ;;  %2181 = vrot.lane.b32.xlu0 %v5741_v42, %s4913_s26  ;;  %v320_v37 = vld [vmem:[%s7346_s0 + $0x3a0] sm:$0xf] }
 0x160   :  { %820 = vrot.lane.b32.xlu1 %v6070_v44, %s4907_s20  ;;  %v4349_v44 = vcombine.low %v295_v9, %v297_v62 }
 0x161   :  { %v1560_v48 = vpop.permute.xlu0 %1559 }
 0x162   :  { %v1562_v39 = vpop.permute.xlu1 %1561  ;;  %1642 = vst.msk [vmem:[#allocation2 + $0x70] sm:$0xff] %vm1627_vm5, %v1560_v48 }
 0x163   :  { %1643 = vst.msk [vmem:[#allocation2 + $0x78] sm:$0xff] %vm1627_vm5, %v1562_v39  ;;  %2183 = vrot.lane.b32.xlu0 %v5753_v52, %s4913_s26  ;;  %v6271_v39 = vcombine.low %v5807_v17, %v320_v37  ;;  %v327_v17 = vld [vmem:[%s7346_s0 + $0x3c0] sm:$0xf] }
 0x164   :  { %822 = vrot.lane.b32.xlu1 %v6060_v55, %s4907_s20  ;;  %v4350_v55 = vcombine.low %v299_v30, %v301_v50 }
 0x165   :  { %v1737_v46 = vpop.permute.xlu0 %1736 }
 0x166   :  { %v1739_v49 = vpop.permute.xlu1 %1738  ;;  %1819 = vst.msk [vmem:[#allocation2 + $0x70] sm:$0xff] %vm1804_vm6, %v1737_v46 }
 0x167   :  { %1820 = vst.msk [vmem:[#allocation2 + $0x78] sm:$0xff] %vm1804_vm6, %v1739_v49  ;;  %997 = vrot.lane.b32.xlu0 %v5638_v47, %s4906_s17  ;;  %v303_v47 = vld [vmem:[%s7346_s0 + $0x358] sm:$0xf]  ;;  %v321_v49 = vld [vmem:[%s7346_s0 + $0x3a8] sm:$0xf] }
 0x168   :  { %999 = vrot.lane.b32.xlu1 %v6096_v5, %s4906_s17  ;;  %v4414_v36 = vcombine.low %v301_v50, %v303_v47  ;;  %v6214_v5 = vld [vmem:[%s7348_s4] ss:$0 sm:$0xff] }
 0x169   :  { %v1886_v0 = vpop.permute.xlu0 %1885 }
 0x16a   :  { %v1888_v45 = vpop.permute.xlu1 %1887  ;;  %1968 = vst.msk [vmem:[#allocation2 + $0x70] sm:$0xff] %vm1953_vm7, %v1886_v0  ;;  %v4841_v0 = vld [vmem:[%s7346_s0 + $0x3bc] ss:$8 sps:$4 sm:$0xff]  }
 0x16b   :  { %1969 = vst.msk [vmem:[#allocation2 + $0x78] sm:$0xff] %vm1953_vm7, %v1888_v45  ;;  %1286 = vrot.lane.b32.xlu0 %v4349_v44, %s4908_s18 }
 0x16c   :  { %1288 = vrot.lane.b32.xlu1 %v4350_v55, %s4908_s18 }
 0x16d   :  { %v2035_v28 = vpop.permute.xlu0 %2034 }
 0x16e   :  { %v2037_v4 = vpop.permute.xlu1 %2036  ;;  %2117 = vst.msk [vmem:[#allocation2 + $0x70] sm:$0xff] %vm2102_vm8, %v2035_v28 }
 0x16f   :  { %2118 = vst.msk [vmem:[#allocation2 + $0x78] sm:$0xff] %vm2102_vm8, %v2037_v4  ;;  %1575 = vrot.lane.b32.xlu0 %v4835_v43, %s4909_s24 }
 0x170   :  { %1577 = vrot.lane.b32.xlu1 %v4834_v14, %s4909_s24 }
 0x171   :  { %v2170_v7 = vpop.permute.xlu0 %2169  ;;  %v4618_v10 = vpop.f32.mrb[0].mxu0 }
 0x172   :  { %v809_v3 = vpop.permute.xlu1 %808  ;;  %2252 = vst.msk [vmem:[#allocation2 + $0x70] sm:$0xff] %vm2237_vm9, %v2170_v7  ;;  %v2736_v1 = vmul.f32 %v4618_v10, %v6214_v5  ;;  %v2473_v2 = vpop.f32.mrb[1].mxu0 }
 0x173   :  { %889 = vst.msk [vmem:[#allocation2 + $0x80] sm:$0xff] %vm872_vm2, %v809_v3  ;;  %v2734_v11 = vmul.f32 %v6214_v5, %v2473_v2  ;;  %1752 = vrot.lane.b32.xlu0 %v4413_v8, %s4910_s13  ;;  %v4619_v12 = vpop.f32.mrb[2].mxu0 }
 0x174   :  { %1754 = vrot.lane.b32.xlu1 %v4414_v36, %s4910_s13  ;;  %v2806_v19 = vadd.f32 %v6220_v51, %v2736_v1  ;;  %v2737_v24 = vmul.f32 %v4619_v12, %v6214_v5  ;;  %v2476_v18 = vpop.f32.mrb[3].mxu0 }
 0x175   :  { %v2804_v58 = vadd.f32 %v6220_v51, %v2734_v11  ;;  %v2735_v9 = vmul.f32 %v6214_v5, %v2476_v18  ;;  %v2172_v31 = vpop.permute.xlu0 %2171 }
 0x176   :  { %v811_v23 = vpop.permute.xlu1 %810  ;;  %v2870_v32 = vmax.f32 %v2806_v19, 0.0  ;;  %v2807_v56 = vadd.f32 %v6220_v51, %v2737_v24  ;;  %2253 = vst.msk [vmem:[#allocation2 + $0x78] sm:$0xff] %vm2237_vm9, %v2172_v31  ;;  %v6335_v31 = vld [vmem:[%s7346_s0 + $0x404] ss:$8 sps:$4 sm:$0xff]  }
 0x177   :  { %890 = vst.msk [vmem:[#allocation2 + $0x88] sm:$0xff] %vm872_vm2, %v811_v23  ;;  %v2868_v21 = vmax.f32 %v2804_v58, 0.0  ;;  %v2805_v57 = vadd.f32 %v6220_v51, %v2735_v9  ;;  %1901 = vrot.lane.b32.xlu0 %v5809_v20, %s4911_s23 }
 0x178   :  { %1903 = vrot.lane.b32.xlu1 %v5820_v59, %s4911_s23  ;;  %2935 = vst.msk [vmem:[#allocation5 + $0x68] sm:$0xff] %vm30_vm11, %v2870_v32  ;;  %v2871_v13 = vmax.f32 %v2807_v56, 0.0 }
 0x179   :  { %2933 = vst.msk [vmem:[#allocation5 + $0x58] sm:$0xff] %vm30_vm11, %v2868_v21  ;;  %v2869_v26 = vmax.f32 %v2805_v57, 0.0  ;;  %v986_v54 = vpop.permute.xlu0 %985  ;;  %v2284_v38 = vld [vmem:[#allocation2 + $0x70] sm:$0xff] }
 0x17a   :  { %v988_v59 = vpop.permute.xlu1 %987  ;;  %2936 = vst.msk [vmem:[#allocation5 + $0x70] sm:$0xff] %vm30_vm11, %v2871_v13  ;;  %4644 = vmatprep.mubr.msk.bf16.mxu0 %vm2338_vm10, %v2284_v38  ;;  %v6343_v21 = vld [vmem:[%s7346_s0 + $0x3f4] ss:$8 sps:$4 sm:$0xff]  }
 0x17b   :  { %1067 = vst.msk [vmem:[#allocation2 + $0x88] sm:$0xff] %vm1049_vm3, %v988_v59  ;;  %1066 = vst.msk [vmem:[#allocation2 + $0x80] sm:$0xff] %vm1049_vm3, %v986_v54  ;;  %2050 = vrot.lane.b32.xlu0 %v6247_v33, %s4912_s14 }
 0x17c   :  { %2052 = vrot.lane.b32.xlu1 %v6239_v35, %s4912_s14  ;;  %2934 = vst.msk [vmem:[#allocation5 + $0x60] sm:$0xff] %vm30_vm11, %v2869_v26 }
 0x17d   :  { %v1275_v41 = vpop.permute.xlu0 %1274  ;;  %v2285_v40 = vld [vmem:[#allocation2 + $0x78] sm:$0xff] }
 0x17e   :  { %v1277_v20 = vpop.permute.xlu1 %1276  ;;  %1355 = vst.msk [vmem:[#allocation2 + $0x80] sm:$0xff] %vm1338_vm4, %v1275_v41  ;;  %4645 = vmatmul.mubr.msk.bf16.gmra.mrb[28].mxu0 %vm2338_vm10, %v2285_v40  ;;  %v333_v41 = vld [vmem:[%s7346_s0 + $0x3d8] sm:$0xf] }
 0x17f   :  { %1356 = vst.msk [vmem:[#allocation2 + $0x88] sm:$0xff] %vm1338_vm4, %v1277_v20  ;;  %2185 = vrot.lane.b32.xlu0 %v5881_v60, %s4913_s26 }
 0x180   :  { %824 = vrot.lane.b32.xlu1 %v6157_v25, %s4907_s20  ;;  %v325_v25 = vld [vmem:[%s7346_s0 + $0x3b8] sm:$0xf] }
 0x181   :  { %v1564_v30 = vpop.permute.xlu0 %1563  ;;  %v4352_v46 = vcombine.low %v325_v25, %v327_v17 }
 0x182   :  { %v1566_v48 = vpop.permute.xlu1 %1565  ;;  %1644 = vst.msk [vmem:[#allocation2 + $0x80] sm:$0xff] %vm1627_vm5, %v1564_v30 }
 0x183   :  { %1645 = vst.msk [vmem:[#allocation2 + $0x88] sm:$0xff] %vm1627_vm5, %v1566_v48  ;;  %2187 = vrot.lane.b32.xlu0 %v6271_v39, %s4913_s26  ;;  %v331_v48 = vld [vmem:[%s7346_s0 + $0x3d0] sm:$0xf] }
 0x184   :  { %826 = vrot.lane.b32.xlu1 %v6150_v34, %s4907_s20  ;;  %v323_v34 = vld [vmem:[%s7346_s0 + $0x3b0] sm:$0xf] }
 0x185   :  { %v1741_v62 = vpop.permute.xlu0 %1740  ;;  %v4351_v55 = vcombine.low %v321_v49, %v323_v34  ;;  %v4415_v4 = vcombine.low %v323_v34, %v325_v25  ;;  %v4848_v49 = vld [vmem:[%s7346_s0 + $0x3dc] ss:$8 sps:$4 sm:$0xff]  }
 0x186   :  { %v1743_v50 = vpop.permute.xlu1 %1742  ;;  %1821 = vst.msk [vmem:[#allocation2 + $0x80] sm:$0xff] %vm1804_vm6, %v1741_v62 }
 0x187   :  { %1822 = vst.msk [vmem:[#allocation2 + $0x88] sm:$0xff] %vm1804_vm6, %v1743_v50  ;;  %1001 = vrot.lane.b32.xlu0 %v5741_v42, %s4906_s17  ;;  %v6310_v42 = vld [vmem:[%s7346_s0 + $0x3c8] sm:$0xf] }
 0x188   :  { %1003 = vrot.lane.b32.xlu1 %v5753_v52, %s4906_s17  ;;  %v4842_v52 = vld [vmem:[%s7346_s0 + $0x3ac] ss:$8 sps:$4 sm:$0xff]   ;;  %v4416_v47 = vcombine.low %v327_v17, %v6310_v42  ;;  %v4353_v25 = vcombine.low %v6310_v42, %v331_v48 }
 0x189   :  { %v1890_v45 = vpop.permute.xlu0 %1889 }
 0x18a   :  { %v1892_v44 = vpop.permute.xlu1 %1891  ;;  %1970 = vst.msk [vmem:[#allocation2 + $0x80] sm:$0xff] %vm1953_vm7, %v1890_v45 }
 0x18b   :  { %1971 = vst.msk [vmem:[#allocation2 + $0x88] sm:$0xff] %vm1953_vm7, %v1892_v44  ;;  %1290 = vrot.lane.b32.xlu0 %v4351_v55, %s4908_s18  ;;  %v4417_v55 = vcombine.low %v331_v48, %v333_v41 }
 0x18c   :  { %1292 = vrot.lane.b32.xlu1 %v4352_v46, %s4908_s18 }
 0x18d   :  { %v2039_v43 = vpop.permute.xlu0 %2038 }
 0x18e   :  { %v2041_v14 = vpop.permute.xlu1 %2040  ;;  %2119 = vst.msk [vmem:[#allocation2 + $0x80] sm:$0xff] %vm2102_vm8, %v2039_v43 }
 0x18f   :  { %2120 = vst.msk [vmem:[#allocation2 + $0x88] sm:$0xff] %vm2102_vm8, %v2041_v14  ;;  %1579 = vrot.lane.b32.xlu0 %v4842_v52, %s4909_s24 }
 0x190   :  { %1581 = vrot.lane.b32.xlu1 %v4841_v0, %s4909_s24 }
 0x191   :  { %v2174_v36 = vpop.permute.xlu0 %2173  ;;  %v4622_v8 = vpop.f32.mrb[4].mxu0 }
 0x192   :  { %v813_v28 = vpop.permute.xlu1 %812  ;;  %2254 = vst.msk [vmem:[#allocation2 + $0x80] sm:$0xff] %vm2237_vm9, %v2174_v36  ;;  %v2740_v3 = vmul.f32 %v4622_v8, %v6214_v5  ;;  %v2489_v7 = vpop.f32.mrb[5].mxu0 }
 0x193   :  { %891 = vst.msk [vmem:[#allocation2 + $0x90] sm:$0xff] %vm872_vm2, %v813_v28  ;;  %v2738_v10 = vmul.f32 %v6214_v5, %v2489_v7  ;;  %1756 = vrot.lane.b32.xlu0 %v4415_v4, %s4910_s13  ;;  %v4623_v1 = vpop.f32.mrb[6].mxu0 }
 0x194   :  { %1758 = vrot.lane.b32.xlu1 %v4416_v47, %s4910_s13  ;;  %v2810_v2 = vadd.f32 %v6220_v51, %v2740_v3  ;;  %v2741_v11 = vmul.f32 %v4623_v1, %v6214_v5  ;;  %v2492_v12 = vpop.f32.mrb[7].mxu0 }
 0x195   :  { %v2808_v24 = vadd.f32 %v6220_v51, %v2738_v10  ;;  %v2739_v18 = vmul.f32 %v6214_v5, %v2492_v12  ;;  %v2176_v23 = vpop.permute.xlu0 %2175 }
 0x196   :  { %v815_v19 = vpop.permute.xlu1 %814  ;;  %v2874_v58 = vmax.f32 %v2810_v2, 0.0  ;;  %v2811_v9 = vadd.f32 %v6220_v51, %v2741_v11  ;;  %2255 = vst.msk [vmem:[#allocation2 + $0x88] sm:$0xff] %vm2237_vm9, %v2176_v23  ;;  %v6420_v2 = vld [vmem:[%s7346_s0 + $0x424] ss:$8 sps:$4 sm:$0xff]  }
 0x197   :  { %892 = vst.msk [vmem:[#allocation2 + $0x98] sm:$0xff] %vm872_vm2, %v815_v19  ;;  %v2872_v32 = vmax.f32 %v2808_v24, 0.0  ;;  %v2809_v56 = vadd.f32 %v6220_v51, %v2739_v18  ;;  %1905 = vrot.lane.b32.xlu0 %v5953_v6, %s4911_s23  ;;  %v6428_v19 = vld [vmem:[%s7346_s0 + $0x414] ss:$8 sps:$4 sm:$0xff]  }
 0x198   :  { %1907 = vrot.lane.b32.xlu1 %v5963_v16, %s4911_s23  ;;  %2939 = vst.msk [vmem:[#allocation5 + $0x88] sm:$0xff] %vm30_vm11, %v2874_v58  ;;  %v2875_v57 = vmax.f32 %v2811_v9, 0.0  ;;  %v354_v9 = vld [vmem:[%s7346_s0 + $0x430] sm:$0xf] }
 0x199   :  { %2937 = vst.msk [vmem:[#allocation5 + $0x78] sm:$0xff] %vm30_vm11, %v2872_v32  ;;  %v2873_v13 = vmax.f32 %v2809_v56, 0.0  ;;  %v990_v59 = vpop.permute.xlu0 %989  ;;  %v2286_v26 = vld [vmem:[#allocation2 + $0x80] sm:$0xff] }
 0x19a   :  { %v992_v16 = vpop.permute.xlu1 %991  ;;  %2940 = vst.msk [vmem:[#allocation5 + $0x90] sm:$0xff] %vm30_vm11, %v2875_v57  ;;  %4648 = vmatprep.mubr.msk.bf16.mxu0 %vm2338_vm10, %v2286_v26  ;;  %v6452_v57 = vcombine.low %v6050_v29, %v354_v9  ;;  %v359_v29 = vld [vmem:[%s7346_s0 + $0x448] sm:$0xf] }
 0x19b   :  { %1069 = vst.msk [vmem:[#allocation2 + $0x98] sm:$0xff] %vm1049_vm3, %v992_v16  ;;  %1068 = vst.msk [vmem:[#allocation2 + $0x90] sm:$0xff] %vm1049_vm3, %v990_v59  ;;  %2054 = vrot.lane.b32.xlu0 %v6343_v21, %s4912_s14 }
 0x19c   :  { %2056 = vrot.lane.b32.xlu1 %v6335_v31, %s4912_s14  ;;  %2938 = vst.msk [vmem:[#allocation5 + $0x80] sm:$0xff] %vm30_vm11, %v2873_v13  ;;  %v3015_v13 = vld [vmem:[#allocation5 + $0xa0] sm:$0xff] }
 0x19d   :  { %v1279_v54 = vpop.permute.xlu0 %1278  ;;  %v2287_v38 = vld [vmem:[#allocation2 + $0x88] sm:$0xff] }
 0x19e   :  { %v1281_v6 = vpop.permute.xlu1 %1280  ;;  %1357 = vst.msk [vmem:[#allocation2 + $0x90] sm:$0xff] %vm1338_vm4, %v1279_v54  ;;  %4649 = vmatmul.mubr.msk.bf16.gmra.mrb[32].mxu0 %vm2338_vm10, %v2287_v38 }
 0x19f   :  { %1358 = vst.msk [vmem:[#allocation2 + $0x98] sm:$0xff] %vm1338_vm4, %v1281_v6  ;;  %2189 = vrot.lane.b32.xlu0 %v5984_v22, %s4913_s26 }
 0x1a0   :  { %828 = vrot.lane.b32.xlu1 %v6247_v33, %s4907_s20  ;;  %v335_v33 = vld [vmem:[%s7346_s0 + $0x3e0] sm:$0xf] }
 0x1a1   :  { %v1568_v37 = vpop.permute.xlu0 %1567 }
 0x1a2   :  { %v1570_v20 = vpop.permute.xlu1 %1569  ;;  %1646 = vst.msk [vmem:[#allocation2 + $0x90] sm:$0xff] %vm1627_vm5, %v1568_v37  ;;  %v357_v37 = vld [vmem:[%s7346_s0 + $0x440] sm:$0xf] }
 0x1a3   :  { %1647 = vst.msk [vmem:[#allocation2 + $0x98] sm:$0xff] %vm1627_vm5, %v1570_v20  ;;  %2191 = vrot.lane.b32.xlu0 %v5996_v27, %s4913_s26 }
 0x1a4   :  { %830 = vrot.lane.b32.xlu1 %v6239_v35, %s4907_s20  ;;  %v4354_v35 = vcombine.low %v333_v41, %v335_v33 }
 0x1a5   :  { %v1745_v30 = vpop.permute.xlu0 %1744 }
 0x1a6   :  { %v1747_v40 = vpop.permute.xlu1 %1746  ;;  %1823 = vst.msk [vmem:[#allocation2 + $0x90] sm:$0xff] %vm1804_vm6, %v1745_v30 }
 0x1a7   :  { %1824 = vst.msk [vmem:[#allocation2 + $0x98] sm:$0xff] %vm1804_vm6, %v1747_v40  ;;  %1005 = vrot.lane.b32.xlu0 %v5881_v60, %s4906_s17  ;;  %v4849_v60 = vld [vmem:[%s7346_s0 + $0x3cc] ss:$8 sps:$4 sm:$0xff]  }
 0x1a8   :  { %1007 = vrot.lane.b32.xlu1 %v6271_v39, %s4906_s17  ;;  %v337_v39 = vld [vmem:[%s7346_s0 + $0x3e8] sm:$0xf] }
 0x1a9   :  { %v1894_v50 = vpop.permute.xlu0 %1893  ;;  %v4418_v46 = vcombine.low %v335_v33, %v337_v39  ;;  %v376_v39 = vld [vmem:[%s7346_s0 + $0x490] sm:$0xf] }
 0x1aa   :  { %v1896_v17 = vpop.permute.xlu1 %1895  ;;  %1972 = vst.msk [vmem:[#allocation2 + $0x90] sm:$0xff] %vm1953_vm7, %v1894_v50 }
 0x1ab   :  { %1973 = vst.msk [vmem:[#allocation2 + $0x98] sm:$0xff] %vm1953_vm7, %v1896_v17  ;;  %1294 = vrot.lane.b32.xlu0 %v4353_v25, %s4908_s18 }
 0x1ac   :  { %1296 = vrot.lane.b32.xlu1 %v4354_v35, %s4908_s18  ;;  %v4855_v35 = vld [vmem:[%s7346_s0 + $0x44c] ss:$8 sps:$4 sm:$0xff]  }
 0x1ad   :  { %v2043_v62 = vpop.permute.xlu0 %2042 }
 0x1ae   :  { %v2045_v34 = vpop.permute.xlu1 %2044  ;;  %2121 = vst.msk [vmem:[#allocation2 + $0x90] sm:$0xff] %vm2102_vm8, %v2043_v62 }
 0x1af   :  { %2122 = vst.msk [vmem:[#allocation2 + $0x98] sm:$0xff] %vm2102_vm8, %v2045_v34  ;;  %1583 = vrot.lane.b32.xlu0 %v4849_v60, %s4909_s24  ;;  %v4419_v60 = vcombine.low %v357_v37, %v359_v29  ;;  %v6516_v34 = vld [vmem:[%s7346_s0 + $0x498] sm:$0xf] }
 0x1b0   :  { %1585 = vrot.lane.b32.xlu1 %v4848_v49, %s4909_s24 }
 0x1b1   :  { %v2178_v45 = vpop.permute.xlu0 %2177  ;;  %v4626_v0 = vpop.f32.mrb[8].mxu0 }
 0x1b2   :  { %v817_v44 = vpop.permute.xlu1 %816  ;;  %2256 = vst.msk [vmem:[#allocation2 + $0x90] sm:$0xff] %vm2237_vm9, %v2178_v45  ;;  %v2744_v52 = vmul.f32 %v4626_v0, %v6214_v5  ;;  %v2505_v42 = vpop.f32.mrb[9].mxu0 }
 0x1b3   :  { %893 = vst.msk [vmem:[#allocation2 + $0xa0] sm:$0xff] %vm872_vm2, %v817_v44  ;;  %v2742_v14 = vmul.f32 %v6214_v5, %v2505_v42  ;;  %1760 = vrot.lane.b32.xlu0 %v4417_v55, %s4910_s13  ;;  %v4627_v43 = vpop.f32.mrb[10].mxu0  ;;  %v374_v55 = vld [vmem:[%s7346_s0 + $0x488] sm:$0xf]  ;;  %v4424_v42 = vcombine.low %v376_v39, %v6516_v34 }
 0x1b4   :  { %1762 = vrot.lane.b32.xlu1 %v4418_v46, %s4910_s13  ;;  %v2814_v47 = vadd.f32 %v6220_v51, %v2744_v52  ;;  %v2745_v4 = vmul.f32 %v4627_v43, %v6214_v5  ;;  %v2508_v28 = vpop.f32.mrb[11].mxu0  ;;  %v372_v46 = vld [vmem:[%s7346_s0 + $0x480] sm:$0xf] }
 0x1b5   :  { %v2812_v8 = vadd.f32 %v6220_v51, %v2742_v14  ;;  %v2743_v3 = vmul.f32 %v6214_v5, %v2508_v28  ;;  %v2180_v7 = vpop.permute.xlu0 %2179 }
 0x1b6   :  { %v819_v36 = vpop.permute.xlu1 %818  ;;  %v2878_v10 = vmax.f32 %v2814_v47, 0.0  ;;  %v2815_v1 = vadd.f32 %v6220_v51, %v2745_v4  ;;  %2257 = vst.msk [vmem:[#allocation2 + $0x98] sm:$0xff] %vm2237_vm9, %v2180_v7  ;;  %v4423_v47 = vcombine.low %v372_v46, %v374_v55 }
 0x1b7   :  { %894 = vst.msk [vmem:[#allocation2 + $0xa8] sm:$0xff] %vm872_vm2, %v819_v36  ;;  %v2876_v11 = vmax.f32 %v2812_v8, 0.0  ;;  %v2813_v12 = vadd.f32 %v6220_v51, %v2743_v3  ;;  %1909 = vrot.lane.b32.xlu0 %v6052_v53, %s4911_s23 }
 0x1b8   :  { %1911 = vrot.lane.b32.xlu1 %v6063_v61, %s4911_s23  ;;  %2943 = vst.msk [vmem:[#allocation5 + $0xb8] sm:$0xff] %vm30_vm11, %v2878_v10  ;;  %v2879_v24 = vmax.f32 %v2815_v1, 0.0 }
 0x1b9   :  { %2941 = vst.msk [vmem:[#allocation5 + $0xa8] sm:$0xff] %vm30_vm11, %v2876_v11  ;;  %v2877_v18 = vmax.f32 %v2813_v12, 0.0  ;;  %v994_v23 = vpop.permute.xlu0 %993  ;;  %v2288_v58 = vld [vmem:[#allocation2 + $0x90] sm:$0xff] }
 0x1ba   :  { %v996_v61 = vpop.permute.xlu1 %995  ;;  %2944 = vst.msk [vmem:[#allocation5 + $0xc0] sm:$0xff] %vm30_vm11, %v2879_v24  ;;  %4652 = vmatprep.mubr.msk.bf16.mxu0 %vm2338_vm10, %v2288_v58  ;;  %v4859_v12 = vld [vmem:[%s7346_s0 + $0x494] ss:$8 sps:$4 sm:$0xff]  }
 0x1bb   :  { %1071 = vst.msk [vmem:[#allocation2 + $0xa8] sm:$0xff] %vm1049_vm3, %v996_v61  ;;  %1070 = vst.msk [vmem:[#allocation2 + $0xa0] sm:$0xff] %vm1049_vm3, %v994_v23  ;;  %2058 = vrot.lane.b32.xlu0 %v6428_v19, %s4912_s14 }
 0x1bc   :  { %2060 = vrot.lane.b32.xlu1 %v6420_v2, %s4912_s14  ;;  %2942 = vst.msk [vmem:[#allocation5 + $0xb0] sm:$0xff] %vm30_vm11, %v2877_v18  ;;  %v4860_v18 = vld [vmem:[%s7346_s0 + $0x484] ss:$8 sps:$4 sm:$0xff]  }
 0x1bd   :  { %v1283_v32 = vpop.permute.xlu0 %1282  ;;  %v2289_v56 = vld [vmem:[#allocation2 + $0x98] sm:$0xff] }
 0x1be   :  { %v1285_v53 = vpop.permute.xlu1 %1284  ;;  %1359 = vst.msk [vmem:[#allocation2 + $0xa0] sm:$0xff] %vm1338_vm4, %v1283_v32  ;;  %4653 = vmatmul.mubr.msk.bf16.gmra.mrb[36].mxu0 %vm2338_vm10, %v2289_v56  ;;  %v4431_v56 = vcombine.low %v374_v55, %v376_v39  ;;  %v6631_v55 = vld [vmem:[%s7346_s0 + $0x4b0] sm:$0xf] }
 0x1bf   :  { %1360 = vst.msk [vmem:[#allocation2 + $0xa8] sm:$0xff] %vm1338_vm4, %v1285_v53  ;;  %2193 = vrot.lane.b32.xlu0 %v6087_v63, %s4913_s26 }
 0x1c0   :  { %832 = vrot.lane.b32.xlu1 %v6343_v21, %s4907_s20  ;;  %v361_v21 = vld [vmem:[%s7346_s0 + $0x450] sm:$0xf] }
 0x1c1   :  { %v1572_v59 = vpop.permute.xlu0 %1571  ;;  %v6455_v26 = vld [vmem:[#allocation5 + $0xc0] sm:$0xff]  ;;  %v4356_v33 = vcombine.low %v359_v29, %v361_v21 }
 0x1c2   :  { %v1574_v16 = vpop.permute.xlu1 %1573  ;;  %1648 = vst.msk [vmem:[#allocation2 + $0xa0] sm:$0xff] %vm1627_vm5, %v1572_v59 }
 0x1c3   :  { %1649 = vst.msk [vmem:[#allocation2 + $0xa8] sm:$0xff] %vm1627_vm5, %v1574_v16  ;;  %v3017_v6 = vld [vmem:[#allocation5 + $0xb0] sm:$0xff]  ;;  %2195 = vrot.lane.b32.xlu0 %v6452_v57, %s4913_s26 }
 0x1c4   :  { %834 = vrot.lane.b32.xlu1 %v6335_v31, %s4907_s20  ;;  %v6469_v54 = vpack.c.bf16 %v6455_v26, %v3017_v6  ;;  %v6471_v38 = vpack.c.bf16 %v3017_v6, %v3015_v13  ;;  %v355_v31 = vld [vmem:[%s7346_s0 + $0x438] sm:$0xf]  ;;  %v6559_v13 = vld [vmem:[%s7346_s0 + $0x4a0] sm:$0xf] }
 0x1c5   :  { %v1749_v41 = vpop.permute.xlu0 %1748  ;;  %v4355_v40 = vcombine.low %v355_v31, %v357_v37  ;;  %v4432_v29 = vcombine.low %v6516_v34, %v6559_v13  ;;  %v4869_v34 = vld [vmem:[%s7350_s2 + $0x10] sm:$0xff]  }
 0x1c6   :  { %v1751_v20 = vpop.permute.xlu1 %1750  ;;  %3425 = vst.msk [vmem:[#allocation3 + $0x8] sm:$0xff] %vm30_vm11, %v6469_v54  ;;  %3092 = vst.msk [vmem:[#allocation3 + $0x20] sm:$0xff] %vm30_vm11, %v6471_v38 }
 0x1c7   :  { %1826 = vst.msk [vmem:[#allocation2 + $0xa8] sm:$0xff] %vm1804_vm6, %v1751_v20  ;;  %1825 = vst.msk [vmem:[#allocation2 + $0xa0] sm:$0xff] %vm1804_vm6, %v1749_v41  ;;  %1009 = vrot.lane.b32.xlu0 %v5984_v22, %s4906_s17  ;;  %v6502_v22 = vld [vmem:[%s7346_s0 + $0x458] sm:$0xf]  ;;  %v369_v41 = vld [vmem:[%s7346_s0 + $0x470] sm:$0xf] }
 0x1c8   :  { %1011 = vrot.lane.b32.xlu1 %v5996_v27, %s4906_s17  ;;  %v4856_v27 = vld [vmem:[%s7346_s0 + $0x43c] ss:$8 sps:$4 sm:$0xff]   ;;  %v4420_v49 = vcombine.low %v361_v21, %v6502_v22 }
 0x1c9   :  { %v1898_v30 = vpop.permute.xlu0 %1897 }
 0x1ca   :  { %v1900_v48 = vpop.permute.xlu1 %1899  ;;  %1974 = vst.msk [vmem:[#allocation2 + $0xa0] sm:$0xff] %vm1953_vm7, %v1898_v30 }
 0x1cb   :  { %1975 = vst.msk [vmem:[#allocation2 + $0xa8] sm:$0xff] %vm1953_vm7, %v1900_v48  ;;  %1298 = vrot.lane.b32.xlu0 %v4355_v40, %s4908_s18 }
 0x1cc   :  { %1300 = vrot.lane.b32.xlu1 %v4356_v33, %s4908_s18 }
 0x1cd   :  { %v3434_v17 = vld [vmem:[#allocation3 + $0x8] sm:$0xff]  ;;  %v2047_v50 = vpop.permute.xlu0 %2046 }
 0x1ce   :  { %v2049_v25 = vpop.permute.xlu1 %2048  ;;  %4485 = vmatprep.mubr.msk.bf16.mxu1 %vm30_vm11, %v3434_v17  ;;  %2123 = vst.msk [vmem:[#allocation2 + $0xa0] sm:$0xff] %vm2102_vm8, %v2047_v50  ;;  %v4862_v50 = vld [vmem:[%s7346_s0 + $0x46c] ss:$8 sps:$4 sm:$0xff]  }
 0x1cf   :  { %2124 = vst.msk [vmem:[#allocation2 + $0xa8] sm:$0xff] %vm2102_vm8, %v2049_v25  ;;  %1587 = vrot.lane.b32.xlu0 %v4856_v27, %s4909_s24  ;;  %v4915_v27 = vmov 0  }
 0x1d0   :  { %1589 = vrot.lane.b32.xlu1 %v4855_v35, %s4909_s24  ;;  %3545 = vmatprep.subr.bf16.mxu1 %v4915_v27 }
 0x1d1   :  { %v2182_v44 = vpop.permute.xlu0 %2181  ;;  %v4630_v45 = vpop.f32.mrb[12].mxu0 }
 0x1d2   :  { %v821_v62 = vpop.permute.xlu1 %820  ;;  %2258 = vst.msk [vmem:[#allocation2 + $0xa0] sm:$0xff] %vm2237_vm9, %v2182_v44  ;;  %v2748_v0 = vmul.f32 %v4630_v45, %v6214_v5  ;;  %v2521_v52 = vpop.f32.mrb[13].mxu0  ;;  %v6636_v44 = vld [vmem:[%s7346_s0 + $0x4b8] sm:$0xf] }
 0x1d3   :  { %895 = vst.msk [vmem:[#allocation2 + $0xb0] sm:$0xff] %vm872_vm2, %v821_v62  ;;  %v2746_v14 = vmul.f32 %v6214_v5, %v2521_v52  ;;  %1764 = vrot.lane.b32.xlu0 %v4419_v60, %s4910_s13  ;;  %v4631_v43 = vpop.f32.mrb[14].mxu0 }
 0x1d4   :  { %1766 = vrot.lane.b32.xlu1 %v4420_v49, %s4910_s13  ;;  %v2818_v4 = vadd.f32 %v6220_v51, %v2748_v0  ;;  %v2749_v28 = vmul.f32 %v4631_v43, %v6214_v5  ;;  %v2524_v36 = vpop.f32.mrb[15].mxu0  ;;  %v4863_v49 = vld [vmem:[%s7346_s0 + $0x45c] ss:$8 sps:$4 sm:$0xff]   ;;  %v6641_v0 = vld [vmem:[%s7346_s0 + $0x4a8] sm:$0xf] }
 0x1d5   :  { %v2816_v3 = vadd.f32 %v6220_v51, %v2746_v14  ;;  %v2747_v7 = vmul.f32 %v6214_v5, %v2524_v36  ;;  %v2184_v10 = vpop.permute.xlu0 %2183  ;;  %v4870_v14 = vld [vmem:[%s7350_s2 + $0x18] sm:$0xff]  }
 0x1d6   :  { %v823_v8 = vpop.permute.xlu1 %822  ;;  %v2882_v1 = vmax.f32 %v2818_v4, 0.0  ;;  %v2819_v11 = vadd.f32 %v6220_v51, %v2749_v28  ;;  %2259 = vst.msk [vmem:[#allocation2 + $0xa8] sm:$0xff] %vm2237_vm9, %v2184_v10  ;;  %v4426_v4 = vcombine.low %v6631_v55, %v6636_v44 }
 0x1d7   :  { %896 = vst.msk [vmem:[#allocation2 + $0xb8] sm:$0xff] %vm872_vm2, %v823_v8  ;;  %v2880_v24 = vmax.f32 %v2816_v3, 0.0  ;;  %v2817_v61 = vadd.f32 %v6220_v51, %v2747_v7  ;;  %1913 = vrot.lane.b32.xlu0 %v4423_v47, %s4911_s23  ;;  %v4425_v8 = vcombine.low %v6559_v13, %v6641_v0  ;;  %v388_v13 = vld [vmem:[%s7346_s0 + $0x4c0] sm:$0xf] }
 0x1d8   :  { %1915 = vrot.lane.b32.xlu1 %v4424_v42, %s4911_s23  ;;  %2947 = vst.msk [vmem:[#allocation5 + $0xd8] sm:$0xff] %vm30_vm11, %v2882_v1  ;;  %v2883_v23 = vmax.f32 %v2819_v11, 0.0  ;;  %v6659_v11 = vld [vmem:[#allocation5 + $0x10] sm:$0xff] }
 0x1d9   :  { %2945 = vst.msk [vmem:[#allocation5 + $0xc8] sm:$0xff] %vm30_vm11, %v2880_v24  ;;  %v2881_v53 = vmax.f32 %v2817_v61, 0.0  ;;  %v998_v9 = vpop.permute.xlu0 %997  ;;  %v2290_v32 = vld [vmem:[#allocation2 + $0xa0] sm:$0xff] }
 0x1da   :  { %v1000_v58 = vpop.permute.xlu1 %999  ;;  %2948 = vst.msk [vmem:[#allocation5 + $0xe0] sm:$0xff] %vm30_vm11, %v2883_v23  ;;  %4656 = vmatprep.mubr.msk.bf16.mxu0 %vm2338_vm10, %v2290_v32 }
 0x1db   :  { %1073 = vst.msk [vmem:[#allocation2 + $0xb8] sm:$0xff] %vm1049_vm3, %v1000_v58  ;;  %1072 = vst.msk [vmem:[#allocation2 + $0xb0] sm:$0xff] %vm1049_vm3, %v998_v9  ;;  %2062 = vrot.lane.b32.xlu0 %v4860_v18, %s4912_s14  ;;  %v4871_v58 = vld [vmem:[%s7350_s2 + $0x20] sm:$0xff]  }
 0x1dc   :  { %2064 = vrot.lane.b32.xlu1 %v4859_v12, %s4912_s14  ;;  %2946 = vst.msk [vmem:[#allocation5 + $0xd0] sm:$0xff] %vm30_vm11, %v2881_v53  ;;  %v2997_v12 = vld [vmem:[#allocation5] sm:$0xff] }
 0x1dd   :  { %v1287_v59 = vpop.permute.xlu0 %1286  ;;  %v2291_v6 = vld [vmem:[#allocation2 + $0xa8] sm:$0xff]  ;;  %v3082_v23 = vpack.c.bf16 %v6659_v11, %v2997_v12 }
 0x1de   :  { %v1289_v16 = vpop.permute.xlu1 %1288  ;;  %1361 = vst.msk [vmem:[#allocation2 + $0xb0] sm:$0xff] %vm1338_vm4, %v1287_v59  ;;  %4657 = vmatmul.mubr.msk.bf16.gmra.mrb[40].mxu0 %vm2338_vm10, %v2291_v6 }
 0x1df   :  { %1362 = vst.msk [vmem:[#allocation2 + $0xb8] sm:$0xff] %vm1338_vm4, %v1289_v16  ;;  %2197 = vrot.lane.b32.xlu0 %v4431_v56, %s4913_s26  ;;  %v4866_v16 = vld [vmem:[%s7346_s0 + $0x4a4] ss:$8 sps:$4 sm:$0xff]  }
 0x1e0   :  { %836 = vrot.lane.b32.xlu1 %v6428_v19, %s4907_s20  ;;  %v367_v19 = vld [vmem:[%s7346_s0 + $0x468] sm:$0xf]  ;;  %3090 = vst.msk [vmem:[#allocation3] sm:$0xff] %vm30_vm11, %v3082_v23  ;;  %v6744_v23 = vld [vmem:[%s7348_s4] ss:$0 sm:$0xff] }
 0x1e1   :  { %v1576_v20 = vpop.permute.xlu0 %1575  ;;  %v3023_v31 = vld [vmem:[#allocation5 + $0xe0] sm:$0xff]  ;;  %v4358_v35 = vcombine.low %v367_v19, %v369_v41 }
 0x1e2   :  { %v1578_v21 = vpop.permute.xlu1 %1577  ;;  %1650 = vst.msk [vmem:[#allocation2 + $0xb0] sm:$0xff] %vm1627_vm5, %v1576_v20  ;;  %v4872_v20 = vld [vmem:[%s7350_s2 + $0x28] sm:$0xff]  }
 0x1e3   :  { %1651 = vst.msk [vmem:[#allocation2 + $0xb8] sm:$0xff] %vm1627_vm5, %v1578_v21  ;;  %v3021_v37 = vld [vmem:[#allocation5 + $0xd0] sm:$0xff]  ;;  %2199 = vrot.lane.b32.xlu0 %v4432_v29, %s4913_s26 }
 0x1e4   :  { %838 = vrot.lane.b32.xlu1 %v6420_v2, %s4907_s20  ;;  %v6581_v33 = vpack.c.bf16 %v3021_v37, %v6455_v26  ;;  %v6583_v40 = vpack.c.bf16 %v3023_v31, %v3021_v37  ;;  %v365_v2 = vld [vmem:[%s7346_s0 + $0x460] sm:$0xf]  ;;  %v4434_v31 = vcombine.low %v6636_v44, %v388_v13  ;;  %v4433_v37 = vcombine.low %v6641_v0, %v6631_v55  ;;  %s4918_s20 = smov 112  }
 0x1e5   :  { %v1753_v30 = vpop.permute.xlu0 %1752  ;;  %v4867_v26 = vld [vmem:[%s7350_s2] sm:$0xff]   ;;  %v4357_v25 = vcombine.low %v6502_v22, %v365_v2  ;;  %v371_v22 = vld [vmem:[%s7346_s0 + $0x478] sm:$0xf]  ;;  %v4421_v46 = vcombine.low %v365_v2, %v367_v19  ;;  %v3001_v19 = vld [vmem:[#allocation5 + $0x20] sm:$0xff] }
 0x1e6   :  { %v1755_v48 = vpop.permute.xlu1 %1754  ;;  %3093 = vst.msk [vmem:[#allocation3 + $0x30] sm:$0xff] %vm30_vm11, %v6581_v33  ;;  %3426 = vst.msk [vmem:[#allocation3 + $0x18] sm:$0xff] %vm30_vm11, %v6583_v40  ;;  %3546 = vmatpush1.bf16.msra.mxu1 %v4867_v26  ;;  %v4422_v62 = vcombine.low %v369_v41, %v371_v22  ;;  %v3000_v2 = vld [vmem:[#allocation5 + $0x18] sm:$0xff]  ;;  %v3003_v22 = vld [vmem:[#allocation5 + $0x30] sm:$0xff] }
 0x1e7   :  { %1828 = vst.msk [vmem:[#allocation2 + $0xb8] sm:$0xff] %vm1804_vm6, %v1755_v48  ;;  %1827 = vst.msk [vmem:[#allocation2 + $0xb0] sm:$0xff] %vm1804_vm6, %v1753_v30  ;;  %1013 = vrot.lane.b32.xlu0 %v6087_v63, %s4906_s17  ;;  %3547 = vmatprep.subr.bf16.mxu1 %v4915_v27  ;;  %v4868_v63 = vld [vmem:[%s7350_s2 + $0x8] sm:$0xff]   ;;  %v2998_v48 = vld [vmem:[#allocation5 + $0x8] sm:$0xff] }
 0x1e8   :  { %1015 = vrot.lane.b32.xlu1 %v6452_v57, %s4906_s17  ;;  %v4875_v0 = vld [vmem:[%s7350_s2 + $0x40] sm:$0xff]  }
 0x1e9   :  { %v1902_v57 = vpop.permute.xlu0 %1901 }
 0x1ea   :  { %v1904_v17 = vpop.permute.xlu1 %1903  ;;  %1976 = vst.msk [vmem:[#allocation2 + $0xb0] sm:$0xff] %vm1953_vm7, %v1902_v57  ;;  %3548 = vmatpush1.bf16.msra.mxu1 %v4868_v63  ;;  %v3009_v57 = vld [vmem:[#allocation5 + $0x68] sm:$0xff]  ;;  %v3007_v63 = vld [vmem:[#allocation5 + $0x58] sm:$0xff] }
 0x1eb   :  { %1977 = vst.msk [vmem:[#allocation2 + $0xb8] sm:$0xff] %vm1953_vm7, %v1904_v17  ;;  %1302 = vrot.lane.b32.xlu0 %v4357_v25, %s4908_s18  ;;  %3549 = vmatprep.subr.bf16.mxu1 %v4915_v27  ;;  %v3147_v25 = vpack.c.bf16 %v3001_v19, %v6659_v11  ;;  %v3098_v17 = vpack.c.bf16 %v3000_v2, %v2998_v48 }
 0x1ec   :  { %1304 = vrot.lane.b32.xlu1 %v4358_v35, %s4908_s18  ;;  %v4873_v35 = vld [vmem:[%s7350_s2 + $0x30] sm:$0xff]   ;;  %v3245_v55 = vpack.c.bf16 %v3009_v57, %v3007_v63 }
 0x1ed   :  { %v2051_v39 = vpop.permute.xlu0 %2050 }
 0x1ee   :  { %v2053_v60 = vpop.permute.xlu1 %2052  ;;  %2125 = vst.msk [vmem:[#allocation2 + $0xb0] sm:$0xff] %vm2102_vm8, %v2051_v39  ;;  %3550 = vmatpush1.bf16.msra.mxu1 %v4869_v34  ;;  %v3006_v39 = vld [vmem:[#allocation5 + $0x50] sm:$0xff]  ;;  %v3008_v34 = vld [vmem:[#allocation5 + $0x60] sm:$0xff] }
 0x1ef   :  { %2126 = vst.msk [vmem:[#allocation2 + $0xb8] sm:$0xff] %vm2102_vm8, %v2053_v60  ;;  %1591 = vrot.lane.b32.xlu0 %v4863_v49, %s4909_s24  ;;  %3551 = vmatprep.subr.bf16.mxu1 %v4915_v27  ;;  %v4874_v60 = vld [vmem:[%s7350_s2 + $0x38] sm:$0xff]   ;;  %s4917_s2 = smov 80  }
 0x1f0   :  { %1593 = vrot.lane.b32.xlu1 %v4862_v50, %s4909_s24 }
 0x1f1   :  { %v2186_v52 = vpop.permute.xlu0 %2185  ;;  %v4634_v42 = vpop.f32.mrb[16].mxu0 }
 0x1f2   :  { %v825_v45 = vpop.permute.xlu1 %824  ;;  %2260 = vst.msk [vmem:[#allocation2 + $0xb0] sm:$0xff] %vm2237_vm9, %v2186_v52  ;;  %v2752_v43 = vmul.f32 %v4634_v42, %v6214_v5  ;;  %v2537_v47 = vpop.f32.mrb[17].mxu0  ;;  %3552 = vmatpush1.bf16.msra.mxu1 %v4870_v14  ;;  %v3010_v52 = vld [vmem:[#allocation5 + $0x70] sm:$0xff]  ;;  %v3002_v42 = vld [vmem:[#allocation5 + $0x28] sm:$0xff]  ;;  %v3004_v14 = vld [vmem:[#allocation5 + $0x38] sm:$0xff] }
 0x1f3   :  { %897 = vst.msk [vmem:[#allocation2 + $0xc0] sm:$0xff] %vm872_vm2, %v825_v45  ;;  %v2750_v28 = vmul.f32 %v6214_v5, %v2537_v47  ;;  %1768 = vrot.lane.b32.xlu0 %v4421_v46, %s4910_s13  ;;  %v4635_v36 = vpop.f32.mrb[18].mxu0  ;;  %3553 = vmatprep.subr.bf16.mxu1 %v4915_v27  ;;  %v3196_v45 = vpack.c.bf16 %v3008_v34, %v3006_v39 }
 0x1f4   :  { %1770 = vrot.lane.b32.xlu1 %v4422_v62, %s4910_s13  ;;  %v2822_v3 = vadd.f32 %v6220_v51, %v2752_v43  ;;  %v2753_v7 = vmul.f32 %v4635_v36, %v6214_v5  ;;  %v2540_v10 = vpop.f32.mrb[19].mxu0  ;;  %v3083_v62 = vpack.c.bf16 %v3003_v22, %v3001_v19  ;;  %v3294_v47 = vpack.c.bf16 %v3010_v52, %v3008_v34  ;;  %v3020_v19 = vld [vmem:[#allocation5 + $0xc8] sm:$0xff] }
 0x1f5   :  { %v2820_v24 = vadd.f32 %v6220_v51, %v2750_v28  ;;  %v2751_v61 = vmul.f32 %v6214_v5, %v2540_v10  ;;  %v2188_v18 = vpop.permute.xlu0 %2187  ;;  %v4865_v5 = vld [vmem:[%s7346_s0 + $0x4b4] ss:$8 sps:$4 sm:$0xff]   ;;  %v3018_v28 = vld [vmem:[#allocation5 + $0xb8] sm:$0xff]  ;;  %v3099_v36 = vpack.c.bf16 %v3004_v14, %v3002_v42 }
 0x1f6   :  { %v827_v1 = vpop.permute.xlu1 %826  ;;  %v2886_v53 = vmax.f32 %v2822_v3, 0.0  ;;  %v2823_v9 = vadd.f32 %v6220_v51, %v2753_v7  ;;  %2261 = vst.msk [vmem:[#allocation2 + $0xb8] sm:$0xff] %vm2237_vm9, %v2188_v18  ;;  %3554 = vmatpush1.bf16.msra.mxu1 %v4871_v58  ;;  %v3005_v3 = vld [vmem:[#allocation5 + $0x40] sm:$0xff]  ;;  %v3014_v18 = vld [vmem:[#allocation5 + $0x90] sm:$0xff] }
 0x1f7   :  { %898 = vst.msk [vmem:[#allocation2 + $0xc8] sm:$0xff] %vm872_vm2, %v827_v1  ;;  %v2884_v32 = vmax.f32 %v2820_v24, 0.0  ;;  %v2821_v56 = vadd.f32 %v6220_v51, %v2751_v61  ;;  %1917 = vrot.lane.b32.xlu0 %v4425_v8, %s4911_s23  ;;  %3555 = vmatprep.subr.bf16.mxu1 %v4915_v27  ;;  %v3012_v1 = vld [vmem:[#allocation5 + $0x80] sm:$0xff] }
 0x1f8   :  { %1919 = vrot.lane.b32.xlu1 %v4426_v4, %s4911_s23  ;;  %2951 = vst.msk [vmem:[#allocation5 + $0x108] sm:$0xff] %vm30_vm11, %v2886_v53  ;;  %v2887_v59 = vmax.f32 %v2823_v9, 0.0  ;;  %3091 = vst.msk [vmem:[#allocation3 + $0x10] sm:$0xff] %vm30_vm11, %v3083_v62  ;;  %v3016_v4 = vld [vmem:[#allocation5 + $0xa8] sm:$0xff]  ;;  %v3197_v12 = vpack.c.bf16 %v3012_v1, %v3010_v52  ;;  %v3011_v9 = vld [vmem:[#allocation5 + $0x78] sm:$0xff] }
 0x1f9   :  { %2949 = vst.msk [vmem:[#allocation5 + $0xf8] sm:$0xff] %vm30_vm11, %v2884_v32  ;;  %v2885_v51 = vmax.f32 %v2821_v56, 0.0  ;;  %v1002_v29 = vpop.permute.xlu0 %1001  ;;  %v2292_v21 = vld [vmem:[#allocation2 + $0xb0] sm:$0xff]  ;;  %v6733_v10 = vpack.c.bf16 %v3018_v28, %v3016_v4  ;;  %v3024_v62 = vld [vmem:[#allocation5 + $0xf0] sm:$0xff] }
 0x1fa   :  { %v1004_v6 = vpop.permute.xlu1 %1003  ;;  %2952 = vst.msk [vmem:[#allocation5 + $0x110] sm:$0xff] %vm30_vm11, %v2887_v59  ;;  %4660 = vmatprep.mubr.msk.bf16.mxu0 %vm2338_vm10, %v2292_v21  ;;  %3556 = vmatpush1.bf16.msra.mxu1 %v4872_v20 }
 0x1fb   :  { %1075 = vst.msk [vmem:[#allocation2 + $0xc8] sm:$0xff] %vm1049_vm3, %v1004_v6  ;;  %1074 = vst.msk [vmem:[#allocation2 + $0xc0] sm:$0xff] %vm1049_vm3, %v1002_v29  ;;  %2066 = vrot.lane.b32.xlu0 %v4866_v16, %s4912_s14  ;;  %3557 = vmatprep.subr.bf16.mxu1 %v4915_v27  ;;  %v6753_v16 = vld [vmem:[%s7349_s5] ss:$0 sm:$0xff]  ;;  %v3295_v29 = vpack.c.bf16 %v3014_v18, %v3012_v1 }
 0x1fc   :  { %2068 = vrot.lane.b32.xlu1 %v4865_v5, %s4912_s14  ;;  %2950 = vst.msk [vmem:[#allocation5 + $0x100] sm:$0xff] %vm30_vm11, %v2885_v51  ;;  %v3013_v5 = vld [vmem:[#allocation5 + $0x88] sm:$0xff] }
 0x1fd   :  { %v1291_v30 = vpop.permute.xlu0 %1290  ;;  %v2293_v26 = vld [vmem:[#allocation2 + $0xb8] sm:$0xff] }
 0x1fe   :  { %v1293_v41 = vpop.permute.xlu1 %1292  ;;  %1363 = vst.msk [vmem:[#allocation2 + $0xc0] sm:$0xff] %vm1338_vm4, %v1291_v30  ;;  %4661 = vmatmul.mubr.msk.bf16.gmra.mrb[44].mxu0 %vm2338_vm10, %v2293_v26  ;;  %3558 = vmatpush1.bf16.msra.mxu1 %v4873_v35 }
 0x1ff   :  { %1364 = vst.msk [vmem:[#allocation2 + $0xc8] sm:$0xff] %vm1338_vm4, %v1293_v41  ;;  %2201 = vrot.lane.b32.xlu0 %v4433_v37, %s4913_s26  ;;  %3559 = vmatprep.subr.bf16.mxu1 %v4915_v27  ;;  %v3246_v37 = vpack.c.bf16 %v3013_v5, %v3011_v9  ;;  %v3022_v41 = vld [vmem:[#allocation5 + $0xd8] sm:$0xff]  ;;  %v3027_v34 = vld [vmem:[#allocation5 + $0x108] sm:$0xff] }
 0x200   :  { %2203 = vrot.lane.b32.xlu1 %v4434_v31, %s4913_s26  ;;  %v3025_v39 = vld [vmem:[#allocation5 + $0xf8] sm:$0xff] }
 0x201   :  { %v1580_v49 = vpop.permute.xlu0 %1579 }
 0x202   :  { %v1582_v50 = vpop.permute.xlu1 %1581  ;;  %1652 = vst.msk [vmem:[#allocation2 + $0xc0] sm:$0xff] %vm1627_vm5, %v1580_v49  ;;  %3560 = vmatpush1.bf16.msra.mxu1 %v4874_v60 }
 0x203   :  { %1653 = vst.msk [vmem:[#allocation2 + $0xc8] sm:$0xff] %vm1627_vm5, %v1582_v50  ;;  %3114 = vrot.lane.b32.xlu0 %v3098_v17, %s4906_s17  ;;  %3561 = vmatprep.subr.bf16.mxu1 %v4915_v27  ;;  %v6766_v17 = vpack.c.bf16 %v3022_v41, %v3020_v19  ;;  %v3033_v19 = vld [vmem:[#allocation5 + $0x140] sm:$0xff] }
 0x204   :  { %3163 = vrot.lane.b32.xlu1 %v3147_v25, %s4909_s24 }
 0x205   :  { %v1757_v44 = vpop.permute.xlu0 %1756 }
 0x206   :  { %v1759_v46 = vpop.permute.xlu1 %1758  ;;  %1829 = vst.msk [vmem:[#allocation2 + $0xc0] sm:$0xff] %vm1804_vm6, %v1757_v44  ;;  %3562 = vmatpush1.bf16.msra.mxu1 %v4875_v0  ;;  %v6788_v0 = vld [vmem:[#allocation5 + $0x110] sm:$0xff] }
 0x207   :  { %1830 = vst.msk [vmem:[#allocation2 + $0xc8] sm:$0xff] %vm1804_vm6, %v1759_v46  ;;  %3212 = vrot.lane.b32.xlu0 %v3196_v45, %s4911_s23  ;;  %v3026_v46 = vld [vmem:[#allocation5 + $0x100] sm:$0xff] }
 0x208   :  { %3261 = vrot.lane.b32.xlu1 %v3245_v55, %s4913_s26  ;;  %v3247_v55 = vpack.c.bf16 %v3027_v34, %v3025_v39  ;;  %v3198_v45 = vpack.c.bf16 %v3026_v46, %v3024_v62  ;;  %v3296_v42 = vpack.c.bf16 %v6788_v0, %v3026_v46 }
 0x209   :  { %v1906_v27 = vpop.permute.xlu0 %1905 }
 0x20a   :  { %v1908_v43 = vpop.permute.xlu1 %1907  ;;  %1978 = vst.msk [vmem:[#allocation2 + $0xc0] sm:$0xff] %vm1953_vm7, %v1906_v27 }
 0x20b   :  { %1979 = vst.msk [vmem:[#allocation2 + $0xc8] sm:$0xff] %vm1953_vm7, %v1908_v43  ;;  %3310 = vrot.lane.b32.xlu0 %v3294_v47, %s4917_s2 }
 0x20c   :  { %3353 = vrot.lane.b32.xlu1 %v6471_v38, %s4916_s21  ;;  %v3148_v38 = vpack.c.bf16 %v3005_v3, %v3003_v22 }
 0x20d   :  { %v2055_v7 = vpop.permute.xlu0 %2054 }
 0x20e   :  { %v2057_v8 = vpop.permute.xlu1 %2056  ;;  %2127 = vst.msk [vmem:[#allocation2 + $0xc0] sm:$0xff] %vm2102_vm8, %v2055_v7 }
 0x20f   :  { %2128 = vst.msk [vmem:[#allocation2 + $0xc8] sm:$0xff] %vm2102_vm8, %v2057_v8  ;;  %3390 = vrot.lane.b32.xlu0 %v6733_v10, %s4918_s20 }
 0x210   :  { %3116 = vrot.lane.b32.xlu1 %v3099_v36, %s4906_s17 }
 0x211   :  { %v2190_v24 = vpop.permute.xlu0 %2189  ;;  %v4638_v61 = vpop.f32.mrb[20].mxu0 }
 0x212   :  { %v829_v11 = vpop.permute.xlu1 %828  ;;  %2262 = vst.msk [vmem:[#allocation2 + $0xc0] sm:$0xff] %vm2237_vm9, %v2190_v24  ;;  %v2756_v58 = vmul.f32 %v6744_v23, %v4638_v61  ;;  %v2553_v53 = vpop.f32.mrb[21].mxu0 }
 0x213   :  { %899 = vst.msk [vmem:[#allocation2 + $0xd0] sm:$0xff] %vm872_vm2, %v829_v11  ;;  %v2754_v32 = vmul.f32 %v6744_v23, %v2553_v53  ;;  %3165 = vrot.lane.b32.xlu0 %v3148_v38, %s4909_s24  ;;  %v4639_v56 = vpop.f32.mrb[22].mxu0 }
 0x214   :  { %3214 = vrot.lane.b32.xlu1 %v3197_v12, %s4911_s23  ;;  %v2826_v13 = vadd.f32 %v6753_v16, %v2756_v58  ;;  %v2757_v59 = vmul.f32 %v6744_v23, %v4639_v56  ;;  %v2556_v6 = vpop.f32.mrb[23].mxu0 }
 0x215   :  { %v2824_v21 = vadd.f32 %v6753_v16, %v2754_v32  ;;  %v2755_v20 = vmul.f32 %v6744_v23, %v2556_v6  ;;  %v2192_v31 = vpop.permute.xlu0 %2191 }
 0x216   :  { %v831_v51 = vpop.permute.xlu1 %830  ;;  %v2890_v48 = vmax.f32 %v2826_v13, 0.0  ;;  %v2827_v2 = vadd.f32 %v6753_v16, %v2757_v59  ;;  %2263 = vst.msk [vmem:[#allocation2 + $0xc8] sm:$0xff] %vm2237_vm9, %v2192_v31 }
 0x217   :  { %900 = vst.msk [vmem:[#allocation2 + $0xd8] sm:$0xff] %vm872_vm2, %v831_v51  ;;  %v2888_v30 = vmax.f32 %v2824_v21, 0.0  ;;  %v2825_v26 = vadd.f32 %v6753_v16, %v2755_v20  ;;  %3263 = vrot.lane.b32.xlu0 %v3246_v37, %s4913_s26 }
 0x218   :  { %3312 = vrot.lane.b32.xlu1 %v3295_v29, %s4917_s2  ;;  %2955 = vst.msk [vmem:[#allocation5 + $0x128] sm:$0xff] %vm30_vm11, %v2890_v48  ;;  %v2891_v35 = vmax.f32 %v2827_v2, 0.0 }
 0x219   :  { %2953 = vst.msk [vmem:[#allocation5 + $0x118] sm:$0xff] %vm30_vm11, %v2888_v30  ;;  %v2889_v50 = vmax.f32 %v2825_v26, 0.0  ;;  %v1006_v57 = vpop.permute.xlu0 %1005  ;;  %v2294_v49 = vld [vmem:[#allocation2 + $0xc0] sm:$0xff] }
 0x21a   :  { %v1008_v25 = vpop.permute.xlu1 %1007  ;;  %2956 = vst.msk [vmem:[#allocation5 + $0x130] sm:$0xff] %vm30_vm11, %v2891_v35  ;;  %4664 = vmatprep.mubr.msk.bf16.mxu0 %vm2338_vm10, %v2294_v49 }
 0x21b   :  { %1077 = vst.msk [vmem:[#allocation2 + $0xd8] sm:$0xff] %vm1049_vm3, %v1008_v25  ;;  %1076 = vst.msk [vmem:[#allocation2 + $0xd0] sm:$0xff] %vm1049_vm3, %v1006_v57  ;;  %3355 = vrot.lane.b32.xlu0 %v6581_v33, %s4916_s21 }
 0x21c   :  { %3392 = vrot.lane.b32.xlu1 %v6766_v17, %s4918_s20  ;;  %2954 = vst.msk [vmem:[#allocation5 + $0x120] sm:$0xff] %vm30_vm11, %v2889_v50 }
 0x21d   :  { %v1295_v22 = vpop.permute.xlu0 %1294  ;;  %v2295_v60 = vld [vmem:[#allocation2 + $0xc8] sm:$0xff] }
 0x21e   :  { %v1297_v63 = vpop.permute.xlu1 %1296  ;;  %1365 = vst.msk [vmem:[#allocation2 + $0xd0] sm:$0xff] %vm1338_vm4, %v1295_v22  ;;  %4665 = vmatmul.mubr.msk.bf16.gmra.mrb[48].mxu0 %vm2338_vm10, %v2295_v60 }
 0x21f   :  { %1366 = vst.msk [vmem:[#allocation2 + $0xd8] sm:$0xff] %vm1338_vm4, %v1297_v63  ;;  %3118 = vrot.lane.b32.xlu0 %v6733_v10, %s4906_s17  ;;  %v3031_v49 = vld [vmem:[#allocation5 + $0x128] sm:$0xff] }
 0x220   :  { %3167 = vrot.lane.b32.xlu1 %v6469_v54, %s4909_s24  ;;  %v3029_v57 = vld [vmem:[#allocation5 + $0x118] sm:$0xff] }
 0x221   :  { %v1584_v44 = vpop.permute.xlu0 %1583  ;;  %v3248_v39 = vpack.c.bf16 %v3031_v49, %v3029_v57  ;;  %v3032_v46 = vld [vmem:[#allocation5 + $0x130] sm:$0xff] }
 0x222   :  { %v1586_v33 = vpop.permute.xlu1 %1585  ;;  %1654 = vst.msk [vmem:[#allocation2 + $0xd0] sm:$0xff] %vm1627_vm5, %v1584_v44 }
 0x223   :  { %1655 = vst.msk [vmem:[#allocation2 + $0xd8] sm:$0xff] %vm1627_vm5, %v1586_v33  ;;  %3216 = vrot.lane.b32.xlu0 %v3198_v45, %s4911_s23  ;;  %v3030_v22 = vld [vmem:[#allocation5 + $0x120] sm:$0xff] }
 0x224   :  { %3265 = vrot.lane.b32.xlu1 %v3247_v55, %s4913_s26  ;;  %v3199_v34 = vpack.c.bf16 %v3030_v22, %v6788_v0  ;;  %v3297_v33 = vpack.c.bf16 %v3032_v46, %v3030_v22 }
 0x225   :  { %v1761_v52 = vpop.permute.xlu0 %1760 }
 0x226   :  { %v1763_v54 = vpop.permute.xlu1 %1762  ;;  %1831 = vst.msk [vmem:[#allocation2 + $0xd0] sm:$0xff] %vm1804_vm6, %v1761_v52 }
 0x227   :  { %1832 = vst.msk [vmem:[#allocation2 + $0xd8] sm:$0xff] %vm1804_vm6, %v1763_v54  ;;  %3314 = vrot.lane.b32.xlu0 %v3296_v42, %s4917_s2 }
 0x229   :  { %v1910_v43 = vpop.permute.xlu0 %1909 }
 0x22a   :  { %v1912_v14 = vpop.permute.xlu1 %1911  ;;  %1980 = vst.msk [vmem:[#allocation2 + $0xd0] sm:$0xff] %vm1953_vm7, %v1910_v43 }
 0x22b   :  { %1981 = vst.msk [vmem:[#allocation2 + $0xd8] sm:$0xff] %vm1953_vm7, %v1912_v14 }
 0x22d   :  { %v2059_v47 = vpop.permute.xlu0 %2058 }
 0x22e   :  { %v2061_v27 = vpop.permute.xlu1 %2060  ;;  %2129 = vst.msk [vmem:[#allocation2 + $0xd0] sm:$0xff] %vm2102_vm8, %v2059_v47 }
 0x22f   :  { %2130 = vst.msk [vmem:[#allocation2 + $0xd8] sm:$0xff] %vm2102_vm8, %v2061_v27 }
 0x231   :  { %v2194_v28 = vpop.permute.xlu0 %2193  ;;  %v4642_v36 = vpop.f32.mrb[24].mxu0 }
 0x232   :  { %v833_v4 = vpop.permute.xlu1 %832  ;;  %2264 = vst.msk [vmem:[#allocation2 + $0xd0] sm:$0xff] %vm2237_vm9, %v2194_v28  ;;  %v2760_v8 = vmul.f32 %v6744_v23, %v4642_v36  ;;  %v2569_v3 = vpop.f32.mrb[25].mxu0 }
 0x233   :  { %901 = vst.msk [vmem:[#allocation2 + $0xe0] sm:$0xff] %vm872_vm2, %v833_v4  ;;  %v2758_v7 = vmul.f32 %v6744_v23, %v2569_v3  ;;  %v4643_v10 = vpop.f32.mrb[26].mxu0 }
 0x234   :  { %v2830_v1 = vadd.f32 %v6753_v16, %v2760_v8  ;;  %v2761_v38 = vmul.f32 %v6744_v23, %v4643_v10  ;;  %v2572_v11 = vpop.f32.mrb[27].mxu0 }
 0x235   :  { %v2828_v24 = vadd.f32 %v6753_v16, %v2758_v7  ;;  %v2759_v61 = vmul.f32 %v6744_v23, %v2572_v11  ;;  %v2196_v18 = vpop.permute.xlu0 %2195 }
 0x236   :  { %v835_v12 = vpop.permute.xlu1 %834  ;;  %v2894_v58 = vmax.f32 %v2830_v1, 0.0  ;;  %v2831_v53 = vadd.f32 %v6753_v16, %v2761_v38  ;;  %2265 = vst.msk [vmem:[#allocation2 + $0xd8] sm:$0xff] %vm2237_vm9, %v2196_v18 }
 0x237   :  { %902 = vst.msk [vmem:[#allocation2 + $0xe8] sm:$0xff] %vm872_vm2, %v835_v12  ;;  %v2892_v9 = vmax.f32 %v2828_v24, 0.0  ;;  %v2829_v5 = vadd.f32 %v6753_v16, %v2759_v61 }
 0x238   :  { %2959 = vst.msk [vmem:[#allocation5 + $0x158] sm:$0xff] %vm30_vm11, %v2894_v58  ;;  %v2895_v32 = vmax.f32 %v2831_v53, 0.0 }
 0x239   :  { %2957 = vst.msk [vmem:[#allocation5 + $0x148] sm:$0xff] %vm30_vm11, %v2892_v9  ;;  %v2893_v13 = vmax.f32 %v2829_v5, 0.0  ;;  %v1010_v59 = vpop.permute.xlu0 %1009  ;;  %v2296_v6 = vld [vmem:[#allocation2 + $0xd0] sm:$0xff] }
 0x23a   :  { %v1012_v56 = vpop.permute.xlu1 %1011  ;;  %2960 = vst.msk [vmem:[#allocation5 + $0x160] sm:$0xff] %vm30_vm11, %v2895_v32  ;;  %4668 = vmatprep.mubr.msk.bf16.mxu0 %vm2338_vm10, %v2296_v6 }
 0x23b   :  { %1079 = vst.msk [vmem:[#allocation2 + $0xe8] sm:$0xff] %vm1049_vm3, %v1012_v56  ;;  %1078 = vst.msk [vmem:[#allocation2 + $0xe0] sm:$0xff] %vm1049_vm3, %v1010_v59 }
 0x23c   :  { %2958 = vst.msk [vmem:[#allocation5 + $0x150] sm:$0xff] %vm30_vm11, %v2893_v13 }
 0x23d   :  { %v1299_v29 = vpop.permute.xlu0 %1298  ;;  %v2297_v21 = vld [vmem:[#allocation2 + $0xd8] sm:$0xff] }
 0x23e   :  { %v1301_v51 = vpop.permute.xlu1 %1300  ;;  %1367 = vst.msk [vmem:[#allocation2 + $0xe0] sm:$0xff] %vm1338_vm4, %v1299_v29  ;;  %4669 = vmatmul.mubr.msk.bf16.gmra.mrb[52].mxu0 %vm2338_vm10, %v2297_v21 }
 0x23f   :  { %1368 = vst.msk [vmem:[#allocation2 + $0xe8] sm:$0xff] %vm1338_vm4, %v1301_v51  ;;  %v3036_v20 = vld [vmem:[#allocation5 + $0x158] sm:$0xff] }
 0x240   :  { %v3034_v37 = vld [vmem:[#allocation5 + $0x148] sm:$0xff] }
 0x241   :  { %v1588_v41 = vpop.permute.xlu0 %1587  ;;  %v6822_v48 = vpack.c.bf16 %v3036_v20, %v3034_v37  ;;  %v6824_v2 = vld [vmem:[#allocation5 + $0x160] sm:$0xff] }
 0x242   :  { %v1590_v31 = vpop.permute.xlu1 %1589  ;;  %1656 = vst.msk [vmem:[#allocation2 + $0xe0] sm:$0xff] %vm1627_vm5, %v1588_v41 }
 0x243   :  { %1657 = vst.msk [vmem:[#allocation2 + $0xe8] sm:$0xff] %vm1627_vm5, %v1590_v31  ;;  %v3035_v30 = vld [vmem:[#allocation5 + $0x150] sm:$0xff]  ;;  %3394 = vrot.lane.b32.xlu0 %v6822_v48, %s4918_s20 }
 0x244   :  { %v3086_v26 = vpack.c.bf16 %v3035_v30, %v3033_v19  ;;  %v6830_v35 = vpack.c.bf16 %v6824_v2, %v3035_v30 }
 0x245   :  { %v1765_v50 = vpop.permute.xlu0 %1764 }
 0x246   :  { %v1767_v25 = vpop.permute.xlu1 %1766  ;;  %3357 = vrot.lane.b32.xlu1 %v3086_v26, %s4916_s21  ;;  %3094 = vst.msk [vmem:[#allocation3 + $0x40] sm:$0xff] %vm30_vm11, %v3086_v26  ;;  %3427 = vst.msk [vmem:[#allocation3 + $0x28] sm:$0xff] %vm30_vm11, %v6830_v35 }
 0x247   :  { %1834 = vst.msk [vmem:[#allocation2 + $0xe8] sm:$0xff] %vm1804_vm6, %v1767_v25  ;;  %1833 = vst.msk [vmem:[#allocation2 + $0xe0] sm:$0xff] %vm1804_vm6, %v1765_v50  ;;  %3169 = vrot.lane.b32.xlu0 %v6583_v40, %s4909_s24 }
 0x249   :  { %v1914_v60 = vpop.permute.xlu0 %1913 }
 0x24a   :  { %v1916_v63 = vpop.permute.xlu1 %1915  ;;  %3120 = vrot.lane.b32.xlu1 %v6766_v17, %s4906_s17  ;;  %1982 = vst.msk [vmem:[#allocation2 + $0xe0] sm:$0xff] %vm1953_vm7, %v1914_v60 }
 0x24b   :  { %1983 = vst.msk [vmem:[#allocation2 + $0xe8] sm:$0xff] %vm1953_vm7, %v1916_v63  ;;  %3267 = vrot.lane.b32.xlu0 %v3248_v39, %s4913_s26 }
 0x24d   :  { %v2063_v40 = vpop.permute.xlu0 %2062 }
 0x24e   :  { %v2065_v62 = vpop.permute.xlu1 %2064  ;;  %3218 = vrot.lane.b32.xlu1 %v3199_v34, %s4911_s23  ;;  %2131 = vst.msk [vmem:[#allocation2 + $0xe0] sm:$0xff] %vm2102_vm8, %v2063_v40 }
 0x24f   :  { %2132 = vst.msk [vmem:[#allocation2 + $0xe8] sm:$0xff] %vm2102_vm8, %v2065_v62 }
 0x251   :  { %v2198_v17 = vpop.permute.xlu0 %2197  ;;  %v4646_v44 = vpop.f32.mrb[28].mxu0 }
 0x252   :  { %v837_v55 = vpop.permute.xlu1 %836  ;;  %3316 = vrot.lane.b32.xlu1 %v3297_v33, %s4917_s2  ;;  %2266 = vst.msk [vmem:[#allocation2 + $0xe0] sm:$0xff] %vm2237_vm9, %v2198_v17  ;;  %v2764_v45 = vmul.f32 %v6744_v23, %v4646_v44  ;;  %v2585_v0 = vpop.f32.mrb[29].mxu0 }
 0x253   :  { %903 = vst.msk [vmem:[#allocation2 + $0xf0] sm:$0xff] %vm872_vm2, %v837_v55  ;;  %v2762_v54 = vmul.f32 %v6744_v23, %v2585_v0  ;;  %v4647_v52 = vpop.f32.mrb[30].mxu0 }
 0x254   :  { %v2834_v42 = vadd.f32 %v6753_v16, %v2764_v45  ;;  %v2765_v14 = vmul.f32 %v6744_v23, %v4647_v52  ;;  %v2588_v43 = vpop.f32.mrb[31].mxu0 }
 0x255   :  { %v2832_v47 = vadd.f32 %v6753_v16, %v2762_v54  ;;  %v2763_v4 = vmul.f32 %v6744_v23, %v2588_v43  ;;  %v2200_v28 = vpop.permute.xlu0 %2199  ;;  %v3042_v43 = vld [vmem:[#allocation5 + $0x190] sm:$0xff] }
 0x256   :  { %v839_v27 = vpop.permute.xlu1 %838  ;;  %v2898_v36 = vmax.f32 %v2834_v42, 0.0  ;;  %v2835_v8 = vadd.f32 %v6753_v16, %v2765_v14  ;;  %2267 = vst.msk [vmem:[#allocation2 + $0xe8] sm:$0xff] %vm2237_vm9, %v2200_v28 }
 0x257   :  { %904 = vst.msk [vmem:[#allocation2 + $0xf8] sm:$0xff] %vm872_vm2, %v839_v27  ;;  %v2896_v3 = vmax.f32 %v2832_v47, 0.0  ;;  %v2833_v7 = vadd.f32 %v6753_v16, %v2763_v4  ;;  %vm3414_vm2 = vcmask 1048448  }
 0x258   :  { %2963 = vst.msk [vmem:[#allocation5 + $0x178] sm:$0xff] %vm30_vm11, %v2898_v36  ;;  %v2899_v10 = vmax.f32 %v2835_v8, 0.0 }
 0x259   :  { %2961 = vst.msk [vmem:[#allocation5 + $0x168] sm:$0xff] %vm30_vm11, %v2896_v3  ;;  %v2897_v38 = vmax.f32 %v2833_v7, 0.0  ;;  %v1014_v11 = vpop.permute.xlu0 %1013  ;;  %v2298_v12 = vld [vmem:[#allocation2 + $0xe0] sm:$0xff] }
 0x25a   :  { %v1016_v1 = vpop.permute.xlu1 %1015  ;;  %2964 = vst.msk [vmem:[#allocation5 + $0x180] sm:$0xff] %vm30_vm11, %v2899_v10  ;;  %4672 = vmatprep.mubr.msk.bf16.mxu0 %vm2338_vm10, %v2298_v12 }
 0x25b   :  { %1081 = vst.msk [vmem:[#allocation2 + $0xf8] sm:$0xff] %vm1049_vm3, %v1016_v1  ;;  %1080 = vst.msk [vmem:[#allocation2 + $0xf0] sm:$0xff] %vm1049_vm3, %v1014_v11  ;;  %v3436_v11 = vld [vmem:[#allocation3 + $0x18] sm:$0xff]  ;;  %vm73_vm3 = vcmask 261120  }
 0x25c   :  { %2962 = vst.msk [vmem:[#allocation5 + $0x170] sm:$0xff] %vm30_vm11, %v2897_v38 }
 0x25d   :  { %v1303_v61 = vpop.permute.xlu0 %1302  ;;  %v2299_v18 = vld [vmem:[#allocation2 + $0xe8] sm:$0xff]  ;;  %74 = vst.msk [vmem:[#allocation6] sm:$0xff] %vm73_vm3, %v4914_v15  ;;  %75 = vst.msk [vmem:[#allocation6 + $0x8] sm:$0xff] %vm73_vm3, %v4914_v15 }
 0x25e   :  { %v1305_v24 = vpop.permute.xlu1 %1304  ;;  %1369 = vst.msk [vmem:[#allocation2 + $0xf0] sm:$0xff] %vm1338_vm4, %v1303_v61  ;;  %4673 = vmatmul.mubr.msk.bf16.gmra.mrb[56].mxu0 %vm2338_vm10, %v2299_v18 }
 0x25f   :  { %1370 = vst.msk [vmem:[#allocation2 + $0xf8] sm:$0xff] %vm1338_vm4, %v1305_v24  ;;  %v3040_v58 = vld [vmem:[#allocation5 + $0x178] sm:$0xff]  ;;  %vm3762_vm4 = vcmask 523520  }
 0x260   :  { %v3038_v9 = vld [vmem:[#allocation5 + $0x168] sm:$0xff]  ;;  %76 = vst.msk [vmem:[#allocation6 + $0x10] sm:$0xff] %vm73_vm3, %v4914_v15  ;;  %77 = vst.msk [vmem:[#allocation6 + $0x18] sm:$0xff] %vm73_vm3, %v4914_v15 }
 0x261   :  { %v1592_v5 = vpop.permute.xlu0 %1591  ;;  %v6873_v32 = vpack.c.bf16 %v3040_v58, %v3038_v9  ;;  %v3041_v56 = vld [vmem:[#allocation5 + $0x180] sm:$0xff]  ;;  %78 = vst.msk [vmem:[#allocation6 + $0x20] sm:$0xff] %vm73_vm3, %v4914_v15  ;;  %88 = vst.msk [vmem:[#allocation6 + $0x30] sm:$0xff] %vm73_vm3, %v4914_v15 }
 0x262   :  { %v1594_v53 = vpop.permute.xlu1 %1593  ;;  %1658 = vst.msk [vmem:[#allocation2 + $0xf0] sm:$0xff] %vm1627_vm5, %v1592_v5 }
 0x263   :  { %1659 = vst.msk [vmem:[#allocation2 + $0xf8] sm:$0xff] %vm1627_vm5, %v1594_v53  ;;  %v3039_v13 = vld [vmem:[#allocation5 + $0x170] sm:$0xff]  ;;  %3396 = vrot.lane.b32.xlu1 %v6873_v32, %s4918_s20  ;;  %vm3775_vm5 = vcmask 785920  }
 0x264   :  { %v3087_v59 = vpack.c.bf16 %v3039_v13, %v6824_v2  ;;  %v6879_v6 = vpack.c.bf16 %v3041_v56, %v3039_v13  ;;  %89 = vst.msk [vmem:[#allocation6 + $0x60] sm:$0xff] %vm73_vm3, %v4914_v15  ;;  %90 = vst.msk [vmem:[#allocation6 + $0x90] sm:$0xff] %vm73_vm3, %v4914_v15 }
 0x265   :  { %v1769_v29 = vpop.permute.xlu0 %1768  ;;  %91 = vst.msk [vmem:[#allocation6 + $0xc0] sm:$0xff] %vm73_vm3, %v4914_v15  ;;  %87 = vst.msk [vmem:[#allocation6] sm:$0xff] %vm73_vm3, %v4914_v15 }
 0x266   :  { %v1771_v51 = vpop.permute.xlu1 %1770  ;;  %3428 = vst.msk [vmem:[#allocation3 + $0x38] sm:$0xff] %vm30_vm11, %v6879_v6  ;;  %3359 = vrot.lane.b32.xlu0 %v3087_v59, %s4916_s21  ;;  %3095 = vst.msk [vmem:[#allocation3 + $0x50] sm:$0xff] %vm30_vm11, %v3087_v59 }
 0x267   :  { %1836 = vst.msk [vmem:[#allocation2 + $0xf8] sm:$0xff] %vm1804_vm6, %v1771_v51  ;;  %1835 = vst.msk [vmem:[#allocation2 + $0xf0] sm:$0xff] %vm1804_vm6, %v1769_v29  ;;  %3171 = vrot.lane.b32.xlu1 %v6830_v35, %s4909_s24  ;;  %vm3788_vm6 = vcmask 1048320  }
 0x269   :  { %v1918_v20 = vpop.permute.xlu0 %1917 }
 0x26a   :  { %v1920_v21 = vpop.permute.xlu1 %1919  ;;  %3122 = vrot.lane.b32.xlu0 %v6822_v48, %s4906_s17  ;;  %1984 = vst.msk [vmem:[#allocation2 + $0xf0] sm:$0xff] %vm1953_vm7, %v1918_v20 }
 0x26b   :  { %1985 = vst.msk [vmem:[#allocation2 + $0xf8] sm:$0xff] %vm1953_vm7, %v1920_v21  ;;  %vm4919_vm7 = vmmov 0  }
 0x26d   :  { %v2067_v37 = vpop.permute.xlu0 %2066 }
 0x26e   :  { %v2069_v31 = vpop.permute.xlu1 %2068  ;;  %2133 = vst.msk [vmem:[#allocation2 + $0xf0] sm:$0xff] %vm2102_vm8, %v2067_v37 }
 0x26f   :  { %2134 = vst.msk [vmem:[#allocation2 + $0xf8] sm:$0xff] %vm2102_vm8, %v2069_v31 }
 0x271   :  { %v2202_v41 = vpop.permute.xlu0 %2201  ;;  %v4650_v2 = vpop.f32.mrb[32].mxu0 }
 0x272   :  { %v2204_v19 = vpop.permute.xlu1 %2203  ;;  %2268 = vst.msk [vmem:[#allocation2 + $0xf0] sm:$0xff] %vm2237_vm9, %v2202_v41  ;;  %v2768_v30 = vmul.f32 %v6744_v23, %v4650_v2  ;;  %v2601_v26 = vpop.f32.mrb[33].mxu0 }
 0x273   :  { %2269 = vst.msk [vmem:[#allocation2 + $0xf8] sm:$0xff] %vm2237_vm9, %v2204_v19  ;;  %v2766_v48 = vmul.f32 %v6744_v23, %v2601_v26  ;;  %v4651_v35 = vpop.f32.mrb[34].mxu0  ;;  %v3438_v26 = vld [vmem:[#allocation3 + $0x28] sm:$0xff] }
 0x274   :  { %v2838_v25 = vadd.f32 %v6753_v16, %v2768_v30  ;;  %v2769_v50 = vmul.f32 %v6744_v23, %v4651_v35  ;;  %v2604_v57 = vpop.f32.mrb[35].mxu0 }
 0x275   :  { %v2836_v63 = vadd.f32 %v6753_v16, %v2766_v48  ;;  %v2767_v22 = vmul.f32 %v6744_v23, %v2604_v57  ;;  %v3115_v60 = vpop.permute.xlu0 %3114 }
 0x276   :  { %v3164_v49 = vpop.permute.xlu1 %3163  ;;  %v2902_v39 = vmax.f32 %v2838_v25, 0.0  ;;  %v2839_v34 = vadd.f32 %v6753_v16, %v2769_v50  ;;  %3139 = vst.msk [vmem:[#allocation3] sm:$0xff] %vm3138_vm12, %v3115_v60 }
 0x277   :  { %v2900_v62 = vmax.f32 %v2836_v63, 0.0  ;;  %v2837_v46 = vadd.f32 %v6753_v16, %v2767_v22  ;;  %3188 = vst.msk [vmem:[#allocation3] sm:$0xff] %vm3187_vm13, %v3164_v49 }
 0x278   :  { %2967 = vst.msk [vmem:[#allocation5 + $0x1a8] sm:$0xff] %vm30_vm11, %v2902_v39  ;;  %v2903_v40 = vmax.f32 %v2839_v34, 0.0 }
 0x279   :  { %2965 = vst.msk [vmem:[#allocation5 + $0x198] sm:$0xff] %vm30_vm11, %v2900_v62  ;;  %v2901_v17 = vmax.f32 %v2837_v46, 0.0  ;;  %v3213_v44 = vpop.permute.xlu0 %3212  ;;  %v2300_v45 = vld [vmem:[#allocation2 + $0xf0] sm:$0xff] }
 0x27a   :  { %v3262_v33 = vpop.permute.xlu1 %3261  ;;  %v2301_v55 = vld [vmem:[#allocation2 + $0xf8] sm:$0xff]  ;;  %2968 = vst.msk [vmem:[#allocation5 + $0x1b0] sm:$0xff] %vm30_vm11, %v2903_v40  ;;  %4676 = vmatprep.mubr.msk.bf16.mxu0 %vm2338_vm10, %v2300_v45 }
 0x27b   :  { %3237 = vst.msk [vmem:[#allocation3] sm:$0xff] %vm3236_vm14, %v3213_v44  ;;  %4677 = vmatmul.mubr.msk.bf16.gmra.mrb[60].mxu0 %vm2338_vm10, %v2301_v55 }
 0x27c   :  { %2966 = vst.msk [vmem:[#allocation5 + $0x1a0] sm:$0xff] %vm30_vm11, %v2901_v17  ;;  %4704 = vmatprep.mubr.msk.bf16.mxu0 %vm4919_vm7, %v4914_v15 }
 0x27d   :  { %3286 = vst.msk [vmem:[#allocation3] sm:$0xff] %vm3285_vm15, %v3262_v33  ;;  %v3311_v54 = vpop.permute.xlu0 %3310 }
 0x27e   :  { %v3354_v0 = vpop.permute.xlu1 %3353  ;;  %3335 = vst.msk [vmem:[#allocation3] sm:$0xff] %vm3334_vm0, %v3311_v54 }
 0x27f   :  { %3378 = vst.msk [vmem:[#allocation3] sm:$0xff] %vm3377_vm1, %v3354_v0  ;;  %v3045_v52 = vld [vmem:[#allocation5 + $0x1a8] sm:$0xff] }
 0x280   :  { %v3043_v14 = vld [vmem:[#allocation5 + $0x198] sm:$0xff] }
 0x281   :  { %v3391_v27 = vpop.permute.xlu0 %3390  ;;  %v3249_v47 = vpack.c.bf16 %v3045_v52, %v3043_v14  ;;  %v6920_v8 = vld [vmem:[#allocation5 + $0x1b0] sm:$0xff] }
 0x282   :  { %v3117_v42 = vpop.permute.xlu1 %3116  ;;  %3415 = vst.msk [vmem:[#allocation3] sm:$0xff] %vm3414_vm2, %v3391_v27 }
 0x283   :  { %3140 = vst.msk [vmem:[#allocation3 + $0x10] sm:$0xff] %vm3138_vm12, %v3117_v42  ;;  %v3044_v4 = vld [vmem:[#allocation5 + $0x1a0] sm:$0xff]  ;;  %3269 = vrot.lane.b32.xlu1 %v3249_v47, %s4913_s26 }
 0x284   :  { %v3200_v28 = vpack.c.bf16 %v3044_v4, %v3042_v43  ;;  %v3298_v7 = vpack.c.bf16 %v6920_v8, %v3044_v4 }
 0x285   :  { %v3166_v3 = vpop.permute.xlu0 %3165 }
 0x286   :  { %v3215_v36 = vpop.permute.xlu1 %3214  ;;  %3220 = vrot.lane.b32.xlu0 %v3200_v28, %s4911_s23  ;;  %3189 = vst.msk [vmem:[#allocation3 + $0x10] sm:$0xff] %vm3187_vm13, %v3166_v3  ;;  %v3051_v28 = vld [vmem:[#allocation5 + $0x1e0] sm:$0xff] }
 0x287   :  { %3238 = vst.msk [vmem:[#allocation3 + $0x10] sm:$0xff] %vm3236_vm14, %v3215_v36  ;;  %v3440_v36 = vld [vmem:[#allocation3 + $0x38] sm:$0xff] }
 0x289   :  { %v3264_v1 = vpop.permute.xlu0 %3263  ;;  %v3433_v38 = vld [vmem:[#allocation3] sm:$0xff] }
 0x28a   :  { %v3313_v10 = vpop.permute.xlu1 %3312  ;;  %3318 = vrot.lane.b32.xlu0 %v3298_v7, %s4917_s2  ;;  %3287 = vst.msk [vmem:[#allocation3 + $0x10] sm:$0xff] %vm3285_vm15, %v3264_v1  ;;  %3578 = vmatmul.mubr.bf16.vlgmr.msra.gmra.mrb[0].mxu1 %v3433_v38 }
 0x28b   :  { %3336 = vst.msk [vmem:[#allocation3 + $0x10] sm:$0xff] %vm3334_vm0, %v3313_v10  ;;  %4486 = vmatprep.mubr.msk.bf16.mxu1 %vm30_vm11, %v3436_v11 }
 0x28d   :  { %v3356_v24 = vpop.permute.xlu0 %3355 }
 0x28e   :  { %v3393_v12 = vpop.permute.xlu1 %3392  ;;  %3379 = vst.msk [vmem:[#allocation3 + $0x10] sm:$0xff] %vm3377_vm1, %v3356_v24 }
 0x28f   :  { %3416 = vst.msk [vmem:[#allocation3 + $0x10] sm:$0xff] %vm3414_vm2, %v3393_v12 }
 0x291   :  { %v3119_v18 = vpop.permute.xlu0 %3118  ;;  %v4654_v58 = vpop.f32.mrb[36].mxu0 }
 0x292   :  { %v3168_v61 = vpop.permute.xlu1 %3167  ;;  %3141 = vst.msk [vmem:[#allocation3 + $0x20] sm:$0xff] %vm3138_vm12, %v3119_v18  ;;  %v2772_v53 = vmul.f32 %v6744_v23, %v4654_v58  ;;  %v2617_v9 = vpop.f32.mrb[37].mxu0 }
 0x293   :  { %3190 = vst.msk [vmem:[#allocation3 + $0x20] sm:$0xff] %vm3187_vm13, %v3168_v61  ;;  %v2770_v5 = vmul.f32 %v6744_v23, %v2617_v9  ;;  %v4655_v56 = vpop.f32.mrb[38].mxu0 }
 0x294   :  { %v2842_v13 = vadd.f32 %v6753_v16, %v2772_v53  ;;  %v2773_v59 = vmul.f32 %v6744_v23, %v4655_v56  ;;  %v2620_v51 = vpop.f32.mrb[39].mxu0 }
 0x295   :  { %v2840_v21 = vadd.f32 %v6753_v16, %v2770_v5  ;;  %v2771_v20 = vmul.f32 %v6744_v23, %v2620_v51  ;;  %v3217_v31 = vpop.permute.xlu0 %3216 }
 0x296   :  { %v3266_v29 = vpop.permute.xlu1 %3265  ;;  %v2906_v37 = vmax.f32 %v2842_v13, 0.0  ;;  %v2843_v19 = vadd.f32 %v6753_v16, %v2773_v59  ;;  %3239 = vst.msk [vmem:[#allocation3 + $0x20] sm:$0xff] %vm3236_vm14, %v3217_v31  ;;  %v3435_v41 = vld [vmem:[#allocation3 + $0x10] sm:$0xff] }
 0x297   :  { %v2904_v2 = vmax.f32 %v2840_v21, 0.0  ;;  %v2841_v30 = vadd.f32 %v6753_v16, %v2771_v20  ;;  %3288 = vst.msk [vmem:[#allocation3 + $0x20] sm:$0xff] %vm3285_vm15, %v3266_v29  ;;  %3586 = vmatmul.mubr.bf16.gmra.mrb[4].mxu1 %v3435_v41 }
 0x298   :  { %2971 = vst.msk [vmem:[#allocation5 + $0x1c8] sm:$0xff] %vm30_vm11, %v2906_v37  ;;  %v2907_v48 = vmax.f32 %v2843_v19, 0.0  ;;  %4487 = vmatprep.mubr.msk.bf16.mxu1 %vm30_vm11, %v3438_v26 }
 0x299   :  { %2969 = vst.msk [vmem:[#allocation5 + $0x1b8] sm:$0xff] %vm30_vm11, %v2904_v2  ;;  %v2905_v35 = vmax.f32 %v2841_v30, 0.0  ;;  %v3315_v25 = vpop.permute.xlu0 %3314 }
 0x29a   :  { %2972 = vst.msk [vmem:[#allocation5 + $0x1d0] sm:$0xff] %vm30_vm11, %v2907_v48 }
 0x29b   :  { %3337 = vst.msk [vmem:[#allocation3 + $0x20] sm:$0xff] %vm3334_vm0, %v3315_v25 }
 0x29c   :  { %2970 = vst.msk [vmem:[#allocation5 + $0x1c0] sm:$0xff] %vm30_vm11, %v2905_v35 }
 0x29f   :  { %v3049_v24 = vld [vmem:[#allocation5 + $0x1c8] sm:$0xff] }
 0x2a0   :  { %v3047_v12 = vld [vmem:[#allocation5 + $0x1b8] sm:$0xff] }
 0x2a1   :  { %v3250_v18 = vpack.c.bf16 %v3049_v24, %v3047_v12  ;;  %v3050_v53 = vld [vmem:[#allocation5 + $0x1d0] sm:$0xff] }
 0x2a3   :  { %v3048_v61 = vld [vmem:[#allocation5 + $0x1c0] sm:$0xff] }
 0x2a4   :  { %v3201_v58 = vpack.c.bf16 %v3048_v61, %v6920_v8  ;;  %v3299_v9 = vpack.c.bf16 %v3050_v53, %v3048_v61 }
 0x2b1   :  { %v4658_v50 = vpop.f32.mrb[40].mxu0 }
 0x2b2   :  { %v2776_v57 = vmul.f32 %v6744_v23, %v4658_v50  ;;  %v2633_v49 = vpop.f32.mrb[41].mxu0 }
 0x2b3   :  { %v2774_v63 = vmul.f32 %v6744_v23, %v2633_v49  ;;  %v4659_v22 = vpop.f32.mrb[42].mxu0 }
 0x2b4   :  { %v2846_v60 = vadd.f32 %v6753_v16, %v2776_v57  ;;  %v2777_v39 = vmul.f32 %v6744_v23, %v4659_v22  ;;  %v2636_v34 = vpop.f32.mrb[43].mxu0 }
 0x2b5   :  { %v2844_v62 = vadd.f32 %v6753_v16, %v2774_v63  ;;  %v2775_v46 = vmul.f32 %v6744_v23, %v2636_v34  ;;  %v3395_v40 = vpop.permute.xlu0 %3394 }
 0x2b6   :  { %v2910_v33 = vmax.f32 %v2846_v60, 0.0  ;;  %v2847_v55 = vadd.f32 %v6753_v16, %v2777_v39 }
 0x2b7   :  { %v2908_v17 = vmax.f32 %v2844_v62, 0.0  ;;  %v2845_v44 = vadd.f32 %v6753_v16, %v2775_v46 }
 0x2b8   :  { %v3358_v45 = vpop.permute.xlu1 %3357  ;;  %2975 = vst.msk [vmem:[#allocation5 + $0x1f8] sm:$0xff] %vm30_vm11, %v2910_v33  ;;  %v2911_v0 = vmax.f32 %v2847_v55, 0.0 }
 0x2b9   :  { %3380 = vst.msk [vmem:[#allocation3 + $0x20] sm:$0xff] %vm3377_vm1, %v3358_v45  ;;  %v2909_v54 = vmax.f32 %v2845_v44, 0.0  ;;  %v3170_v52 = vpop.permute.xlu0 %3169 }
 0x2ba   :  { %2973 = vst.msk [vmem:[#allocation5 + $0x1e8] sm:$0xff] %vm30_vm11, %v2908_v17  ;;  %2976 = vst.msk [vmem:[#allocation5 + $0x200] sm:$0xff] %vm30_vm11, %v2911_v0 }
 0x2bb   :  { %3417 = vst.msk [vmem:[#allocation3 + $0x20] sm:$0xff] %vm3414_vm2, %v3395_v40 }
 0x2bc   :  { %2974 = vst.msk [vmem:[#allocation5 + $0x1f0] sm:$0xff] %vm30_vm11, %v2909_v54  ;;  %v3121_v42 = vpop.permute.xlu1 %3120 }
 0x2bd   :  { %3142 = vst.msk [vmem:[#allocation3 + $0x30] sm:$0xff] %vm3138_vm12, %v3121_v42  ;;  %v3268_v27 = vpop.permute.xlu0 %3267 }
 0x2be   :  { %3191 = vst.msk [vmem:[#allocation3 + $0x30] sm:$0xff] %vm3187_vm13, %v3170_v52 }
 0x2bf   :  { %v3054_v43 = vld [vmem:[#allocation5 + $0x1f8] sm:$0xff] }
 0x2c0   :  { %v3219_v14 = vpop.permute.xlu1 %3218 }
 0x2c1   :  { %3240 = vst.msk [vmem:[#allocation3 + $0x30] sm:$0xff] %vm3236_vm14, %v3219_v14  ;;  %v3052_v4 = vld [vmem:[#allocation5 + $0x1e8] sm:$0xff]  ;;  %v6970_v7 = vld [vmem:[#allocation5 + $0x200] sm:$0xff] }
 0x2c2   :  { %v3437_v47 = vld [vmem:[#allocation3 + $0x20] sm:$0xff]  ;;  %3289 = vst.msk [vmem:[#allocation3 + $0x30] sm:$0xff] %vm3285_vm15, %v3268_v27  ;;  %v6968_v3 = vpack.c.bf16 %v3054_v43, %v3052_v4 }
 0x2c3   :  { %3594 = vmatmul.mubr.bf16.gmra.mrb[8].mxu1 %v3437_v47  ;;  %v3053_v10 = vld [vmem:[#allocation5 + $0x1f0] sm:$0xff] }
 0x2c4   :  { %4488 = vmatprep.mubr.msk.bf16.mxu1 %vm30_vm11, %v3440_v36  ;;  %v3317_v1 = vpop.permute.xlu1 %3316  ;;  %3398 = vrot.lane.b32.xlu0 %v6968_v3, %s4918_s20  ;;  %v3088_v38 = vpack.c.bf16 %v3053_v10, %v3051_v28  ;;  %v6976_v11 = vpack.c.bf16 %v6970_v7, %v3053_v10  ;;  %v3060_v10 = vld [vmem:[#allocation5 + $0x230] sm:$0xff] }
 0x2c5   :  { %3338 = vst.msk [vmem:[#allocation3 + $0x30] sm:$0xff] %vm3334_vm0, %v3317_v1 }
 0x2c6   :  { %3429 = vst.msk [vmem:[#allocation3 + $0x48] sm:$0xff] %vm30_vm11, %v6976_v11  ;;  %3361 = vrot.lane.b32.xlu1 %v3088_v38, %s4916_s21  ;;  %3096 = vst.msk [vmem:[#allocation3 + $0x60] sm:$0xff] %vm30_vm11, %v3088_v38 }
 0x2c8   :  { %3173 = vrot.lane.b32.xlu0 %v6879_v6, %s4909_s24 }
 0x2ca   :  { %3124 = vrot.lane.b32.xlu1 %v6873_v32, %s4906_s17 }
 0x2cc   :  { %3271 = vrot.lane.b32.xlu0 %v3250_v18, %s4913_s26 }
 0x2cd   :  { %v3442_v49 = vld [vmem:[#allocation3 + $0x48] sm:$0xff] }
 0x2ce   :  { %3222 = vrot.lane.b32.xlu1 %v3201_v58, %s4911_s23 }
 0x2d1   :  { %v4662_v5 = vpop.f32.mrb[44].mxu0 }
 0x2d2   :  { %3320 = vrot.lane.b32.xlu1 %v3299_v9, %s4917_s2  ;;  %v2780_v56 = vmul.f32 %v6744_v23, %v4662_v5  ;;  %v2649_v13 = vpop.f32.mrb[45].mxu0 }
 0x2d3   :  { %v2778_v6 = vmul.f32 %v6744_v23, %v2649_v13  ;;  %v4663_v59 = vpop.f32.mrb[46].mxu0 }
 0x2d4   :  { %v2850_v32 = vadd.f32 %v6753_v16, %v2780_v56  ;;  %v2781_v51 = vmul.f32 %v6744_v23, %v4663_v59  ;;  %v2652_v29 = vpop.f32.mrb[47].mxu0  ;;  %v7070_v56 = vld [vmem:[%s7348_s4] ss:$0 sm:$0xff] }
 0x2d5   :  { %v2848_v8 = vadd.f32 %v6753_v16, %v2778_v6  ;;  %v2779_v21 = vmul.f32 %v6744_v23, %v2652_v29  ;;  %v3397_v37 = vpop.permute.xlu1 %3396 }
 0x2d6   :  { %v2914_v20 = vmax.f32 %v2850_v32, 0.0  ;;  %v2851_v31 = vadd.f32 %v6753_v16, %v2781_v51 }
 0x2d7   :  { %v2912_v19 = vmax.f32 %v2848_v8, 0.0  ;;  %v2849_v41 = vadd.f32 %v6753_v16, %v2779_v21 }
 0x2d8   :  { %v3360_v2 = vpop.permute.xlu0 %3359  ;;  %2979 = vst.msk [vmem:[#allocation5 + $0x218] sm:$0xff] %vm30_vm11, %v2914_v20  ;;  %v2915_v30 = vmax.f32 %v2851_v31, 0.0 }
 0x2d9   :  { %3381 = vst.msk [vmem:[#allocation3 + $0x30] sm:$0xff] %vm3377_vm1, %v3360_v2  ;;  %v2913_v26 = vmax.f32 %v2849_v41, 0.0  ;;  %v3172_v35 = vpop.permute.xlu1 %3171 }
 0x2da   :  { %2977 = vst.msk [vmem:[#allocation5 + $0x208] sm:$0xff] %vm30_vm11, %v2912_v19  ;;  %2980 = vst.msk [vmem:[#allocation5 + $0x220] sm:$0xff] %vm30_vm11, %v2915_v30 }
 0x2db   :  { %3418 = vst.msk [vmem:[#allocation3 + $0x30] sm:$0xff] %vm3414_vm2, %v3397_v37 }
 0x2dc   :  { %2978 = vst.msk [vmem:[#allocation5 + $0x210] sm:$0xff] %vm30_vm11, %v2913_v26  ;;  %v3123_v48 = vpop.permute.xlu0 %3122 }
 0x2dd   :  { %3143 = vst.msk [vmem:[#allocation3 + $0x40] sm:$0xff] %vm3138_vm12, %v3123_v48 }
 0x2de   :  { %3192 = vst.msk [vmem:[#allocation3 + $0x40] sm:$0xff] %vm3187_vm13, %v3172_v35 }
 0x2df   :  { %v3058_v25 = vld [vmem:[#allocation5 + $0x218] sm:$0xff] }
 0x2e1   :  { %v3056_v57 = vld [vmem:[#allocation5 + $0x208] sm:$0xff]  ;;  %v3059_v22 = vld [vmem:[#allocation5 + $0x220] sm:$0xff] }
 0x2e2   :  { %v3439_v50 = vld [vmem:[#allocation3 + $0x30] sm:$0xff]  ;;  %v7027_v63 = vpack.c.bf16 %v3058_v25, %v3056_v57 }
 0x2e3   :  { %3602 = vmatmul.mubr.bf16.gmra.mrb[12].mxu1 %v3439_v50  ;;  %v3057_v60 = vld [vmem:[#allocation5 + $0x210] sm:$0xff] }
 0x2e4   :  { %4489 = vmatprep.mubr.msk.bf16.mxu1 %vm30_vm11, %v3442_v49  ;;  %3400 = vrot.lane.b32.xlu1 %v7027_v63, %s4918_s20  ;;  %v3089_v39 = vpack.c.bf16 %v3057_v60, %v6970_v7  ;;  %v7033_v34 = vpack.c.bf16 %v3059_v22, %v3057_v60 }
 0x2e6   :  { %3430 = vst.msk [vmem:[#allocation3 + $0x58] sm:$0xff] %vm30_vm11, %v7033_v34  ;;  %3363 = vrot.lane.b32.xlu0 %v3089_v39, %s4916_s21  ;;  %3097 = vst.msk [vmem:[#allocation3 + $0x70] sm:$0xff] %vm30_vm11, %v3089_v39 }
 0x2e8   :  { %3175 = vrot.lane.b32.xlu1 %v6976_v11, %s4909_s24 }
 0x2ea   :  { %3126 = vrot.lane.b32.xlu0 %v6968_v3, %s4906_s17 }
 0x2f1   :  { %v4666_v62 = vpop.f32.mrb[48].mxu0 }
 0x2f2   :  { %v2784_v46 = vmul.f32 %v6744_v23, %v4666_v62  ;;  %v2665_v40 = vpop.f32.mrb[49].mxu0 }
 0x2f3   :  { %v2782_v33 = vmul.f32 %v6744_v23, %v2665_v40  ;;  %v4667_v55 = vpop.f32.mrb[50].mxu0 }
 0x2f4   :  { %v2854_v17 = vadd.f32 %v6753_v16, %v2784_v46  ;;  %v2785_v44 = vmul.f32 %v6744_v23, %v4667_v55  ;;  %v2668_v45 = vpop.f32.mrb[51].mxu0 }
 0x2f5   :  { %v2852_v0 = vadd.f32 %v6753_v16, %v2782_v33  ;;  %v2783_v54 = vmul.f32 %v6744_v23, %v2668_v45  ;;  %v3270_v4 = vpop.permute.xlu1 %3269 }
 0x2f6   :  { %v2918_v52 = vmax.f32 %v2854_v17, 0.0  ;;  %v2855_v42 = vadd.f32 %v6753_v16, %v2785_v44 }
 0x2f7   :  { %v2916_v14 = vmax.f32 %v2852_v0, 0.0  ;;  %v2853_v43 = vadd.f32 %v6753_v16, %v2783_v54  ;;  %v3069_v54 = vld [vmem:[#allocation5 + $0x280] sm:$0xff] }
 0x2f8   :  { %v3221_v27 = vpop.permute.xlu0 %3220  ;;  %2983 = vst.msk [vmem:[#allocation5 + $0x248] sm:$0xff] %vm30_vm11, %v2918_v52  ;;  %v2919_v47 = vmax.f32 %v2855_v42, 0.0  ;;  %v3444_v52 = vld [vmem:[#allocation3 + $0x58] sm:$0xff] }
 0x2f9   :  { %3241 = vst.msk [vmem:[#allocation3 + $0x40] sm:$0xff] %vm3236_vm14, %v3221_v27  ;;  %v2917_v28 = vmax.f32 %v2853_v43, 0.0 }
 0x2fa   :  { %2981 = vst.msk [vmem:[#allocation5 + $0x238] sm:$0xff] %vm30_vm11, %v2916_v14  ;;  %2984 = vst.msk [vmem:[#allocation5 + $0x250] sm:$0xff] %vm30_vm11, %v2919_v47 }
 0x2fb   :  { %3290 = vst.msk [vmem:[#allocation3 + $0x40] sm:$0xff] %vm3285_vm15, %v3270_v4 }
 0x2fc   :  { %2982 = vst.msk [vmem:[#allocation5 + $0x240] sm:$0xff] %vm30_vm11, %v2917_v28  ;;  %v3319_v36 = vpop.permute.xlu0 %3318 }
 0x2fd   :  { %3339 = vst.msk [vmem:[#allocation3 + $0x40] sm:$0xff] %vm3334_vm0, %v3319_v36 }
 0x2ff   :  { %v3063_v3 = vld [vmem:[#allocation5 + $0x248] sm:$0xff] }
 0x301   :  { %v3061_v7 = vld [vmem:[#allocation5 + $0x238] sm:$0xff]  ;;  %v7059_v12 = vld [vmem:[#allocation5 + $0x250] sm:$0xff] }
 0x302   :  { %v3251_v1 = vpack.c.bf16 %v3063_v3, %v3061_v7 }
 0x303   :  { %v3062_v38 = vld [vmem:[#allocation5 + $0x240] sm:$0xff] }
 0x304   :  { %3273 = vrot.lane.b32.xlu1 %v3251_v1, %s4913_s26  ;;  %v3202_v11 = vpack.c.bf16 %v3062_v38, %v3060_v10  ;;  %v3300_v24 = vpack.c.bf16 %v7059_v12, %v3062_v38 }
 0x306   :  { %3224 = vrot.lane.b32.xlu0 %v3202_v11, %s4911_s23 }
 0x30a   :  { %3322 = vrot.lane.b32.xlu0 %v3300_v24, %s4917_s2 }
 0x311   :  { %v4670_v61 = vpop.f32.mrb[52].mxu0 }
 0x312   :  { %v2788_v18 = vmul.f32 %v6744_v23, %v4670_v61  ;;  %v2681_v58 = vpop.f32.mrb[53].mxu0 }
 0x313   :  { %v2786_v53 = vmul.f32 %v6744_v23, %v2681_v58  ;;  %v4671_v9 = vpop.f32.mrb[54].mxu0  ;;  %v7079_v23 = vld [vmem:[%s7349_s5] ss:$0 sm:$0xff] }
 0x314   :  { %v2858_v5 = vadd.f32 %v6753_v16, %v2788_v18  ;;  %v2789_v13 = vmul.f32 %v7070_v56, %v4671_v9  ;;  %v2684_v6 = vpop.f32.mrb[55].mxu0 }
 0x315   :  { %v2856_v59 = vadd.f32 %v6753_v16, %v2786_v53  ;;  %v2787_v32 = vmul.f32 %v7070_v56, %v2684_v6 }
 0x316   :  { %v2922_v51 = vmax.f32 %v2858_v5, 0.0  ;;  %v2859_v29 = vadd.f32 %v6753_v16, %v2789_v13 }
 0x317   :  { %v2920_v8 = vmax.f32 %v2856_v59, 0.0  ;;  %v2857_v21 = vadd.f32 %v7079_v23, %v2787_v32 }
 0x318   :  { %2987 = vst.msk [vmem:[#allocation5 + $0x268] sm:$0xff] %vm30_vm11, %v2922_v51  ;;  %v2923_v20 = vmax.f32 %v2859_v29, 0.0 }
 0x319   :  { %2985 = vst.msk [vmem:[#allocation5 + $0x258] sm:$0xff] %vm30_vm11, %v2920_v8  ;;  %v2921_v31 = vmax.f32 %v2857_v21, 0.0  ;;  %v3721_v8 = vld [vmem:[#allocation6 + $0x10] sm:$0xff]  ;;  %v3719_v21 = vld [vmem:[#allocation6] sm:$0xff] }
 0x31a   :  { %2988 = vst.msk [vmem:[#allocation5 + $0x270] sm:$0xff] %vm30_vm11, %v2923_v20 }
 0x31b   :  { %2986 = vst.msk [vmem:[#allocation5 + $0x260] sm:$0xff] %vm30_vm11, %v2921_v31  ;;  %v3748_v31 = vpack.c.bf16 %v3721_v8, %v3719_v21  ;;  %v4877_v21 = vld [vmem:[%s7351_s3] sm:$0xff]  }
 0x31d   :  { %3750 = vst.msk [vmem:[#allocation4] sm:$0xff] %vm73_vm3, %v3748_v31  ;;  %v4879_v31 = vld [vmem:[%s7351_s3 + $0x8] sm:$0xff]  }
 0x31f   :  { %v3067_v36 = vld [vmem:[#allocation5 + $0x268] sm:$0xff] }
 0x320   :  { %v3065_v28 = vld [vmem:[#allocation5 + $0x258] sm:$0xff] }
 0x321   :  { %v3252_v7 = vpack.c.bf16 %v3067_v36, %v3065_v28  ;;  %v3068_v1 = vld [vmem:[#allocation5 + $0x270] sm:$0xff] }
 0x322   :  { %v3066_v3 = vld [vmem:[#allocation5 + $0x260] sm:$0xff] }
 0x323   :  { %v3203_v10 = vpack.c.bf16 %v3066_v3, %v7059_v12  ;;  %v3301_v61 = vpack.c.bf16 %v3068_v1, %v3066_v3 }
 0x331   :  { %v4674_v37 = vpop.f32.mrb[56].mxu0 }
 0x332   :  { %v2792_v16 = vmul.f32 %v7070_v56, %v4674_v37  ;;  %v2697_v19 = vpop.f32.mrb[57].mxu0 }
 0x333   :  { %v2790_v41 = vmul.f32 %v7070_v56, %v2697_v19  ;;  %v4675_v2 = vpop.f32.mrb[58].mxu0  ;;  %v3720_v19 = vld [vmem:[#allocation6 + $0x8] sm:$0xff] }
 0x334   :  { %v2862_v30 = vadd.f32 %v7079_v23, %v2792_v16  ;;  %v2793_v26 = vmul.f32 %v7070_v56, %v4675_v2  ;;  %v2700_v48 = vpop.f32.mrb[59].mxu0  ;;  %v7145_v2 = vld [vmem:[%s7349_s5 + $0x1] ss:$0 sm:$0xff] }
 0x335   :  { %v2860_v35 = vadd.f32 %v7079_v23, %v2790_v41  ;;  %v2791_v25 = vmul.f32 %v7070_v56, %v2700_v48  ;;  %v3722_v41 = vld [vmem:[#allocation6 + $0x18] sm:$0xff] }
 0x336   :  { %v3399_v50 = vpop.permute.xlu0 %3398  ;;  %v2926_v57 = vmax.f32 %v2862_v30, 0.0  ;;  %v2863_v49 = vadd.f32 %v7079_v23, %v2793_v26 }
 0x337   :  { %v2924_v22 = vmax.f32 %v2860_v35, 0.0  ;;  %v2861_v60 = vadd.f32 %v7079_v23, %v2791_v25 }
 0x338   :  { %v3362_v39 = vpop.permute.xlu1 %3361  ;;  %2991 = vst.msk [vmem:[#allocation5 + $0x298] sm:$0xff] %vm30_vm11, %v2926_v57  ;;  %v2927_v62 = vmax.f32 %v2863_v49, 0.0 }
 0x339   :  { %3382 = vst.msk [vmem:[#allocation3 + $0x40] sm:$0xff] %vm3377_vm1, %v3362_v39  ;;  %v2925_v46 = vmax.f32 %v2861_v60, 0.0 }
 0x33a   :  { %2989 = vst.msk [vmem:[#allocation5 + $0x288] sm:$0xff] %vm30_vm11, %v2924_v22  ;;  %2992 = vst.msk [vmem:[#allocation5 + $0x2a0] sm:$0xff] %vm30_vm11, %v2927_v62  ;;  %v3174_v40 = vpop.permute.xlu0 %3173  ;;  %v3752_v22 = vpack.c.bf16 %v3722_v41, %v3720_v19  ;;  %v4880_v19 = vld [vmem:[%s7351_s3 + $0x50] sm:$0xff]  }
 0x33b   :  { %3419 = vst.msk [vmem:[#allocation3 + $0x40] sm:$0xff] %vm3414_vm2, %v3399_v50  ;;  %v4881_v41 = vld [vmem:[%s7351_s3 + $0x10] sm:$0xff]  }
 0x33c   :  { %2990 = vst.msk [vmem:[#allocation5 + $0x290] sm:$0xff] %vm30_vm11, %v2925_v46  ;;  %v3125_v33 = vpop.permute.xlu1 %3124 }
 0x33d   :  { %3144 = vst.msk [vmem:[#allocation3 + $0x50] sm:$0xff] %vm3138_vm12, %v3125_v33 }
 0x33e   :  { %3193 = vst.msk [vmem:[#allocation3 + $0x50] sm:$0xff] %vm3187_vm13, %v3174_v40  ;;  %v3272_v44 = vpop.permute.xlu0 %3271 }
 0x33f   :  { %v3072_v17 = vld [vmem:[#allocation5 + $0x298] sm:$0xff] }
 0x340   :  { %v3223_v55 = vpop.permute.xlu1 %3222 }
 0x341   :  { %3242 = vst.msk [vmem:[#allocation3 + $0x50] sm:$0xff] %vm3236_vm14, %v3223_v55  ;;  %v3070_v0 = vld [vmem:[#allocation5 + $0x288] sm:$0xff]  ;;  %v7104_v14 = vld [vmem:[#allocation5 + $0x2a0] sm:$0xff] }
 0x342   :  { %v3441_v45 = vld [vmem:[#allocation3 + $0x40] sm:$0xff]  ;;  %3291 = vst.msk [vmem:[#allocation3 + $0x50] sm:$0xff] %vm3285_vm15, %v3272_v44  ;;  %v3386_v42 = vpack.c.bf16 %v3072_v17, %v3070_v0  ;;  %v3723_v17 = vld [vmem:[#allocation6 + $0x20] sm:$0xff] }
 0x343   :  { %3610 = vmatmul.mubr.bf16.gmra.mrb[16].mxu1 %v3441_v45  ;;  %v3071_v43 = vld [vmem:[#allocation5 + $0x290] sm:$0xff] }
 0x344   :  { %4490 = vmatprep.mubr.msk.bf16.mxu1 %vm30_vm11, %v3444_v52  ;;  %v3321_v27 = vpop.permute.xlu1 %3320  ;;  %3402 = vrot.lane.b32.xlu0 %v3386_v42, %s4918_s20  ;;  %v3343_v47 = vpack.c.bf16 %v3071_v43, %v3069_v54  ;;  %v3423_v4 = vpack.c.bf16 %v7104_v14, %v3071_v43  ;;  %v3765_v54 = vpack.c.bf16 %v3723_v17, %v3721_v8  ;;  %v3724_v43 = vld [vmem:[#allocation6 + $0x30] sm:$0xff] }
 0x345   :  { %3340 = vst.msk [vmem:[#allocation3 + $0x50] sm:$0xff] %vm3334_vm0, %v3321_v27  ;;  %v4876_v8 = vld [vmem:[%s7351_s3 + $0x40] sm:$0xff]  }
 0x346   :  { %3431 = vst.msk [vmem:[#allocation3 + $0x68] sm:$0xff] %vm30_vm11, %v3423_v4  ;;  %3365 = vrot.lane.b32.xlu1 %v3343_v47, %s4916_s21  ;;  %4565 = vmatprep.subr.bf16.mxu1 %v4876_v8  ;;  %v3734_v8 = vld [vmem:[#allocation6 + $0x90] sm:$0xff] }
 0x347   :  { %4566 = vmatpush3.bf16.msra.mxu1 %v4877_v21 }
 0x348   :  { %3177 = vrot.lane.b32.xlu0 %v7033_v34, %s4909_s24 }
 0x34a   :  { %3128 = vrot.lane.b32.xlu1 %v7027_v63, %s4906_s17 }
 0x34c   :  { %3275 = vrot.lane.b32.xlu0 %v3252_v7, %s4913_s26 }
 0x34d   :  { %v3446_v55 = vld [vmem:[#allocation3 + $0x68] sm:$0xff] }
 0x34e   :  { %3226 = vrot.lane.b32.xlu1 %v3203_v10, %s4911_s23  ;;  %v4678_v38 = vpop.f32.mrb[60].mxu0 }
 0x34f   :  { %v2796_v11 = vmul.f32 %v7070_v56, %v4678_v38  ;;  %v2713_v24 = vpop.f32.mrb[61].mxu0 }
 0x350   :  { %v2794_v18 = vmul.f32 %v7070_v56, %v2713_v24  ;;  %v4679_v34 = vpop.f32.mrb[62].mxu0 }
 0x351   :  { %v2866_v58 = vadd.f32 %v7079_v23, %v2796_v11  ;;  %v2797_v63 = vmul.f32 %v7070_v56, %v4679_v34  ;;  %v2716_v53 = vpop.f32.mrb[63].mxu0 }
 0x352   :  { %3324 = vrot.lane.b32.xlu1 %v3301_v61, %s4917_s2  ;;  %v2864_v12 = vadd.f32 %v7079_v23, %v2794_v18  ;;  %v2795_v9 = vmul.f32 %v7070_v56, %v2716_v53 }
 0x353   :  { %v2930_v5 = vmax.f32 %v2866_v58, 0.0  ;;  %v2867_v13 = vadd.f32 %v7079_v23, %v2797_v63 }
 0x354   :  { %v2928_v6 = vmax.f32 %v2864_v12, 0.0  ;;  %v2865_v59 = vadd.f32 %v7079_v23, %v2795_v9  ;;  %v7138_v23 = vld [vmem:[%s7348_s4 + $0x1] ss:$0 sm:$0xff] }
 0x355   :  { %2995 = vst.msk [vmem:[#allocation5 + $0x2b8] sm:$0xff] %vm30_vm11, %v2930_v5  ;;  %v2931_v32 = vmax.f32 %v2867_v13, 0.0 }
 0x356   :  { %2993 = vst.msk [vmem:[#allocation5 + $0x2a8] sm:$0xff] %vm30_vm11, %v2928_v6  ;;  %v2929_v51 = vmax.f32 %v2865_v59, 0.0  ;;  %v3401_v29 = vpop.permute.xlu1 %3400 }
 0x357   :  { %2996 = vst.msk [vmem:[#allocation5 + $0x2c0] sm:$0xff] %vm30_vm11, %v2931_v32 }
 0x358   :  { %v3364_v20 = vpop.permute.xlu0 %3363  ;;  %2994 = vst.msk [vmem:[#allocation5 + $0x2b0] sm:$0xff] %vm30_vm11, %v2929_v51 }
 0x359   :  { %3383 = vst.msk [vmem:[#allocation3 + $0x50] sm:$0xff] %vm3377_vm1, %v3364_v20  ;;  %v4878_v20 = vld [vmem:[%s7351_s3 + $0x48] sm:$0xff]  }
 0x35a   :  { %3420 = vst.msk [vmem:[#allocation3 + $0x50] sm:$0xff] %vm3414_vm2, %v3401_v29  ;;  %v3176_v37 = vpop.permute.xlu1 %3175  ;;  %4567 = vmatprep.subr.bf16.mxu1 %v4878_v20 }
 0x35b   :  { %4568 = vmatpush3.bf16.msra.mxu1 %v4879_v31 }
 0x35c   :  { %v3127_v56 = vpop.permute.xlu0 %3126  ;;  %v3076_v16 = vld [vmem:[#allocation5 + $0x2b8] sm:$0xff]  ;;  %4569 = vmatprep.subr.bf16.mxu1 %v4880_v19 }
 0x35d   :  { %3145 = vst.msk [vmem:[#allocation3 + $0x60] sm:$0xff] %vm3138_vm12, %v3127_v56  ;;  %v3579_v30 = vpop.f32.mrb[0].mxu1  ;;  %v3074_v26 = vld [vmem:[#allocation5 + $0x2a8] sm:$0xff]  ;;  %v3729_v56 = vld [vmem:[#allocation6 + $0x60] sm:$0xff] }
 0x35e   :  { %3194 = vst.msk [vmem:[#allocation3 + $0x60] sm:$0xff] %vm3187_vm13, %v3176_v37  ;;  %v3648_v48 = vmul.f32 %v7138_v23, %v3579_v30  ;;  %v3581_v35 = vpop.f32.mrb[1].mxu1  ;;  %v3387_v25 = vpack.c.bf16 %v3076_v16, %v3074_v26  ;;  %v3077_v50 = vld [vmem:[#allocation5 + $0x2c0] sm:$0xff]  ;;  %v4882_v30 = vld [vmem:[%s7351_s3 + $0x58] sm:$0xff]  }
 0x35f   :  { %v3582_v57 = vpop.f32.mrb[2].mxu1  ;;  %v3075_v49 = vld [vmem:[#allocation5 + $0x2b0] sm:$0xff]  ;;  %v4883_v26 = vld [vmem:[%s7351_s3 + $0x18] sm:$0xff]   ;;  %4570 = vmatpush3.bf16.msra.mxu1 %v4881_v41 }
 0x360   :  { %v3670_v60 = vadd.f32 %v7145_v2, %v3648_v48  ;;  %v3649_v39 = vmul.f32 %v7138_v23, %v3582_v57  ;;  %v3584_v62 = vpop.f32.mrb[3].mxu1  ;;  %3404 = vrot.lane.b32.xlu1 %v3387_v25, %s4918_s20  ;;  %v3344_v40 = vpack.c.bf16 %v3075_v49, %v7104_v14  ;;  %v3424_v33 = vpack.c.bf16 %v3077_v50, %v3075_v49  ;;  %v4884_v48 = vld [vmem:[%s7351_s3 + $0x60] sm:$0xff]   ;;  %v4886_v25 = vld [vmem:[%s7351_s3 + $0x68] sm:$0xff]  }
 0x361   :  { %v3443_v46 = vld [vmem:[#allocation3 + $0x50] sm:$0xff]  ;;  %4571 = vmatprep.subr.bf16.mxu1 %v4882_v30  ;;  %v4885_v35 = vld [vmem:[%s7351_s3 + $0x20] sm:$0xff]   ;;  %v4887_v57 = vld [vmem:[%s7351_s3 + $0x28] sm:$0xff]  }
 0x362   :  { %3618 = vmatmul.mubr.bf16.gmra.mrb[20].mxu1 %v3443_v46  ;;  %v3686_v44 = vmax.f32 %v3670_v60, 0.0  ;;  %v3671_v45 = vadd.f32 %v7145_v2, %v3649_v39  ;;  %3432 = vst.msk [vmem:[#allocation3 + $0x78] sm:$0xff] %vm30_vm11, %v3424_v33  ;;  %3367 = vrot.lane.b32.xlu0 %v3344_v40, %s4916_s21 }
 0x363   :  { %4491 = vmatprep.mubr.msk.bf16.mxu1 %vm30_vm11, %v3446_v55  ;;  %4572 = vmatpush3.bf16.msra.mxu1 %v4883_v26  ;;  %v4888_v55 = vld [vmem:[%s7351_s3 + $0x70] sm:$0xff]  }
 0x364   :  { %3703 = vst.msk [vmem:[#allocation6 + $0x38] sm:$0xff] %vm73_vm3, %v3686_v44  ;;  %v3687_v0 = vmax.f32 %v3671_v45, 0.0  ;;  %3756 = vrot.lane.b32.xlu1 %v3752_v22, %s4909_s24  ;;  %4573 = vmatprep.subr.bf16.mxu1 %v4884_v48  ;;  %v4889_v45 = vld [vmem:[%s7351_s3 + $0x30] sm:$0xff]  }
 0x366   :  { %3704 = vst.msk [vmem:[#allocation6 + $0x40] sm:$0xff] %vm73_vm3, %v3687_v0 }
 0x367   :  { %4574 = vmatpush3.bf16.msra.mxu1 %v4885_v35 }
 0x368   :  { %3769 = vrot.lane.b32.xlu1 %v3765_v54, %s4913_s26  ;;  %4575 = vmatprep.subr.bf16.mxu1 %v4886_v25 }
 0x36a   :  { %v3587_v52 = vpop.f32.mrb[4].mxu1 }
 0x36b   :  { %v3650_v42 = vmul.f32 %v7138_v23, %v3587_v52  ;;  %v3589_v14 = vpop.f32.mrb[5].mxu1  ;;  %v3725_v24 = vld [vmem:[#allocation6 + $0x38] sm:$0xff]  ;;  %4576 = vmatpush3.bf16.msra.mxu1 %v4887_v57 }
 0x36c   :  { %v3590_v27 = vpop.f32.mrb[6].mxu1  ;;  %4577 = vmatprep.subr.bf16.mxu1 %v4888_v55  ;;  %v4891_v14 = vld [vmem:[%s7351_s3 + $0x38] sm:$0xff]  }
 0x36d   :  { %v3672_v47 = vadd.f32 %v7145_v2, %v3650_v42  ;;  %v3651_v4 = vmul.f32 %v7138_v23, %v3590_v27  ;;  %v3592_v28 = vpop.f32.mrb[7].mxu1  ;;  %v3726_v36 = vld [vmem:[#allocation6 + $0x40] sm:$0xff]  ;;  %v4890_v42 = vld [vmem:[%s7351_s3 + $0x78] sm:$0xff]  }
 0x36e   :  { %v3778_v3 = vpack.c.bf16 %v3726_v36, %v3724_v43 }
 0x36f   :  { %v3688_v7 = vmax.f32 %v3672_v47, 0.0  ;;  %v3673_v10 = vadd.f32 %v7145_v2, %v3651_v4  ;;  %4578 = vmatpush3.bf16.msra.mxu1 %v4889_v45  ;;  %v3448_v4 = vld [vmem:[#allocation3 + $0x78] sm:$0xff] }
 0x370   :  { %3782 = vrot.lane.b32.xlu1 %v3778_v3, %s4916_s21  ;;  %4579 = vmatprep.subr.bf16.mxu1 %v4890_v42 }
 0x371   :  { %3705 = vst.msk [vmem:[#allocation6 + $0x48] sm:$0xff] %vm73_vm3, %v3688_v7  ;;  %v3689_v1 = vmax.f32 %v3673_v10, 0.0 }
 0x373   :  { %3706 = vst.msk [vmem:[#allocation6 + $0x50] sm:$0xff] %vm73_vm3, %v3689_v1  ;;  %4580 = vmatpush3.bf16.msra.mxu1 %v4891_v14 }
 0x376   :  { %v3274_v11 = vpop.permute.xlu1 %3273 }
 0x378   :  { %v3225_v38 = vpop.permute.xlu0 %3224  ;;  %v3727_v61 = vld [vmem:[#allocation6 + $0x48] sm:$0xff] }
 0x379   :  { %3243 = vst.msk [vmem:[#allocation3 + $0x60] sm:$0xff] %vm3236_vm14, %v3225_v38  ;;  %v3791_v18 = vpack.c.bf16 %v3727_v61, %v3725_v24 }
 0x37a   :  { %3292 = vst.msk [vmem:[#allocation3 + $0x60] sm:$0xff] %vm3285_vm15, %v3274_v11  ;;  %v3728_v34 = vld [vmem:[#allocation6 + $0x50] sm:$0xff] }
 0x37b   :  { %v3795_v63 = vpack.c.bf16 %v3728_v34, %v3726_v36  ;;  %3793 = vst.msk [vmem:[#allocation4 + $0x8] sm:$0xff] %vm73_vm3, %v3791_v18 }
 0x37c   :  { %v3323_v58 = vpop.permute.xlu0 %3322 }
 0x37d   :  { %3341 = vst.msk [vmem:[#allocation3 + $0x60] sm:$0xff] %vm3334_vm0, %v3323_v58  ;;  %3799 = vrot.lane.b32.xlu0 %v3795_v63, %s4909_s24 }
 0x396   :  { %v3595_v53 = vpop.f32.mrb[8].mxu1 }
 0x397   :  { %v3652_v12 = vmul.f32 %v7138_v23, %v3595_v53  ;;  %v3597_v9 = vpop.f32.mrb[9].mxu1 }
 0x398   :  { %v3598_v5 = vpop.f32.mrb[10].mxu1 }
 0x399   :  { %v3674_v13 = vadd.f32 %v7145_v2, %v3652_v12  ;;  %v3653_v6 = vmul.f32 %v7138_v23, %v3598_v5  ;;  %v3600_v59 = vpop.f32.mrb[11].mxu1 }
 0x39b   :  { %v3690_v32 = vmax.f32 %v3674_v13, 0.0  ;;  %v3675_v51 = vadd.f32 %v7145_v2, %v3653_v6 }
 0x39d   :  { %3707 = vst.msk [vmem:[#allocation6 + $0x68] sm:$0xff] %vm73_vm3, %v3690_v32  ;;  %v3691_v29 = vmax.f32 %v3675_v51, 0.0 }
 0x39f   :  { %3708 = vst.msk [vmem:[#allocation6 + $0x70] sm:$0xff] %vm73_vm3, %v3691_v29 }
 0x3a4   :  { %v3730_v28 = vld [vmem:[#allocation6 + $0x68] sm:$0xff] }
 0x3a6   :  { %v7190_v37 = vld [vmem:[#allocation6 + $0x70] sm:$0xff] }
 0x3a7   :  { %v3749_v16 = vpack.c.bf16 %v7190_v37, %v3729_v56 }
 0x3a9   :  { %3810 = vrot.lane.b32.xlu0 %v3749_v16, %s4913_s26  ;;  %3751 = vst.msk [vmem:[#allocation4 + $0x18] sm:$0xff] %vm73_vm3, %v3749_v16 }
 0x3b6   :  { %v3603_v50 = vpop.f32.mrb[12].mxu1  ;;  %v3403_v60 = vpop.permute.xlu0 %3402 }
 0x3b7   :  { %v3654_v49 = vmul.f32 %v7138_v23, %v3603_v50  ;;  %v3605_v22 = vpop.f32.mrb[13].mxu1 }
 0x3b8   :  { %v3606_v39 = vpop.f32.mrb[14].mxu1  ;;  %v3366_v33 = vpop.permute.xlu1 %3365 }
 0x3b9   :  { %v3676_v62 = vadd.f32 %v7145_v2, %v3654_v49  ;;  %v3655_v46 = vmul.f32 %v7138_v23, %v3606_v39  ;;  %v3608_v40 = vpop.f32.mrb[15].mxu1  ;;  %3384 = vst.msk [vmem:[#allocation3 + $0x60] sm:$0xff] %vm3377_vm1, %v3366_v33 }
 0x3ba   :  { %3421 = vst.msk [vmem:[#allocation3 + $0x60] sm:$0xff] %vm3414_vm2, %v3403_v60  ;;  %v3178_v0 = vpop.permute.xlu0 %3177 }
 0x3bb   :  { %v3692_v17 = vmax.f32 %v3676_v62, 0.0  ;;  %v3677_v44 = vadd.f32 %v7145_v2, %v3655_v46 }
 0x3bc   :  { %v3129_v52 = vpop.permute.xlu1 %3128 }
 0x3bd   :  { %3709 = vst.msk [vmem:[#allocation6 + $0x78] sm:$0xff] %vm73_vm3, %v3692_v17  ;;  %v3693_v54 = vmax.f32 %v3677_v44, 0.0 }
 0x3be   :  { %3146 = vst.msk [vmem:[#allocation3 + $0x70] sm:$0xff] %vm3138_vm12, %v3129_v52  ;;  %v3276_v27 = vpop.permute.xlu0 %3275 }
 0x3bf   :  { %3710 = vst.msk [vmem:[#allocation6 + $0x80] sm:$0xff] %vm73_vm3, %v3693_v54 }
 0x3c0   :  { %3195 = vst.msk [vmem:[#allocation3 + $0x70] sm:$0xff] %vm3187_vm13, %v3178_v0  ;;  %v3227_v43 = vpop.permute.xlu1 %3226 }
 0x3c1   :  { %3244 = vst.msk [vmem:[#allocation3 + $0x70] sm:$0xff] %vm3236_vm14, %v3227_v43  ;;  %v3445_v47 = vld [vmem:[#allocation3 + $0x60] sm:$0xff] }
 0x3c2   :  { %3293 = vst.msk [vmem:[#allocation3 + $0x70] sm:$0xff] %vm3285_vm15, %v3276_v27  ;;  %3626 = vmatmul.mubr.bf16.gmra.mrb[24].mxu1 %v3445_v47  ;;  %v3739_v27 = vld [vmem:[#allocation6 + $0xc0] sm:$0xff] }
 0x3c3   :  { %4492 = vmatprep.mubr.msk.bf16.mxu1 %vm30_vm11, %v3448_v4 }
 0x3c4   :  { %v3732_v36 = vld [vmem:[#allocation6 + $0x78] sm:$0xff]  ;;  %v3325_v3 = vpop.permute.xlu1 %3324 }
 0x3c5   :  { %v3753_v7 = vpack.c.bf16 %v3732_v36, %v3730_v28  ;;  %3342 = vst.msk [vmem:[#allocation3 + $0x70] sm:$0xff] %vm3334_vm0, %v3325_v3 }
 0x3c6   :  { %v3733_v10 = vld [vmem:[#allocation6 + $0x80] sm:$0xff] }
 0x3c7   :  { %3758 = vrot.lane.b32.xlu1 %v3753_v7, %s4909_s24  ;;  %3820 = vrot.lane.b32.xlu0 %v3753_v7, %s4916_s21  ;;  %v3766_v1 = vpack.c.bf16 %v3733_v10, %v7190_v37 }
 0x3c9   :  { %3829 = vst.msk [vmem:[#allocation4 + $0x10] sm:$0xff] %vm73_vm3, %v3766_v1 }
 0x3cb   :  { %3771 = vrot.lane.b32.xlu1 %v3766_v1, %s4913_s26 }
 0x3d2   :  { %v3405_v38 = vpop.permute.xlu1 %3404 }
 0x3d4   :  { %v3368_v11 = vpop.permute.xlu0 %3367 }
 0x3d5   :  { %3385 = vst.msk [vmem:[#allocation3 + $0x70] sm:$0xff] %vm3377_vm1, %v3368_v11  ;;  %v4892_v11 = vld [vmem:[%s7351_s3 + $0x80] sm:$0xff]  }
 0x3d6   :  { %3422 = vst.msk [vmem:[#allocation3 + $0x70] sm:$0xff] %vm3414_vm2, %v3405_v38  ;;  %v3757_v24 = vpop.permute.xlu1 %3756  ;;  %4680 = vmatprep.subr.bf16.mxu1 %v4892_v11 }
 0x3d7   :  { %3763 = vst.msk [vmem:[#allocation4] sm:$0xff] %vm3762_vm4, %v3757_v24 }
 0x3da   :  { %v3770_v61 = vpop.permute.xlu1 %3769 }
 0x3db   :  { %3776 = vst.msk [vmem:[#allocation4] sm:$0xff] %vm3775_vm5, %v3770_v61 }
 0x3dd   :  { %v3447_v18 = vld [vmem:[#allocation3 + $0x70] sm:$0xff] }
 0x3de   :  { %3634 = vmatmul.mubr.bf16.gmra.mrb[28].mxu1 %v3447_v18 }
 0x3e2   :  { %v3783_v34 = vpop.permute.xlu1 %3782 }
 0x3e3   :  { %3789 = vst.msk [vmem:[#allocation4] sm:$0xff] %vm3788_vm6, %v3783_v34 }
 0x3ea   :  { %v3831_v22 = vld [vmem:[#allocation4] sm:$0xff] }
 0x3ef   :  { %v3800_v58 = vpop.permute.xlu0 %3799 }
 0x3f0   :  { %3805 = vst.msk [vmem:[#allocation4 + $0x8] sm:$0xff] %vm3762_vm4, %v3800_v58 }
 0x416   :  { %v3611_v63 = vpop.f32.mrb[16].mxu1 }
 0x417   :  { %v3656_v53 = vmul.f32 %v7138_v23, %v3611_v63  ;;  %v3613_v12 = vpop.f32.mrb[17].mxu1 }
 0x418   :  { %v3614_v9 = vpop.f32.mrb[18].mxu1 }
 0x419   :  { %v3678_v5 = vadd.f32 %v7145_v2, %v3656_v53  ;;  %v3657_v13 = vmul.f32 %v7138_v23, %v3614_v9  ;;  %v3616_v6 = vpop.f32.mrb[19].mxu1  ;;  %v4894_v9 = vld [vmem:[%s7352_s6] sm:$0xff]  }
 0x41a   :  { %4689 = vmatpush3.bf16.msra.mxu0 %v4894_v9  ;;  %v4897_v6 = vld [vmem:[%s7352_s6 + $0x18] sm:$0xff]  }
 0x41b   :  { %v3694_v59 = vmax.f32 %v3678_v5, 0.0  ;;  %v3679_v32 = vadd.f32 %v7145_v2, %v3657_v13  ;;  %v3811_v51 = vpop.permute.xlu0 %3810  ;;  %v4895_v5 = vld [vmem:[%s7352_s6 + $0x8] sm:$0xff]   ;;  %4690 = vmatprep.subr.bf16.mxu0 %v4914_v15  ;;  %v4896_v13 = vld [vmem:[%s7352_s6 + $0x10] sm:$0xff]  }
 0x41c   :  { %3816 = vst.msk [vmem:[#allocation4 + $0x8] sm:$0xff] %vm3775_vm5, %v3811_v51  ;;  %v4900_v51 = vld [vmem:[%s7352_s6 + $0x30] sm:$0xff]  }
 0x41d   :  { %3711 = vst.msk [vmem:[#allocation6 + $0x98] sm:$0xff] %vm73_vm3, %v3694_v59  ;;  %v3695_v29 = vmax.f32 %v3679_v32, 0.0  ;;  %v4898_v59 = vld [vmem:[%s7352_s6 + $0x20] sm:$0xff]   ;;  %v4899_v32 = vld [vmem:[%s7352_s6 + $0x28] sm:$0xff]  }
 0x41e   :  { %4691 = vmatpush3.bf16.msra.mxu0 %v4895_v5 }
 0x41f   :  { %3712 = vst.msk [vmem:[#allocation6 + $0xa0] sm:$0xff] %vm73_vm3, %v3695_v29  ;;  %4692 = vmatprep.subr.bf16.mxu0 %v4914_v15 }
 0x422   :  { %4693 = vmatpush3.bf16.msra.mxu0 %v4896_v13 }
 0x423   :  { %4694 = vmatprep.subr.bf16.mxu0 %v4914_v15 }
 0x424   :  { %v3735_v60 = vld [vmem:[#allocation6 + $0x98] sm:$0xff] }
 0x426   :  { %v3736_v21 = vld [vmem:[#allocation6 + $0xa0] sm:$0xff]  ;;  %4695 = vmatpush3.bf16.msra.mxu0 %v4897_v6 }
 0x427   :  { %v3779_v20 = vpack.c.bf16 %v3736_v21, %v3734_v8  ;;  %4696 = vmatprep.subr.bf16.mxu0 %v4914_v15 }
 0x429   :  { %3784 = vrot.lane.b32.xlu1 %v3779_v20, %s4916_s21 }
 0x42a   :  { %4697 = vmatpush3.bf16.msra.mxu0 %v4898_v59 }
 0x42b   :  { %4698 = vmatprep.subr.bf16.mxu0 %v4914_v15 }
 0x42e   :  { %4699 = vmatpush3.bf16.msra.mxu0 %v4899_v32 }
 0x42f   :  { %4700 = vmatprep.subr.bf16.mxu0 %v4914_v15 }
 0x432   :  { %4701 = vmatpush3.bf16.msra.mxu0 %v4900_v51 }
 0x433   :  { %4702 = vmatprep.subr.bf16.mxu0 %v4914_v15  ;;  %v4518_v15 = vld [vmem:[%s7349_s5 + $0x2] ss:$0 sm:$0xff] }
 0x435   :  { %v3619_v31 = vpop.f32.mrb[20].mxu1 }
 0x436   :  { %v3658_v56 = vmul.f32 %v7138_v23, %v3619_v31  ;;  %v3621_v37 = vpop.f32.mrb[21].mxu1 }
 0x437   :  { %v3622_v16 = vpop.f32.mrb[22].mxu1 }
 0x438   :  { %v3680_v19 = vadd.f32 %v7145_v2, %v3658_v56  ;;  %v3659_v41 = vmul.f32 %v7138_v23, %v3622_v16  ;;  %v3624_v30 = vpop.f32.mrb[23].mxu1 }
 0x439   :  { %v3759_v26 = vpop.permute.xlu1 %3758  ;;  %v3821_v48 = vpop.permute.xlu0 %3820  ;;  %v3833_v30 = vld [vmem:[#allocation4 + $0x10] sm:$0xff] }
 0x43a   :  { %3764 = vst.msk [vmem:[#allocation4 + $0x18] sm:$0xff] %vm3762_vm4, %v3759_v26  ;;  %v3696_v35 = vmax.f32 %v3680_v19, 0.0  ;;  %v3681_v25 = vadd.f32 %v7145_v2, %v3659_v41 }
 0x43b   :  { %3826 = vst.msk [vmem:[#allocation4 + $0x8] sm:$0xff] %vm3788_vm6, %v3821_v48  ;;  %v4901_v48 = vld [vmem:[%s7352_s6 + $0x38] sm:$0xff]  }
 0x43c   :  { %3713 = vst.msk [vmem:[#allocation6 + $0xa8] sm:$0xff] %vm73_vm3, %v3696_v35  ;;  %v3697_v50 = vmax.f32 %v3681_v25, 0.0  ;;  %4703 = vmatpush3.bf16.msra.mxu0 %v4901_v48 }
 0x43d   :  { %v3772_v57 = vpop.permute.xlu1 %3771 }
 0x43e   :  { %3777 = vst.msk [vmem:[#allocation4 + $0x18] sm:$0xff] %vm3775_vm5, %v3772_v57 }
 0x43f   :  { %3714 = vst.msk [vmem:[#allocation6 + $0xb0] sm:$0xff] %vm73_vm3, %v3697_v50 }
 0x442   :  { %v3832_v49 = vld [vmem:[#allocation4 + $0x8] sm:$0xff] }
 0x443   :  { %4019 = vmatprep.mubr.bf16.mxu1 %v3832_v49  ;;  %v3737_v39 = vld [vmem:[#allocation6 + $0xa8] sm:$0xff] }
 0x444   :  { %4020 = vmatmul.mubr.bf16.vlgmr.msra.gmra.mrb[32].mxu1 %v3831_v22  ;;  %v3792_v62 = vpack.c.bf16 %v3737_v39, %v3735_v60  ;;  %v4517_v39 = vld [vmem:[%s7348_s4 + $0x2] ss:$0 sm:$0xff] }
 0x445   :  { %4681 = vmatpush3.bf16.msra.mxu1 %v4892_v11  ;;  %v4519_v11 = vld [vmem:[%s7353_s7] ss:$0 sm:$0xff] }
 0x446   :  { %v3738_v46 = vld [vmem:[#allocation6 + $0xb0] sm:$0xff]  ;;  %3794 = vst.msk [vmem:[#allocation4 + $0x20] sm:$0xff] %vm73_vm3, %v3792_v62 }
 0x447   :  { %v3796_v40 = vpack.c.bf16 %v3738_v46, %v3736_v21 }
 0x449   :  { %3801 = vrot.lane.b32.xlu0 %v3796_v40, %s4909_s24 }
 0x495   :  { %v3627_v33 = vpop.f32.mrb[24].mxu1 }
 0x496   :  { %v3660_v55 = vmul.f32 %v7138_v23, %v3627_v33  ;;  %v3629_v17 = vpop.f32.mrb[25].mxu1 }
 0x497   :  { %v3630_v44 = vpop.f32.mrb[26].mxu1 }
 0x498   :  { %v3682_v45 = vadd.f32 %v7145_v2, %v3660_v55  ;;  %v3661_v0 = vmul.f32 %v7138_v23, %v3630_v44  ;;  %v3632_v54 = vpop.f32.mrb[27].mxu1 }
 0x49a   :  { %v3698_v52 = vmax.f32 %v3682_v45, 0.0  ;;  %v3683_v42 = vadd.f32 %v7145_v2, %v3661_v0 }
 0x49b   :  { %v3785_v14 = vpop.permute.xlu1 %3784 }
 0x49c   :  { %3790 = vst.msk [vmem:[#allocation4 + $0x18] sm:$0xff] %vm3788_vm6, %v3785_v14  ;;  %v3699_v43 = vmax.f32 %v3683_v42, 0.0 }
 0x49d   :  { %3715 = vst.msk [vmem:[#allocation6 + $0xc8] sm:$0xff] %vm73_vm3, %v3698_v52 }
 0x49e   :  { %3716 = vst.msk [vmem:[#allocation6 + $0xd0] sm:$0xff] %vm73_vm3, %v3699_v43 }
 0x4a3   :  { %v3834_v41 = vld [vmem:[#allocation4 + $0x18] sm:$0xff] }
 0x4a4   :  { %v3740_v58 = vld [vmem:[#allocation6 + $0xc8] sm:$0xff] }
 0x4a5   :  { %v3741_v47 = vld [vmem:[#allocation6 + $0xd0] sm:$0xff] }
 0x4a6   :  { %v3807_v4 = vpack.c.bf16 %v3741_v47, %v3739_v27 }
 0x4a8   :  { %3812 = vrot.lane.b32.xlu0 %v3807_v4, %s4913_s26 }
 0x4b1   :  { %v3635_v28 = vpop.f32.mrb[28].mxu1 }
 0x4b2   :  { %v3662_v36 = vmul.f32 %v7138_v23, %v3635_v28  ;;  %v3637_v3 = vpop.f32.mrb[29].mxu1 }
 0x4b3   :  { %v3638_v7 = vpop.f32.mrb[30].mxu1 }
 0x4b4   :  { %v3684_v10 = vadd.f32 %v7145_v2, %v3662_v36  ;;  %v3663_v1 = vmul.f32 %v7138_v23, %v3638_v7  ;;  %v3640_v38 = vpop.f32.mrb[31].mxu1  ;;  %v4893_v23 = vld [vmem:[%s7351_s3 + $0x88] sm:$0xff]  }
 0x4b5   :  { %4682 = vmatprep.subr.bf16.mxu1 %v4893_v23 }
 0x4b6   :  { %v3700_v24 = vmax.f32 %v3684_v10, 0.0  ;;  %v3685_v61 = vadd.f32 %v7145_v2, %v3663_v1  ;;  %4683 = vmatpush3.bf16.msra.mxu1 %v4893_v23 }
 0x4b8   :  { %3717 = vst.msk [vmem:[#allocation6 + $0xd8] sm:$0xff] %vm73_vm3, %v3700_v24  ;;  %v3701_v18 = vmax.f32 %v3685_v61, 0.0 }
 0x4ba   :  { %3718 = vst.msk [vmem:[#allocation6 + $0xe0] sm:$0xff] %vm73_vm3, %v3701_v18 }
 0x4bb   :  { %v3802_v34 = vpop.permute.xlu0 %3801 }
 0x4bc   :  { %3806 = vst.msk [vmem:[#allocation4 + $0x20] sm:$0xff] %vm3762_vm4, %v3802_v34 }
 0x4bf   :  { %v3742_v63 = vld [vmem:[#allocation6 + $0xd8] sm:$0xff] }
 0x4c0   :  { %v3818_v53 = vpack.c.bf16 %v3742_v63, %v3740_v58 }
 0x4c1   :  { %v3743_v2 = vld [vmem:[#allocation6 + $0xe0] sm:$0xff] }
 0x4c2   :  { %v3828_v12 = vpack.c.bf16 %v3743_v2, %v3741_v47  ;;  %3822 = vrot.lane.b32.xlu0 %v3818_v53, %s4916_s21 }
 0x4c4   :  { %3830 = vst.msk [vmem:[#allocation4 + $0x28] sm:$0xff] %vm73_vm3, %v3828_v12 }
 0x4cb   :  { %v3836_v26 = vld [vmem:[#allocation4 + $0x28] sm:$0xff] }
 0x517   :  { %v4581_v29 = vpop.f32.mrb[32].mxu1 }
 0x518   :  { %v4582_v8 = vpop.f32.mrb[33].mxu1 }
 0x519   :  { %v4583_v21 = vadd.f32 %v4582_v8, %v4581_v29  ;;  %v4584_v20 = vpop.f32.mrb[34].mxu1 }
 0x51a   :  { %v4585_v31 = vpop.f32.mrb[35].mxu1  ;;  %v3813_v37 = vpop.permute.xlu0 %3812 }
 0x51b   :  { %v4586_v56 = vadd.f32 %v4585_v31, %v4584_v20  ;;  %3817 = vst.msk [vmem:[#allocation4 + $0x20] sm:$0xff] %vm3775_vm5, %v3813_v37 }
 0x534   :  { %v3823_v16 = vpop.permute.xlu0 %3822 }
 0x535   :  { %3827 = vst.msk [vmem:[#allocation4 + $0x20] sm:$0xff] %vm3788_vm6, %v3823_v16 }
 0x53c   :  { %v3835_v19 = vld [vmem:[#allocation4 + $0x20] sm:$0xff] }
 0x53d   :  { %4027 = vmatprep.mubr.bf16.mxu1 %v3835_v19 }
 0x53e   :  { %4028 = vmatmul.mubr.bf16.gmra.mrb[36].mxu1 %v3834_v41 }
 0x53f   :  { %4684 = vmatprep.mubr.msk.bf16.mxu1 %vm73_vm3, %v3833_v30 }
 0x546   :  { %4685 = vmatmul.mubr.msk.bf16.vlgmr.msra.gmra.mrb[40].mxu1 %vm73_vm3, %v3836_v26 }
 0x611   :  { %v4587_v35 = vpop.f32.mrb[36].mxu1 }
 0x612   :  { %v4588_v25 = vpop.f32.mrb[37].mxu1 }
 0x613   :  { %v4589_v50 = vadd.f32 %v4588_v25, %v4587_v35  ;;  %v4590_v57 = vpop.f32.mrb[38].mxu1 }
 0x614   :  { %v4591_v49 = vpop.f32.mrb[39].mxu1 }
 0x615   :  { %v4592_v22 = vadd.f32 %v4591_v49, %v4590_v57 }
 0x619   :  { %v4686_v60 = vpop.f32.mrb[40].mxu1 }
 0x61a   :  { %v4079_v62 = vadd.f32 %v4686_v60, %v4589_v50  ;;  %v4070_v46 = vpop.f32.mrb[41].mxu1 }
 0x61b   :  { %v4071_v40 = vadd.f32 %v4583_v21, %v4070_v46  ;;  %v4687_v33 = vpop.f32.mrb[42].mxu1 }
 0x61c   :  { %v4082_v55 = vadd.f32 %v4687_v33, %v4592_v22  ;;  %v4073_v17 = vpop.f32.mrb[43].mxu1  ;;  %v4093_v44 = vmul.f32 %v4517_v39, %v4079_v62 }
 0x61d   :  { %v4091_v45 = vmul.f32 %v4517_v39, %v4071_v40  ;;  %v4074_v0 = vadd.f32 %v4586_v56, %v4073_v17 }
 0x61e   :  { %v4094_v52 = vmul.f32 %v4517_v39, %v4082_v55  ;;  %v4103_v14 = vadd.f32 %v4518_v15, %v4093_v44 }
 0x61f   :  { %v4101_v54 = vadd.f32 %v4518_v15, %v4091_v45  ;;  %v4092_v42 = vmul.f32 %v4517_v39, %v4074_v0 }
 0x620   :  { %v4104_v47 = vadd.f32 %v4518_v15, %v4094_v52  ;;  %v4107_v28 = vmax.f32 %v4103_v14, 0.0 }
 0x621   :  { %v4102_v43 = vadd.f32 %v4518_v15, %v4092_v42  ;;  %v4105_v27 = vmax.f32 %v4101_v54, 0.0 }
 0x622   :  { %v4108_v3 = vmax.f32 %v4104_v47, 0.0 }
 0x623   :  { %v4106_v4 = vmax.f32 %v4102_v43, 0.0 }
 0x625   :  { %v4109_v36 = vadd.f32 %v4106_v4, %v4105_v27 }
 0x627   :  { %v4110_v7 = vadd.f32 %v4109_v36, %v4107_v28 }
 0x629   :  { %v4111_v10 = vadd.f32 %v4110_v7, %v4108_v3 }
 0x62b   :  { %v4113_v1 = vmul.f32 0.25, %v4111_v10 }
 0x62d   :  { %v4114_v38 = vpack.c.bf16 %v4113_v1, %v4113_v1 }
 0x62f   :  { %4705 = vmatmul.mubr.bf16.vlgmr.msra.gmra.mrb[64].mxu0 %v4114_v38 }
 0x702   :  { %v4220_v24 = vpop.f32.mrb[64].mxu0 }
 0x703   :  { %v4221_v61 = vadd.f32 %v4519_v11, %v4220_v24  ;;  %v4706_v18 = vpop.f32.mrb[65].mxu0 }
 0x704   :  { %v4223_v34 = vpop.f32.mrb[66].mxu0 }
 0x705   :  { %4226 = vst [vmem:[%s7354_s8] sm:$0xff] %v4221_v61  ;;  %v4707_v23 = vpop.f32.mrb[67].mxu0 }

</bundles_post_ra>
